<compile_context>
chip_gen: v6e
topology: v6e:2x2x1
jax: 0.10.0
libtpu: 0.0.40
codegen_flags: <defaults>
</compile_context>

<pallas_src>
import functools
import math

import jax
import jax.numpy as jnp
from jax.experimental import pallas as pl
from jax.experimental.pallas import tpu as pltpu

# ---------------- model hyperparameters ----------------
SOURCES = 2
AUDIO_CH = 2
CHANNELS0 = 8
GROWTH = 2.0
DEPTH = 2
KERNEL = 8
STRIDE = 4
CONTEXT = 1
COMP_RES_DEPTH = 2
COMP_RES_COMP = 4
COMP_RES_INIT = 1e-4
RESCALE_REF = 0.1
GN_EPS = 1e-5

ACT_DTYPE = jnp.bfloat16          # inter-layer activation storage dtype


def _tpu_budget():
    """Generation-aware VMEM limit / max time tile.
    v5e/v6e have 128 MiB VMEM -> big tiles amortize per-step overhead;
    v7x has 64 MiB VMEM but 3.2 TB/s HBM -> smaller resident footprint."""
    try:
        vmem = int(pltpu.get_tpu_info().vmem_capacity_bytes)
    except Exception:
        vmem = 64 * 1024 * 1024
    if vmem >= 100 * 1024 * 1024:            # v5e / v6e (128 MiB parts)
        return 96 * 1024 * 1024, 4096
    return 48 * 1024 * 1024, 2048            # v7x (64 MiB)


VMEM_LIMIT, TIME_TILE = _tpu_budget()


# ---------------- in-kernel math helpers ----------------
def _gelu(x):
    # tanh-approximate GELU (tanh -> EUP slot, keeps VALU free in fused epilogues).
    # TODO(synk): torch.nn.GELU() uses exact erf; max abs deviation ~1e-3.
    c = 0.7978845608028654  # sqrt(2/pi)
    return 0.5 * x * (1.0 + jnp.tanh(c * (x + 0.044715 * x * x * x)))


def _gn_center(y, n):
    """Two-pass GroupNorm(1, C) stats over a VMEM-resident (C, L) f32 block.
    Returns (y - mean, biased variance)."""
    s = jnp.sum(jnp.sum(y, axis=1, keepdims=True), axis=0, keepdims=True)
    d = y - s / n
    q = jnp.sum(jnp.sum(d * d, axis=1, keepdims=True), axis=0, keepdims=True)
    return d, q / n


# ---------------------------------------------------------------------------
# Kernel 1: stride-1 conv as K shifted (Cout,Cin)x(Cin,TL) matmuls, fused
#           bias + optional GELU / GLU epilogue and optional fused skip-add.
#           Output block is (Cout, TL): time on lanes, stored in bf16.
# ---------------------------------------------------------------------------
def _conv_act_kernel(*refs, dilation, act, fuse_add, single_tile):
    if fuse_add:
        x_ref, a_ref, w_ref, b_ref, o_ref = refs
    else:
        x_ref, w_ref, b_ref, o_ref = refs
        a_ref = None
    K, Cw, _ = w_ref.shape
    Cout, TL = o_ref.shape
    win = TL + dilation * (K - 1)

    if single_tile:
        xw = x_ref[...]                                   # window == full block
        if fuse_add:
            xw = xw + a_ref[...]
    else:
        base = pl.multiple_of(pl.program_id(1) * TL, 128)  # 128-aligned dyn start
        sl = pl.ds(base, win)
        xw = x_ref[:, sl]
        if fuse_add:
            xw = xw + a_ref[:, sl]
    xw = xw.astype(jnp.bfloat16)

    acc = jnp.zeros((Cw, TL), jnp.float32)
    for k in range(K):                                    # static, K <= 3
        lo = k * dilation
        acc = acc + jnp.dot(w_ref[k], xw[:, lo:lo + TL],
                            preferred_element_type=jnp.float32)
    acc = acc + b_ref[...]                                # (Cw,1) broadcast

    if act == "gelu":
        res = _gelu(acc)
    elif act == "glu":
        res = acc[:Cout] * jax.nn.sigmoid(acc[Cout:])
    else:
        res = acc
    o_ref[...] = res.astype(o_ref.dtype)


def _run_conv(x, w_kcc, bias, *, dilation=1, pad=(0, 0), act="none", add=None,
              out_dtype=ACT_DTYPE, time_tile=None):
    """Stride-1 conv.  x: (B,Cin,L), w_kcc: (K,Cw,Cin).  -> (B,Cout,Lout)."""
    if time_tile is None:
        time_tile = TIME_TILE
    B, Cin, L = x.shape
    K, Cw, _ = w_kcc.shape
    Cout = Cw // 2 if act == "glu" else Cw
    halo = dilation * (K - 1)
    Lout = L + pad[0] + pad[1] - halo
    assert Lout >= 1

    # Balanced time tiling (multiple of 128 when tiled; last tile never mostly pad).
    if Lout <= time_tile:
        TL, n_t = Lout, 1
    else:
        n_t = math.ceil(Lout / time_tile)
        TL = math.ceil(math.ceil(Lout / n_t) / 128) * 128
        n_t = math.ceil(Lout / TL)
    Lout_pad = n_t * TL

    # One consolidated pad: user halo on the left, user halo + tile rounding right.
    right = Lout_pad + halo - L - pad[0]
    if pad[0] or right:
        cfg = ((0, 0), (0, 0), (pad[0], right))
        x = jnp.pad(x, cfg)
        if add is not None:
            add = jnp.pad(add, cfg)
    Lp = x.shape[-1]

    wk = w_kcc.astype(jnp.bfloat16)
    b2 = bias.astype(jnp.float32).reshape(Cw, 1)

    in_specs = [pl.BlockSpec((None, Cin, Lp), lambda bi, ti: (bi, 0, 0))]
    args = [x]
    if add is not None:
        in_specs.append(pl.BlockSpec((None, Cin, Lp), lambda bi, ti: (bi, 0, 0)))
        args.append(add)
    in_specs += [pl.BlockSpec((K, Cw, Cin), lambda bi, ti: (0, 0, 0)),
                 pl.BlockSpec((Cw, 1), lambda bi, ti: (0, 0))]
    args += [wk, b2]

    out = pl.pallas_call(
        functools.partial(_conv_act_kernel, dilation=dilation, act=act,
                          fuse_add=add is not None, single_tile=(n_t == 1)),
        out_shape=jax.ShapeDtypeStruct((B, Cout, Lout_pad), out_dtype),
        grid=(B, n_t),
        in_specs=in_specs,
        out_specs=pl.BlockSpec((None, Cout, TL), lambda bi, ti: (bi, 0, ti)),
        compiler_params=pltpu.CompilerParams(
            dimension_semantics=("parallel", "parallel"),
            vmem_limit_bytes=VMEM_LIMIT),
    )(*args)
    if Lout_pad != Lout:
        out = out[:, :, :Lout]
    return out


def conv1d(x, w_torch, bias, *, dilation=1, pad=0, act="none", add=None,
           out_dtype=ACT_DTYPE):
    """Conv1d with PyTorch-layout weight (Cout, Cin, K), stride 1."""
    wk = jnp.transpose(w_torch, (2, 0, 1))
    return _run_conv(x, wk, bias, dilation=dilation, pad=(pad, pad), act=act,
                     add=add, out_dtype=out_dtype)


def strided_conv_gelu(x, w_torch, bias):
    """Conv1d(kernel=8, stride=4) + GELU via space-to-channel (stride folded
    into channels), so the Pallas kernel is a stride-1 conv with K=2."""
    B, Cin, L = x.shape
    Cout = w_torch.shape[0]
    assert L % STRIDE == 0 and KERNEL == 2 * STRIDE
    Lq = L // STRIDE
    # space-to-channel relayout (XLA, on bf16).
    xs = x.reshape(B, Cin, Lq, STRIDE).transpose(0, 1, 3, 2).reshape(B, Cin * STRIDE, Lq)
    w2 = jnp.transpose(w_torch.reshape(Cout, Cin, 2, STRIDE), (2, 0, 1, 3))
    w2 = w2.reshape(2, Cout, Cin * STRIDE)
    return _run_conv(xs, w2, bias, act="gelu")


def conv_transpose_ps(x, w_torch, bias, *, act, out_dtype=ACT_DTYPE):
    """ConvTranspose1d(kernel=8, stride=4) (+ optional GELU) as a stride-1 conv
    producing STRIDE*Cout phase channels + pixel-shuffle.  No zero-insertion."""
    B, Cin, _ = x.shape
    Cout = w_torch.shape[1]
    w4 = w_torch.reshape(Cin, Cout, 2, STRIDE)[:, :, ::-1, :]      # [cin,cout,t,s]
    wc = jnp.transpose(w4, (2, 3, 1, 0)).reshape(2, STRIDE * Cout, Cin)
    bc = jnp.tile(bias, STRIDE)
    res = _run_conv(x, wc, bc, pad=(1, 1), act=act, out_dtype=out_dtype)
    Lph = res.shape[-1]
    # pixel-shuffle relayout (XLA, on bf16 for hidden layers).
    out = res.reshape(B, STRIDE, Cout, Lph).transpose(0, 2, 3, 1)
    return out.reshape(B, Cout, STRIDE * Lph)                      # length (Lin-1)*4+8


# ---------------------------------------------------------------------------
# Kernel 2: fully fused CompRes sub-layer (one pallas_call per sub-layer):
#   dilated conv(k=3) -> GroupNorm(1,hidden) -> GELU -> 1x1 conv ->
#   GroupNorm(1,2C) -> GLU -> LayerScale -> residual add.
#   GN needs full-L stats, so grid is per batch (C <= 32, hidden <= 8 here);
#   the hidden tensor and both GN passes stay entirely in VMEM.
# ---------------------------------------------------------------------------
def _compres_kernel(xp_ref, w1_ref, b1_ref, g1w_ref, g1b_ref,
                    w2_ref, b2_ref, g2w_ref, g2b_ref, s_ref, o_ref, *, dilation):
    C, L = o_ref.shape
    hidden = w1_ref.shape[1]
    C2 = w2_ref.shape[0]
    xp = xp_ref[...].astype(jnp.bfloat16)                 # (C, L + 2*dilation)

    # c1: dilated k=3 "same" conv (padding applied by the wrapper)
    acc = jnp.zeros((hidden, L), jnp.float32)
    for k in range(3):
        lo = k * dilation
        acc = acc + jnp.dot(w1_ref[k], xp[:, lo:lo + L],
                            preferred_element_type=jnp.float32)
    acc = acc + b1_ref[...]
    # GroupNorm(1, hidden) + GELU  (two-pass stats in f32)
    d1, var1 = _gn_center(acc, float(hidden * L))
    h = _gelu(d1 * (g1w_ref[...] * jax.lax.rsqrt(var1 + GN_EPS)) + g1b_ref[...])

    # c2: 1x1 conv -> GroupNorm(1, 2C) -> GLU -> LayerScale -> residual
    y = jnp.dot(w2_ref[...], h.astype(jnp.bfloat16),
                preferred_element_type=jnp.float32) + b2_ref[...]
    d2, var2 = _gn_center(y, float(C2 * L))
    y = d2 * (g2w_ref[...] * jax.lax.rsqrt(var2 + GN_EPS)) + g2b_ref[...]
    g = y[:C] * jax.nn.sigmoid(y[C:])                     # GLU
    res = xp[:, dilation:dilation + L].astype(jnp.float32)
    o_ref[...] = (res + s_ref[...] * g).astype(o_ref.dtype)


def compres_layer(x, p, *, dilation):
    B, C, L = x.shape
    hidden = p["c1_w"].shape[0]
    C2 = 2 * C
    xp = jnp.pad(x, ((0, 0), (0, 0), (dilation, dilation)))
    Lp = L + 2 * dilation
    w1 = jnp.transpose(p["c1_w"], (2, 0, 1)).astype(jnp.bfloat16)   # (3, hidden, C)
    w2 = p["c2_w"][:, :, 0].astype(jnp.bfloat16)                    # (2C, hidden)
    col = lambda v: v.astype(jnp.float32).reshape(-1, 1)

    return pl.pallas_call(
        functools.partial(_compres_kernel, dilation=dilation),
        out_shape=jax.ShapeDtypeStruct((B, C, L), ACT_DTYPE),
        grid=(B,),
        in_specs=[pl.BlockSpec((None, C, Lp), lambda bi: (bi, 0, 0)),
                  pl.BlockSpec((3, hidden, C), lambda bi: (0, 0, 0)),
                  pl.BlockSpec((hidden, 1), lambda bi: (0, 0)),
                  pl.BlockSpec((hidden, 1), lambda bi: (0, 0)),
                  pl.BlockSpec((hidden, 1), lambda bi: (0, 0)),
                  pl.BlockSpec((C2, hidden), lambda bi: (0, 0)),
                  pl.BlockSpec((C2, 1), lambda bi: (0, 0)),
                  pl.BlockSpec((C2, 1), lambda bi: (0, 0)),
                  pl.BlockSpec((C2, 1), lambda bi: (0, 0)),
                  pl.BlockSpec((C, 1), lambda bi: (0, 0))],
        out_specs=pl.BlockSpec((None, C, L), lambda bi: (bi, 0, 0)),
        compiler_params=pltpu.CompilerParams(
            dimension_semantics=("parallel",),
            vmem_limit_bytes=VMEM_LIMIT),
    )(xp, w1, col(p["c1_b"]), col(p["gn1_w"]), col(p["gn1_b"]),
      w2, col(p["c2_b"]), col(p["gn2_w"]), col(p["gn2_b"]), col(p["scale"]))


# ---------------- parameter init (deterministic, with rescale_module) ----------------
def _init_conv(key, cout, cin, k, transpose=False):
    kw, kb = jax.random.split(key)
    fan_in = cin * k
    bound = 1.0 / math.sqrt(fan_in)
    shape = (cin, cout, k) if transpose else (cout, cin, k)
    w = jax.random.uniform(kw, shape, jnp.float32, -bound, bound)
    b = jax.random.uniform(kb, (cout,), jnp.float32, -bound, bound)
    std = jnp.std(w, ddof=1)                       # rescale_conv(conv, RESCALE_REF)
    scale = jnp.sqrt(std / RESCALE_REF)
    return w / scale, b / scale


def init_params(key):
    counter = [0]

    def nk():
        counter[0] += 1
        return jax.random.fold_in(key, counter[0])

    enc_params, dec_by_index = [], []
    in_ch = AUDIO_CH
    ch = CHANNELS0
    for index in range(DEPTH):
        enc = {}
        enc["conv_w"], enc["conv_b"] = _init_conv(nk(), ch, in_ch, KERNEL)
        hidden = int(ch / COMP_RES_COMP)
        comp = []
        for _d in range(COMP_RES_DEPTH):
            layer = {}
            layer["c1_w"], layer["c1_b"] = _init_conv(nk(), hidden, ch, 3)
            layer["gn1_w"] = jnp.ones((hidden,), jnp.float32)
            layer["gn1_b"] = jnp.zeros((hidden,), jnp.float32)
            layer["c2_w"], layer["c2_b"] = _init_conv(nk(), 2 * ch, hidden, 1)
            layer["gn2_w"] = jnp.ones((2 * ch,), jnp.float32)
            layer["gn2_b"] = jnp.zeros((2 * ch,), jnp.float32)
            layer["scale"] = jnp.full((ch,), COMP_RES_INIT, jnp.float32)
            comp.append(layer)
        enc["compres"] = comp
        enc["rw_w"], enc["rw_b"] = _init_conv(nk(), 2 * ch, ch, 1)
        enc_params.append(enc)

        dec = {}
        out_ch = in_ch if index > 0 else SOURCES * AUDIO_CH
        dec["rw_w"], dec["rw_b"] = _init_conv(nk(), 2 * ch, ch, 2 * CONTEXT + 1)
        dec["ct_w"], dec["ct_b"] = _init_conv(nk(), out_ch, ch, KERNEL, transpose=True)
        dec_by_index.append(dec)

        in_ch = ch
        ch = int(GROWTH * ch)

    # decoder list is built with insert(0): deepest layer processed first.
    return {"enc": enc_params, "dec": list(reversed(dec_by_index))}


# ---------------- forward pass ----------------
def valid_length(length):
    L = length
    for _ in range(DEPTH):
        L = math.ceil((L - KERNEL) / STRIDE) + 1
        L = max(1, L)
    for _ in range(DEPTH):
        L = (L - 1) * STRIDE + KERNEL
    return int(L)


def center_trim(x, ref_len):
    delta = x.shape[-1] - ref_len
    if delta == 0:
        return x
    return x[..., delta // 2: x.shape[-1] - (delta - delta // 2)]


def compres(x, layers):
    # CompRes (mamba=True branch): Conv(dilated)->GN->GELU->Conv1x1->GN->GLU->
    # LayerScale + residual, fully fused into ONE Pallas kernel per sub-layer.
    for d, p in enumerate(layers):
        x = compres_layer(x, p, dilation=2 ** d)
    return x


def encoder_layer(x, p):
    x = strided_conv_gelu(x, p["conv_w"], p["conv_b"])       # conv+GELU (+Identity)
    x = compres(x, p["compres"])
    x = conv1d(x, p["rw_w"], p["rw_b"], act="glu")           # 1x1 rewrite + GLU
    return x


def decoder_layer(x, skip, p, has_act):
    # fused (x + skip) -> context conv -> GLU, then transposed conv (+GELU).
    x = conv1d(x, p["rw_w"], p["rw_b"], pad=CONTEXT, act="glu", add=skip)
    if has_act:
        return conv_transpose_ps(x, p["ct_w"], p["ct_b"], act="gelu")
    # final layer: no activation, keep f32 for the model output
    return conv_transpose_ps(x, p["ct_w"], p["ct_b"], act="none",
                             out_dtype=jnp.float32)


@jax.jit
def drumamba_forward(mix, params):
    B, _, T = mix.shape
    # normalize=True
    mono = jnp.mean(mix, axis=1, keepdims=True)
    mean = jnp.mean(mono, axis=-1, keepdims=True)
    std = jnp.std(mono, axis=-1, keepdims=True, ddof=1)      # torch unbiased std
    x = (mix - mean) / (1e-5 + std)

    delta = valid_length(T) - T
    x = jnp.pad(x, ((0, 0), (0, 0), (delta // 2, delta - delta // 2)))
    x = x.astype(ACT_DTYPE)                                  # bf16 activations

    saved = []
    for p in params["enc"]:
        x = encoder_layer(x, p)
        saved.append(x)

    for i, p in enumerate(params["dec"]):
        skip = center_trim(saved.pop(), x.shape[-1])
        x = decoder_layer(x, skip, p, has_act=(i < DEPTH - 1))

    x = x.astype(jnp.float32) * std + mean
    x = center_trim(x, T)
    return x.reshape(B, SOURCES, AUDIO_CH, T)


if __name__ == "__main__":
    key = jax.random.PRNGKey(0)
    pkey, xkey = jax.random.split(key)
    params = init_params(pkey)
    mix = jax.random.normal(xkey, (2, AUDIO_CH, 64), jnp.float32)
    out = drumamba_forward(mix, params)
    out = jax.block_until_ready(out)
    assert out.shape == (2, SOURCES, AUDIO_CH, 64), out.shape
    assert bool(jnp.all(jnp.isfinite(out)))
    print("KERNEL_OK")
</pallas_src>

<mosaic_0001>
module attributes {stable_mosaic.version = 11 : i64} {
  func.func @_compres_kernel(%arg0: i32, %arg1: memref<1x8x18xbf16, #tpu.memory_space<vmem>>, %arg2: memref<3x2x8xbf16, #tpu.memory_space<vmem>>, %arg3: memref<2x1xf32, #tpu.memory_space<vmem>>, %arg4: memref<2x1xf32, #tpu.memory_space<vmem>>, %arg5: memref<2x1xf32, #tpu.memory_space<vmem>>, %arg6: memref<16x2xbf16, #tpu.memory_space<vmem>>, %arg7: memref<16x1xf32, #tpu.memory_space<vmem>>, %arg8: memref<16x1xf32, #tpu.memory_space<vmem>>, %arg9: memref<16x1xf32, #tpu.memory_space<vmem>>, %arg10: memref<8x1xf32, #tpu.memory_space<vmem>>, %arg11: memref<1x8x16xbf16, #tpu.memory_space<vmem>>) attributes {dimension_semantics = [#tpu.dimension_semantics<parallel>], iteration_bounds = array<i64: 2>, scalar_prefetch = 0 : i64, scratch_operands = 0 : i64, tpu.core_type = #tpu.core_type<tc>, window_params = [{transform_indices = @transform_0, window_bounds = array<i64: 1, 8, 18>}, {pipeline_mode = #tpu.pipeline_mode<synchronous>, transform_indices = @transform_1, window_bounds = array<i64: 3, 2, 8>}, {pipeline_mode = #tpu.pipeline_mode<synchronous>, transform_indices = @transform_2, window_bounds = array<i64: 2, 1>}, {pipeline_mode = #tpu.pipeline_mode<synchronous>, transform_indices = @transform_3, window_bounds = array<i64: 2, 1>}, {pipeline_mode = #tpu.pipeline_mode<synchronous>, transform_indices = @transform_4, window_bounds = array<i64: 2, 1>}, {pipeline_mode = #tpu.pipeline_mode<synchronous>, transform_indices = @transform_5, window_bounds = array<i64: 16, 2>}, {pipeline_mode = #tpu.pipeline_mode<synchronous>, transform_indices = @transform_6, window_bounds = array<i64: 16, 1>}, {pipeline_mode = #tpu.pipeline_mode<synchronous>, transform_indices = @transform_7, window_bounds = array<i64: 16, 1>}, {pipeline_mode = #tpu.pipeline_mode<synchronous>, transform_indices = @transform_8, window_bounds = array<i64: 16, 1>}, {pipeline_mode = #tpu.pipeline_mode<synchronous>, transform_indices = @transform_9, window_bounds = array<i64: 8, 1>}, {transform_indices = @transform_10, window_bounds = array<i64: 1, 8, 16>}]} {
    %c0 = arith.constant 0 : index
    %c0_0 = arith.constant 0 : index
    %c0_1 = arith.constant 0 : index
    %0 = vector.load %arg1[%c0, %c0_0, %c0_1] : memref<1x8x18xbf16, #tpu.memory_space<vmem>>, vector<1x8x18xbf16>
    %1 = vector.shape_cast %0 : vector<1x8x18xbf16> to vector<8x18xbf16>
    %cst = arith.constant 0.000000e+00 : f32
    %2 = vector.broadcast %cst : f32 to vector<2x16xf32>
    %c0_2 = arith.constant 0 : index
    %c0_3 = arith.constant 0 : index
    %c0_4 = arith.constant 0 : index
    %3 = vector.load %arg2[%c0_2, %c0_3, %c0_4] : memref<3x2x8xbf16, #tpu.memory_space<vmem>>, vector<1x2x8xbf16>
    %4 = vector.shape_cast %3 : vector<1x2x8xbf16> to vector<2x8xbf16>
    %5 = vector.extract_strided_slice %1 {offsets = [0, 0], sizes = [8, 16], strides = [1, 1]} : vector<8x18xbf16> to vector<8x16xbf16>
    %cst_5 = arith.constant dense<0.000000e+00> : vector<2x16xf32>
    %6 = tpu.matmul %4, %5, %cst_5 {dimension_numbers = #tpu.dot_dimension_numbers<[1], [0], [0], [1], [0, 0, 1, 1], [], []>} : vector<2x8xbf16>, vector<8x16xbf16>, vector<2x16xf32> -> vector<2x16xf32>
    %7 = arith.addf %2, %6 : vector<2x16xf32>
    %c1 = arith.constant 1 : index
    %c0_6 = arith.constant 0 : index
    %c0_7 = arith.constant 0 : index
    %8 = vector.load %arg2[%c1, %c0_6, %c0_7] : memref<3x2x8xbf16, #tpu.memory_space<vmem>>, vector<1x2x8xbf16>
    %9 = vector.shape_cast %8 : vector<1x2x8xbf16> to vector<2x8xbf16>
    %10 = vector.extract_strided_slice %1 {offsets = [0, 1], sizes = [8, 16], strides = [1, 1]} : vector<8x18xbf16> to vector<8x16xbf16>
    %cst_8 = arith.constant dense<0.000000e+00> : vector<2x16xf32>
    %11 = tpu.matmul %9, %10, %cst_8 {dimension_numbers = #tpu.dot_dimension_numbers<[1], [0], [0], [1], [0, 0, 1, 1], [], []>} : vector<2x8xbf16>, vector<8x16xbf16>, vector<2x16xf32> -> vector<2x16xf32>
    %12 = arith.addf %7, %11 : vector<2x16xf32>
    %c2 = arith.constant 2 : index
    %c0_9 = arith.constant 0 : index
    %c0_10 = arith.constant 0 : index
    %13 = vector.load %arg2[%c2, %c0_9, %c0_10] : memref<3x2x8xbf16, #tpu.memory_space<vmem>>, vector<1x2x8xbf16>
    %14 = vector.shape_cast %13 : vector<1x2x8xbf16> to vector<2x8xbf16>
    %15 = vector.extract_strided_slice %1 {offsets = [0, 2], sizes = [8, 16], strides = [1, 1]} : vector<8x18xbf16> to vector<8x16xbf16>
    %cst_11 = arith.constant dense<0.000000e+00> : vector<2x16xf32>
    %16 = tpu.matmul %14, %15, %cst_11 {dimension_numbers = #tpu.dot_dimension_numbers<[1], [0], [0], [1], [0, 0, 1, 1], [], []>} : vector<2x8xbf16>, vector<8x16xbf16>, vector<2x16xf32> -> vector<2x16xf32>
    %17 = arith.addf %12, %16 : vector<2x16xf32>
    %c0_12 = arith.constant 0 : index
    %c0_13 = arith.constant 0 : index
    %18 = vector.load %arg3[%c0_12, %c0_13] : memref<2x1xf32, #tpu.memory_space<vmem>>, vector<2x1xf32>
    %19 = vector.broadcast %18 : vector<2x1xf32> to vector<2x16xf32>
    %20 = arith.addf %17, %19 : vector<2x16xf32>
    %cst_14 = arith.constant dense<0.000000e+00> : vector<2xf32>
    %21 = vector.multi_reduction <add>, %20, %cst_14 [1] : vector<2x16xf32> to vector<2xf32>
    %22 = vector.shape_cast %21 : vector<2xf32> to vector<2x1xf32>
    %cst_15 = arith.constant dense<0.000000e+00> : vector<1xf32>
    %23 = vector.multi_reduction <add>, %22, %cst_15 [0] : vector<2x1xf32> to vector<1xf32>
    %24 = vector.shape_cast %23 : vector<1xf32> to vector<1x1xf32>
    %cst_16 = arith.constant 3.200000e+01 : f32
    %25 = vector.broadcast %cst_16 : f32 to vector<1x1xf32>
    %26 = arith.divf %24, %25 : vector<1x1xf32>
    %27 = vector.broadcast %26 : vector<1x1xf32> to vector<2x16xf32>
    %28 = arith.subf %20, %27 : vector<2x16xf32>
    %29 = arith.mulf %28, %28 : vector<2x16xf32>
    %cst_17 = arith.constant dense<0.000000e+00> : vector<2xf32>
    %30 = vector.multi_reduction <add>, %29, %cst_17 [1] : vector<2x16xf32> to vector<2xf32>
    %31 = vector.shape_cast %30 : vector<2xf32> to vector<2x1xf32>
    %cst_18 = arith.constant dense<0.000000e+00> : vector<1xf32>
    %32 = vector.multi_reduction <add>, %31, %cst_18 [0] : vector<2x1xf32> to vector<1xf32>
    %33 = vector.shape_cast %32 : vector<1xf32> to vector<1x1xf32>
    %cst_19 = arith.constant 3.200000e+01 : f32
    %34 = vector.broadcast %cst_19 : f32 to vector<1x1xf32>
    %35 = arith.divf %33, %34 : vector<1x1xf32>
    %c0_20 = arith.constant 0 : index
    %c0_21 = arith.constant 0 : index
    %36 = vector.load %arg4[%c0_20, %c0_21] : memref<2x1xf32, #tpu.memory_space<vmem>>, vector<2x1xf32>
    %cst_22 = arith.constant 9.99999974E-6 : f32
    %37 = vector.broadcast %cst_22 : f32 to vector<1x1xf32>
    %38 = arith.addf %35, %37 : vector<1x1xf32>
    %39 = math.rsqrt %38 : vector<1x1xf32>
    %40 = vector.broadcast %39 : vector<1x1xf32> to vector<2x1xf32>
    %41 = arith.mulf %36, %40 : vector<2x1xf32>
    %42 = vector.broadcast %41 : vector<2x1xf32> to vector<2x16xf32>
    %43 = arith.mulf %28, %42 : vector<2x16xf32>
    %c0_23 = arith.constant 0 : index
    %c0_24 = arith.constant 0 : index
    %44 = vector.load %arg5[%c0_23, %c0_24] : memref<2x1xf32, #tpu.memory_space<vmem>>, vector<2x1xf32>
    %45 = vector.broadcast %44 : vector<2x1xf32> to vector<2x16xf32>
    %46 = arith.addf %43, %45 : vector<2x16xf32>
    %cst_25 = arith.constant 5.000000e-01 : f32
    %47 = vector.broadcast %cst_25 : f32 to vector<2x16xf32>
    %48 = arith.mulf %47, %46 : vector<2x16xf32>
    %cst_26 = arith.constant 4.471500e-02 : f32
    %49 = vector.broadcast %cst_26 : f32 to vector<2x16xf32>
    %50 = arith.mulf %49, %46 : vector<2x16xf32>
    %51 = arith.mulf %50, %46 : vector<2x16xf32>
    %52 = arith.mulf %51, %46 : vector<2x16xf32>
    %53 = arith.addf %46, %52 : vector<2x16xf32>
    %cst_27 = arith.constant 0.797884583 : f32
    %54 = vector.broadcast %cst_27 : f32 to vector<2x16xf32>
    %55 = arith.mulf %54, %53 : vector<2x16xf32>
    %56 = math.tanh %55 : vector<2x16xf32>
    %cst_28 = arith.constant 1.000000e+00 : f32
    %57 = vector.broadcast %cst_28 : f32 to vector<2x16xf32>
    %58 = arith.addf %57, %56 : vector<2x16xf32>
    %59 = arith.mulf %48, %58 : vector<2x16xf32>
    %c0_29 = arith.constant 0 : index
    %c0_30 = arith.constant 0 : index
    %60 = vector.load %arg6[%c0_29, %c0_30] : memref<16x2xbf16, #tpu.memory_space<vmem>>, vector<16x2xbf16>
    %61 = arith.truncf %59 : vector<2x16xf32> to vector<2x16xbf16>
    %cst_31 = arith.constant dense<0.000000e+00> : vector<16x16xf32>
    %62 = tpu.matmul %60, %61, %cst_31 {dimension_numbers = #tpu.dot_dimension_numbers<[1], [0], [0], [1], [0, 0, 1, 1], [], []>} : vector<16x2xbf16>, vector<2x16xbf16>, vector<16x16xf32> -> vector<16x16xf32>
    %c0_32 = arith.constant 0 : index
    %c0_33 = arith.constant 0 : index
    %63 = vector.load %arg7[%c0_32, %c0_33] : memref<16x1xf32, #tpu.memory_space<vmem>>, vector<16x1xf32>
    %64 = vector.broadcast %63 : vector<16x1xf32> to vector<16x16xf32>
    %65 = arith.addf %62, %64 : vector<16x16xf32>
    %cst_34 = arith.constant dense<0.000000e+00> : vector<16xf32>
    %66 = vector.multi_reduction <add>, %65, %cst_34 [1] : vector<16x16xf32> to vector<16xf32>
    %67 = vector.shape_cast %66 : vector<16xf32> to vector<16x1xf32>
    %cst_35 = arith.constant dense<0.000000e+00> : vector<1xf32>
    %68 = vector.multi_reduction <add>, %67, %cst_35 [0] : vector<16x1xf32> to vector<1xf32>
    %69 = vector.shape_cast %68 : vector<1xf32> to vector<1x1xf32>
    %cst_36 = arith.constant 2.560000e+02 : f32
    %70 = vector.broadcast %cst_36 : f32 to vector<1x1xf32>
    %71 = arith.divf %69, %70 : vector<1x1xf32>
    %72 = vector.broadcast %71 : vector<1x1xf32> to vector<16x16xf32>
    %73 = arith.subf %65, %72 : vector<16x16xf32>
    %74 = arith.mulf %73, %73 : vector<16x16xf32>
    %cst_37 = arith.constant dense<0.000000e+00> : vector<16xf32>
    %75 = vector.multi_reduction <add>, %74, %cst_37 [1] : vector<16x16xf32> to vector<16xf32>
    %76 = vector.shape_cast %75 : vector<16xf32> to vector<16x1xf32>
    %cst_38 = arith.constant dense<0.000000e+00> : vector<1xf32>
    %77 = vector.multi_reduction <add>, %76, %cst_38 [0] : vector<16x1xf32> to vector<1xf32>
    %78 = vector.shape_cast %77 : vector<1xf32> to vector<1x1xf32>
    %cst_39 = arith.constant 2.560000e+02 : f32
    %79 = vector.broadcast %cst_39 : f32 to vector<1x1xf32>
    %80 = arith.divf %78, %79 : vector<1x1xf32>
    %c0_40 = arith.constant 0 : index
    %c0_41 = arith.constant 0 : index
    %81 = vector.load %arg8[%c0_40, %c0_41] : memref<16x1xf32, #tpu.memory_space<vmem>>, vector<16x1xf32>
    %cst_42 = arith.constant 9.99999974E-6 : f32
    %82 = vector.broadcast %cst_42 : f32 to vector<1x1xf32>
    %83 = arith.addf %80, %82 : vector<1x1xf32>
    %84 = math.rsqrt %83 : vector<1x1xf32>
    %85 = vector.broadcast %84 : vector<1x1xf32> to vector<16x1xf32>
    %86 = arith.mulf %81, %85 : vector<16x1xf32>
    %87 = vector.broadcast %86 : vector<16x1xf32> to vector<16x16xf32>
    %88 = arith.mulf %73, %87 : vector<16x16xf32>
    %c0_43 = arith.constant 0 : index
    %c0_44 = arith.constant 0 : index
    %89 = vector.load %arg9[%c0_43, %c0_44] : memref<16x1xf32, #tpu.memory_space<vmem>>, vector<16x1xf32>
    %90 = vector.broadcast %89 : vector<16x1xf32> to vector<16x16xf32>
    %91 = arith.addf %88, %90 : vector<16x16xf32>
    %92 = vector.extract_strided_slice %91 {offsets = [0, 0], sizes = [8, 16], strides = [1, 1]} : vector<16x16xf32> to vector<8x16xf32>
    %93 = vector.extract_strided_slice %91 {offsets = [8, 0], sizes = [8, 16], strides = [1, 1]} : vector<16x16xf32> to vector<8x16xf32>
    %94 = arith.negf %93 : vector<8x16xf32>
    %95 = math.exp %94 : vector<8x16xf32>
    %cst_45 = arith.constant 1.000000e+00 : f32
    %96 = vector.broadcast %cst_45 : f32 to vector<8x16xf32>
    %97 = arith.addf %96, %95 : vector<8x16xf32>
    %98 = arith.divf %96, %97 : vector<8x16xf32>
    %99 = arith.mulf %92, %98 : vector<8x16xf32>
    %100 = vector.extract_strided_slice %1 {offsets = [0, 1], sizes = [8, 16], strides = [1, 1]} : vector<8x18xbf16> to vector<8x16xbf16>
    %101 = arith.extf %100 : vector<8x16xbf16> to vector<8x16xf32>
    %c0_46 = arith.constant 0 : index
    %c0_47 = arith.constant 0 : index
    %102 = vector.load %arg10[%c0_46, %c0_47] : memref<8x1xf32, #tpu.memory_space<vmem>>, vector<8x1xf32>
    %103 = vector.broadcast %102 : vector<8x1xf32> to vector<8x16xf32>
    %104 = arith.mulf %103, %99 : vector<8x16xf32>
    %105 = arith.addf %101, %104 : vector<8x16xf32>
    %106 = arith.truncf %105 : vector<8x16xf32> to vector<8x16xbf16>
    %c0_48 = arith.constant 0 : index
    %c0_49 = arith.constant 0 : index
    %c0_50 = arith.constant 0 : index
    %107 = vector.load %arg11[%c0_48, %c0_49, %c0_50] : memref<1x8x16xbf16, #tpu.memory_space<vmem>>, vector<1x8x16xbf16>
    %108 = vector.shape_cast %107 : vector<1x8x16xbf16> to vector<8x16xbf16>
    %109 = vector.shape_cast %106 : vector<8x16xbf16> to vector<1x8x16xbf16>
    tpu.vector_store %arg11[%c0_48, %c0_49, %c0_50], %109 {strides = array<i32>} : memref<1x8x16xbf16, #tpu.memory_space<vmem>>, vector<1x8x16xbf16>,
    return
  }
  func.func @transform_0(%arg0: i32) -> (i32, i32, i32) {
    %c0_i32 = arith.constant 0 : i32
    %c0_i32_0 = arith.constant 0 : i32
    %c0_i32_1 = arith.constant 0 : i32
    return %arg0, %c0_i32, %c0_i32_0 : i32, i32, i32
  }
  func.func @transform_1(%arg0: i32) -> (i32, i32, i32) {
    %c0_i32 = arith.constant 0 : i32
    %c0_i32_0 = arith.constant 0 : i32
    %c0_i32_1 = arith.constant 0 : i32
    %c0_i32_2 = arith.constant 0 : i32
    return %c0_i32, %c0_i32_0, %c0_i32_1 : i32, i32, i32
  }
  func.func @transform_2(%arg0: i32) -> (i32, i32) {
    %c0_i32 = arith.constant 0 : i32
    %c0_i32_0 = arith.constant 0 : i32
    %c0_i32_1 = arith.constant 0 : i32
    return %c0_i32, %c0_i32_0 : i32, i32
  }
  func.func @transform_3(%arg0: i32) -> (i32, i32) {
    %c0_i32 = arith.constant 0 : i32
    %c0_i32_0 = arith.constant 0 : i32
    %c0_i32_1 = arith.constant 0 : i32
    return %c0_i32, %c0_i32_0 : i32, i32
  }
  func.func @transform_4(%arg0: i32) -> (i32, i32) {
    %c0_i32 = arith.constant 0 : i32
    %c0_i32_0 = arith.constant 0 : i32
    %c0_i32_1 = arith.constant 0 : i32
    return %c0_i32, %c0_i32_0 : i32, i32
  }
  func.func @transform_5(%arg0: i32) -> (i32, i32) {
    %c0_i32 = arith.constant 0 : i32
    %c0_i32_0 = arith.constant 0 : i32
    %c0_i32_1 = arith.constant 0 : i32
    return %c0_i32, %c0_i32_0 : i32, i32
  }
  func.func @transform_6(%arg0: i32) -> (i32, i32) {
    %c0_i32 = arith.constant 0 : i32
    %c0_i32_0 = arith.constant 0 : i32
    %c0_i32_1 = arith.constant 0 : i32
    return %c0_i32, %c0_i32_0 : i32, i32
  }
  func.func @transform_7(%arg0: i32) -> (i32, i32) {
    %c0_i32 = arith.constant 0 : i32
    %c0_i32_0 = arith.constant 0 : i32
    %c0_i32_1 = arith.constant 0 : i32
    return %c0_i32, %c0_i32_0 : i32, i32
  }
  func.func @transform_8(%arg0: i32) -> (i32, i32) {
    %c0_i32 = arith.constant 0 : i32
    %c0_i32_0 = arith.constant 0 : i32
    %c0_i32_1 = arith.constant 0 : i32
    return %c0_i32, %c0_i32_0 : i32, i32
  }
  func.func @transform_9(%arg0: i32) -> (i32, i32) {
    %c0_i32 = arith.constant 0 : i32
    %c0_i32_0 = arith.constant 0 : i32
    %c0_i32_1 = arith.constant 0 : i32
    return %c0_i32, %c0_i32_0 : i32, i32
  }
  func.func @transform_10(%arg0: i32) -> (i32, i32, i32) {
    %c0_i32 = arith.constant 0 : i32
    %c0_i32_0 = arith.constant 0 : i32
    %c0_i32_1 = arith.constant 0 : i32
    return %arg0, %c0_i32, %c0_i32_0 : i32, i32, i32
  }
}

module attributes {stable_mosaic.version = 11 : i64} {
  func.func @_conv_act_kernel(%arg0: i32, %arg1: i32, %arg2: memref<1x8x17xbf16, #tpu.memory_space<vmem>>, %arg3: memref<2x8x8xbf16, #tpu.memory_space<vmem>>, %arg4: memref<8x1xf32, #tpu.memory_space<vmem>>, %arg5: memref<1x8x16xbf16, #tpu.memory_space<vmem>>) attributes {dimension_semantics = [#tpu.dimension_semantics<parallel>, #tpu.dimension_semantics<parallel>], iteration_bounds = array<i64: 2, 1>, scalar_prefetch = 0 : i64, scratch_operands = 0 : i64, tpu.core_type = #tpu.core_type<tc>, window_params = [{transform_indices = @transform_0, window_bounds = array<i64: 1, 8, 17>}, {pipeline_mode = #tpu.pipeline_mode<synchronous>, transform_indices = @transform_1, window_bounds = array<i64: 2, 8, 8>}, {pipeline_mode = #tpu.pipeline_mode<synchronous>, transform_indices = @transform_2, window_bounds = array<i64: 8, 1>}, {transform_indices = @transform_3, window_bounds = array<i64: 1, 8, 16>}]} {
    %c0 = arith.constant 0 : index
    %c0_0 = arith.constant 0 : index
    %c0_1 = arith.constant 0 : index
    %0 = vector.load %arg2[%c0, %c0_0, %c0_1] : memref<1x8x17xbf16, #tpu.memory_space<vmem>>, vector<1x8x17xbf16>
    %1 = vector.shape_cast %0 : vector<1x8x17xbf16> to vector<8x17xbf16>
    %cst = arith.constant 0.000000e+00 : f32
    %2 = vector.broadcast %cst : f32 to vector<8x16xf32>
    %c0_2 = arith.constant 0 : index
    %c0_3 = arith.constant 0 : index
    %c0_4 = arith.constant 0 : index
    %3 = vector.load %arg3[%c0_2, %c0_3, %c0_4] : memref<2x8x8xbf16, #tpu.memory_space<vmem>>, vector<1x8x8xbf16>
    %4 = vector.shape_cast %3 : vector<1x8x8xbf16> to vector<8x8xbf16>
    %5 = vector.extract_strided_slice %1 {offsets = [0, 0], sizes = [8, 16], strides = [1, 1]} : vector<8x17xbf16> to vector<8x16xbf16>
    %cst_5 = arith.constant dense<0.000000e+00> : vector<8x16xf32>
    %6 = tpu.matmul %4, %5, %cst_5 {dimension_numbers = #tpu.dot_dimension_numbers<[1], [0], [0], [1], [0, 0, 1, 1], [], []>} : vector<8x8xbf16>, vector<8x16xbf16>, vector<8x16xf32> -> vector<8x16xf32>
    %7 = arith.addf %2, %6 : vector<8x16xf32>
    %c1 = arith.constant 1 : index
    %c0_6 = arith.constant 0 : index
    %c0_7 = arith.constant 0 : index
    %8 = vector.load %arg3[%c1, %c0_6, %c0_7] : memref<2x8x8xbf16, #tpu.memory_space<vmem>>, vector<1x8x8xbf16>
    %9 = vector.shape_cast %8 : vector<1x8x8xbf16> to vector<8x8xbf16>
    %10 = vector.extract_strided_slice %1 {offsets = [0, 1], sizes = [8, 16], strides = [1, 1]} : vector<8x17xbf16> to vector<8x16xbf16>
    %cst_8 = arith.constant dense<0.000000e+00> : vector<8x16xf32>
    %11 = tpu.matmul %9, %10, %cst_8 {dimension_numbers = #tpu.dot_dimension_numbers<[1], [0], [0], [1], [0, 0, 1, 1], [], []>} : vector<8x8xbf16>, vector<8x16xbf16>, vector<8x16xf32> -> vector<8x16xf32>
    %12 = arith.addf %7, %11 : vector<8x16xf32>
    %c0_9 = arith.constant 0 : index
    %c0_10 = arith.constant 0 : index
    %13 = vector.load %arg4[%c0_9, %c0_10] : memref<8x1xf32, #tpu.memory_space<vmem>>, vector<8x1xf32>
    %14 = vector.broadcast %13 : vector<8x1xf32> to vector<8x16xf32>
    %15 = arith.addf %12, %14 : vector<8x16xf32>
    %cst_11 = arith.constant 5.000000e-01 : f32
    %16 = vector.broadcast %cst_11 : f32 to vector<8x16xf32>
    %17 = arith.mulf %16, %15 : vector<8x16xf32>
    %cst_12 = arith.constant 4.471500e-02 : f32
    %18 = vector.broadcast %cst_12 : f32 to vector<8x16xf32>
    %19 = arith.mulf %18, %15 : vector<8x16xf32>
    %20 = arith.mulf %19, %15 : vector<8x16xf32>
    %21 = arith.mulf %20, %15 : vector<8x16xf32>
    %22 = arith.addf %15, %21 : vector<8x16xf32>
    %cst_13 = arith.constant 0.797884583 : f32
    %23 = vector.broadcast %cst_13 : f32 to vector<8x16xf32>
    %24 = arith.mulf %23, %22 : vector<8x16xf32>
    %25 = math.tanh %24 : vector<8x16xf32>
    %cst_14 = arith.constant 1.000000e+00 : f32
    %26 = vector.broadcast %cst_14 : f32 to vector<8x16xf32>
    %27 = arith.addf %26, %25 : vector<8x16xf32>
    %28 = arith.mulf %17, %27 : vector<8x16xf32>
    %29 = arith.truncf %28 : vector<8x16xf32> to vector<8x16xbf16>
    %c0_15 = arith.constant 0 : index
    %c0_16 = arith.constant 0 : index
    %c0_17 = arith.constant 0 : index
    %30 = vector.load %arg5[%c0_15, %c0_16, %c0_17] : memref<1x8x16xbf16, #tpu.memory_space<vmem>>, vector<1x8x16xbf16>
    %31 = vector.shape_cast %30 : vector<1x8x16xbf16> to vector<8x16xbf16>
    %32 = vector.shape_cast %29 : vector<8x16xbf16> to vector<1x8x16xbf16>
    tpu.vector_store %arg5[%c0_15, %c0_16, %c0_17], %32 {strides = array<i32>} : memref<1x8x16xbf16, #tpu.memory_space<vmem>>, vector<1x8x16xbf16>,
    return
  }
  func.func @transform_0(%arg0: i32, %arg1: i32) -> (i32, i32, i32) {
    %c0_i32 = arith.constant 0 : i32
    %c0_i32_0 = arith.constant 0 : i32
    %c0_i32_1 = arith.constant 0 : i32
    return %arg0, %c0_i32, %c0_i32_0 : i32, i32, i32
  }
  func.func @transform_1(%arg0: i32, %arg1: i32) -> (i32, i32, i32) {
    %c0_i32 = arith.constant 0 : i32
    %c0_i32_0 = arith.constant 0 : i32
    %c0_i32_1 = arith.constant 0 : i32
    %c0_i32_2 = arith.constant 0 : i32
    return %c0_i32, %c0_i32_0, %c0_i32_1 : i32, i32, i32
  }
  func.func @transform_2(%arg0: i32, %arg1: i32) -> (i32, i32) {
    %c0_i32 = arith.constant 0 : i32
    %c0_i32_0 = arith.constant 0 : i32
    %c0_i32_1 = arith.constant 0 : i32
    return %c0_i32, %c0_i32_0 : i32, i32
  }
  func.func @transform_3(%arg0: i32, %arg1: i32) -> (i32, i32, i32) {
    %c0_i32 = arith.constant 0 : i32
    %c0_i32_0 = arith.constant 0 : i32
    return %arg0, %c0_i32, %arg1 : i32, i32, i32
  }
}

module attributes {stable_mosaic.version = 11 : i64} {
  func.func @_compres_kernel(%arg0: i32, %arg1: memref<1x8x20xbf16, #tpu.memory_space<vmem>>, %arg2: memref<3x2x8xbf16, #tpu.memory_space<vmem>>, %arg3: memref<2x1xf32, #tpu.memory_space<vmem>>, %arg4: memref<2x1xf32, #tpu.memory_space<vmem>>, %arg5: memref<2x1xf32, #tpu.memory_space<vmem>>, %arg6: memref<16x2xbf16, #tpu.memory_space<vmem>>, %arg7: memref<16x1xf32, #tpu.memory_space<vmem>>, %arg8: memref<16x1xf32, #tpu.memory_space<vmem>>, %arg9: memref<16x1xf32, #tpu.memory_space<vmem>>, %arg10: memref<8x1xf32, #tpu.memory_space<vmem>>, %arg11: memref<1x8x16xbf16, #tpu.memory_space<vmem>>) attributes {dimension_semantics = [#tpu.dimension_semantics<parallel>], iteration_bounds = array<i64: 2>, scalar_prefetch = 0 : i64, scratch_operands = 0 : i64, tpu.core_type = #tpu.core_type<tc>, window_params = [{transform_indices = @transform_0, window_bounds = array<i64: 1, 8, 20>}, {pipeline_mode = #tpu.pipeline_mode<synchronous>, transform_indices = @transform_1, window_bounds = array<i64: 3, 2, 8>}, {pipeline_mode = #tpu.pipeline_mode<synchronous>, transform_indices = @transform_2, window_bounds = array<i64: 2, 1>}, {pipeline_mode = #tpu.pipeline_mode<synchronous>, transform_indices = @transform_3, window_bounds = array<i64: 2, 1>}, {pipeline_mode = #tpu.pipeline_mode<synchronous>, transform_indices = @transform_4, window_bounds = array<i64: 2, 1>}, {pipeline_mode = #tpu.pipeline_mode<synchronous>, transform_indices = @transform_5, window_bounds = array<i64: 16, 2>}, {pipeline_mode = #tpu.pipeline_mode<synchronous>, transform_indices = @transform_6, window_bounds = array<i64: 16, 1>}, {pipeline_mode = #tpu.pipeline_mode<synchronous>, transform_indices = @transform_7, window_bounds = array<i64: 16, 1>}, {pipeline_mode = #tpu.pipeline_mode<synchronous>, transform_indices = @transform_8, window_bounds = array<i64: 16, 1>}, {pipeline_mode = #tpu.pipeline_mode<synchronous>, transform_indices = @transform_9, window_bounds = array<i64: 8, 1>}, {transform_indices = @transform_10, window_bounds = array<i64: 1, 8, 16>}]} {
    %c0 = arith.constant 0 : index
    %c0_0 = arith.constant 0 : index
    %c0_1 = arith.constant 0 : index
    %0 = vector.load %arg1[%c0, %c0_0, %c0_1] : memref<1x8x20xbf16, #tpu.memory_space<vmem>>, vector<1x8x20xbf16>
    %1 = vector.shape_cast %0 : vector<1x8x20xbf16> to vector<8x20xbf16>
    %cst = arith.constant 0.000000e+00 : f32
    %2 = vector.broadcast %cst : f32 to vector<2x16xf32>
    %c0_2 = arith.constant 0 : index
    %c0_3 = arith.constant 0 : index
    %c0_4 = arith.constant 0 : index
    %3 = vector.load %arg2[%c0_2, %c0_3, %c0_4] : memref<3x2x8xbf16, #tpu.memory_space<vmem>>, vector<1x2x8xbf16>
    %4 = vector.shape_cast %3 : vector<1x2x8xbf16> to vector<2x8xbf16>
    %5 = vector.extract_strided_slice %1 {offsets = [0, 0], sizes = [8, 16], strides = [1, 1]} : vector<8x20xbf16> to vector<8x16xbf16>
    %cst_5 = arith.constant dense<0.000000e+00> : vector<2x16xf32>
    %6 = tpu.matmul %4, %5, %cst_5 {dimension_numbers = #tpu.dot_dimension_numbers<[1], [0], [0], [1], [0, 0, 1, 1], [], []>} : vector<2x8xbf16>, vector<8x16xbf16>, vector<2x16xf32> -> vector<2x16xf32>
    %7 = arith.addf %2, %6 : vector<2x16xf32>
    %c1 = arith.constant 1 : index
    %c0_6 = arith.constant 0 : index
    %c0_7 = arith.constant 0 : index
    %8 = vector.load %arg2[%c1, %c0_6, %c0_7] : memref<3x2x8xbf16, #tpu.memory_space<vmem>>, vector<1x2x8xbf16>
    %9 = vector.shape_cast %8 : vector<1x2x8xbf16> to vector<2x8xbf16>
    %10 = vector.extract_strided_slice %1 {offsets = [0, 2], sizes = [8, 16], strides = [1, 1]} : vector<8x20xbf16> to vector<8x16xbf16>
    %cst_8 = arith.constant dense<0.000000e+00> : vector<2x16xf32>
    %11 = tpu.matmul %9, %10, %cst_8 {dimension_numbers = #tpu.dot_dimension_numbers<[1], [0], [0], [1], [0, 0, 1, 1], [], []>} : vector<2x8xbf16>, vector<8x16xbf16>, vector<2x16xf32> -> vector<2x16xf32>
    %12 = arith.addf %7, %11 : vector<2x16xf32>
    %c2 = arith.constant 2 : index
    %c0_9 = arith.constant 0 : index
    %c0_10 = arith.constant 0 : index
    %13 = vector.load %arg2[%c2, %c0_9, %c0_10] : memref<3x2x8xbf16, #tpu.memory_space<vmem>>, vector<1x2x8xbf16>
    %14 = vector.shape_cast %13 : vector<1x2x8xbf16> to vector<2x8xbf16>
    %15 = vector.extract_strided_slice %1 {offsets = [0, 4], sizes = [8, 16], strides = [1, 1]} : vector<8x20xbf16> to vector<8x16xbf16>
    %cst_11 = arith.constant dense<0.000000e+00> : vector<2x16xf32>
    %16 = tpu.matmul %14, %15, %cst_11 {dimension_numbers = #tpu.dot_dimension_numbers<[1], [0], [0], [1], [0, 0, 1, 1], [], []>} : vector<2x8xbf16>, vector<8x16xbf16>, vector<2x16xf32> -> vector<2x16xf32>
    %17 = arith.addf %12, %16 : vector<2x16xf32>
    %c0_12 = arith.constant 0 : index
    %c0_13 = arith.constant 0 : index
    %18 = vector.load %arg3[%c0_12, %c0_13] : memref<2x1xf32, #tpu.memory_space<vmem>>, vector<2x1xf32>
    %19 = vector.broadcast %18 : vector<2x1xf32> to vector<2x16xf32>
    %20 = arith.addf %17, %19 : vector<2x16xf32>
    %cst_14 = arith.constant dense<0.000000e+00> : vector<2xf32>
    %21 = vector.multi_reduction <add>, %20, %cst_14 [1] : vector<2x16xf32> to vector<2xf32>
    %22 = vector.shape_cast %21 : vector<2xf32> to vector<2x1xf32>
    %cst_15 = arith.constant dense<0.000000e+00> : vector<1xf32>
    %23 = vector.multi_reduction <add>, %22, %cst_15 [0] : vector<2x1xf32> to vector<1xf32>
    %24 = vector.shape_cast %23 : vector<1xf32> to vector<1x1xf32>
    %cst_16 = arith.constant 3.200000e+01 : f32
    %25 = vector.broadcast %cst_16 : f32 to vector<1x1xf32>
    %26 = arith.divf %24, %25 : vector<1x1xf32>
    %27 = vector.broadcast %26 : vector<1x1xf32> to vector<2x16xf32>
    %28 = arith.subf %20, %27 : vector<2x16xf32>
    %29 = arith.mulf %28, %28 : vector<2x16xf32>
    %cst_17 = arith.constant dense<0.000000e+00> : vector<2xf32>
    %30 = vector.multi_reduction <add>, %29, %cst_17 [1] : vector<2x16xf32> to vector<2xf32>
    %31 = vector.shape_cast %30 : vector<2xf32> to vector<2x1xf32>
    %cst_18 = arith.constant dense<0.000000e+00> : vector<1xf32>
    %32 = vector.multi_reduction <add>, %31, %cst_18 [0] : vector<2x1xf32> to vector<1xf32>
    %33 = vector.shape_cast %32 : vector<1xf32> to vector<1x1xf32>
    %cst_19 = arith.constant 3.200000e+01 : f32
    %34 = vector.broadcast %cst_19 : f32 to vector<1x1xf32>
    %35 = arith.divf %33, %34 : vector<1x1xf32>
    %c0_20 = arith.constant 0 : index
    %c0_21 = arith.constant 0 : index
    %36 = vector.load %arg4[%c0_20, %c0_21] : memref<2x1xf32, #tpu.memory_space<vmem>>, vector<2x1xf32>
    %cst_22 = arith.constant 9.99999974E-6 : f32
    %37 = vector.broadcast %cst_22 : f32 to vector<1x1xf32>
    %38 = arith.addf %35, %37 : vector<1x1xf32>
    %39 = math.rsqrt %38 : vector<1x1xf32>
    %40 = vector.broadcast %39 : vector<1x1xf32> to vector<2x1xf32>
    %41 = arith.mulf %36, %40 : vector<2x1xf32>
    %42 = vector.broadcast %41 : vector<2x1xf32> to vector<2x16xf32>
    %43 = arith.mulf %28, %42 : vector<2x16xf32>
    %c0_23 = arith.constant 0 : index
    %c0_24 = arith.constant 0 : index
    %44 = vector.load %arg5[%c0_23, %c0_24] : memref<2x1xf32, #tpu.memory_space<vmem>>, vector<2x1xf32>
    %45 = vector.broadcast %44 : vector<2x1xf32> to vector<2x16xf32>
    %46 = arith.addf %43, %45 : vector<2x16xf32>
    %cst_25 = arith.constant 5.000000e-01 : f32
    %47 = vector.broadcast %cst_25 : f32 to vector<2x16xf32>
    %48 = arith.mulf %47, %46 : vector<2x16xf32>
    %cst_26 = arith.constant 4.471500e-02 : f32
    %49 = vector.broadcast %cst_26 : f32 to vector<2x16xf32>
    %50 = arith.mulf %49, %46 : vector<2x16xf32>
    %51 = arith.mulf %50, %46 : vector<2x16xf32>
    %52 = arith.mulf %51, %46 : vector<2x16xf32>
    %53 = arith.addf %46, %52 : vector<2x16xf32>
    %cst_27 = arith.constant 0.797884583 : f32
    %54 = vector.broadcast %cst_27 : f32 to vector<2x16xf32>
    %55 = arith.mulf %54, %53 : vector<2x16xf32>
    %56 = math.tanh %55 : vector<2x16xf32>
    %cst_28 = arith.constant 1.000000e+00 : f32
    %57 = vector.broadcast %cst_28 : f32 to vector<2x16xf32>
    %58 = arith.addf %57, %56 : vector<2x16xf32>
    %59 = arith.mulf %48, %58 : vector<2x16xf32>
    %c0_29 = arith.constant 0 : index
    %c0_30 = arith.constant 0 : index
    %60 = vector.load %arg6[%c0_29, %c0_30] : memref<16x2xbf16, #tpu.memory_space<vmem>>, vector<16x2xbf16>
    %61 = arith.truncf %59 : vector<2x16xf32> to vector<2x16xbf16>
    %cst_31 = arith.constant dense<0.000000e+00> : vector<16x16xf32>
    %62 = tpu.matmul %60, %61, %cst_31 {dimension_numbers = #tpu.dot_dimension_numbers<[1], [0], [0], [1], [0, 0, 1, 1], [], []>} : vector<16x2xbf16>, vector<2x16xbf16>, vector<16x16xf32> -> vector<16x16xf32>
    %c0_32 = arith.constant 0 : index
    %c0_33 = arith.constant 0 : index
    %63 = vector.load %arg7[%c0_32, %c0_33] : memref<16x1xf32, #tpu.memory_space<vmem>>, vector<16x1xf32>
    %64 = vector.broadcast %63 : vector<16x1xf32> to vector<16x16xf32>
    %65 = arith.addf %62, %64 : vector<16x16xf32>
    %cst_34 = arith.constant dense<0.000000e+00> : vector<16xf32>
    %66 = vector.multi_reduction <add>, %65, %cst_34 [1] : vector<16x16xf32> to vector<16xf32>
    %67 = vector.shape_cast %66 : vector<16xf32> to vector<16x1xf32>
    %cst_35 = arith.constant dense<0.000000e+00> : vector<1xf32>
    %68 = vector.multi_reduction <add>, %67, %cst_35 [0] : vector<16x1xf32> to vector<1xf32>
    %69 = vector.shape_cast %68 : vector<1xf32> to vector<1x1xf32>
    %cst_36 = arith.constant 2.560000e+02 : f32
    %70 = vector.broadcast %cst_36 : f32 to vector<1x1xf32>
    %71 = arith.divf %69, %70 : vector<1x1xf32>
    %72 = vector.broadcast %71 : vector<1x1xf32> to vector<16x16xf32>
    %73 = arith.subf %65, %72 : vector<16x16xf32>
    %74 = arith.mulf %73, %73 : vector<16x16xf32>
    %cst_37 = arith.constant dense<0.000000e+00> : vector<16xf32>
    %75 = vector.multi_reduction <add>, %74, %cst_37 [1] : vector<16x16xf32> to vector<16xf32>
    %76 = vector.shape_cast %75 : vector<16xf32> to vector<16x1xf32>
    %cst_38 = arith.constant dense<0.000000e+00> : vector<1xf32>
    %77 = vector.multi_reduction <add>, %76, %cst_38 [0] : vector<16x1xf32> to vector<1xf32>
    %78 = vector.shape_cast %77 : vector<1xf32> to vector<1x1xf32>
    %cst_39 = arith.constant 2.560000e+02 : f32
    %79 = vector.broadcast %cst_39 : f32 to vector<1x1xf32>
    %80 = arith.divf %78, %79 : vector<1x1xf32>
    %c0_40 = arith.constant 0 : index
    %c0_41 = arith.constant 0 : index
    %81 = vector.load %arg8[%c0_40, %c0_41] : memref<16x1xf32, #tpu.memory_space<vmem>>, vector<16x1xf32>
    %cst_42 = arith.constant 9.99999974E-6 : f32
    %82 = vector.broadcast %cst_42 : f32 to vector<1x1xf32>
    %83 = arith.addf %80, %82 : vector<1x1xf32>
    %84 = math.rsqrt %83 : vector<1x1xf32>
    %85 = vector.broadcast %84 : vector<1x1xf32> to vector<16x1xf32>
    %86 = arith.mulf %81, %85 : vector<16x1xf32>
    %87 = vector.broadcast %86 : vector<16x1xf32> to vector<16x16xf32>
    %88 = arith.mulf %73, %87 : vector<16x16xf32>
    %c0_43 = arith.constant 0 : index
    %c0_44 = arith.constant 0 : index
    %89 = vector.load %arg9[%c0_43, %c0_44] : memref<16x1xf32, #tpu.memory_space<vmem>>, vector<16x1xf32>
    %90 = vector.broadcast %89 : vector<16x1xf32> to vector<16x16xf32>
    %91 = arith.addf %88, %90 : vector<16x16xf32>
    %92 = vector.extract_strided_slice %91 {offsets = [0, 0], sizes = [8, 16], strides = [1, 1]} : vector<16x16xf32> to vector<8x16xf32>
    %93 = vector.extract_strided_slice %91 {offsets = [8, 0], sizes = [8, 16], strides = [1, 1]} : vector<16x16xf32> to vector<8x16xf32>
    %94 = arith.negf %93 : vector<8x16xf32>
    %95 = math.exp %94 : vector<8x16xf32>
    %cst_45 = arith.constant 1.000000e+00 : f32
    %96 = vector.broadcast %cst_45 : f32 to vector<8x16xf32>
    %97 = arith.addf %96, %95 : vector<8x16xf32>
    %98 = arith.divf %96, %97 : vector<8x16xf32>
    %99 = arith.mulf %92, %98 : vector<8x16xf32>
    %100 = vector.extract_strided_slice %1 {offsets = [0, 2], sizes = [8, 16], strides = [1, 1]} : vector<8x20xbf16> to vector<8x16xbf16>
    %101 = arith.extf %100 : vector<8x16xbf16> to vector<8x16xf32>
    %c0_46 = arith.constant 0 : index
    %c0_47 = arith.constant 0 : index
    %102 = vector.load %arg10[%c0_46, %c0_47] : memref<8x1xf32, #tpu.memory_space<vmem>>, vector<8x1xf32>
    %103 = vector.broadcast %102 : vector<8x1xf32> to vector<8x16xf32>
    %104 = arith.mulf %103, %99 : vector<8x16xf32>
    %105 = arith.addf %101, %104 : vector<8x16xf32>
    %106 = arith.truncf %105 : vector<8x16xf32> to vector<8x16xbf16>
    %c0_48 = arith.constant 0 : index
    %c0_49 = arith.constant 0 : index
    %c0_50 = arith.constant 0 : index
    %107 = vector.load %arg11[%c0_48, %c0_49, %c0_50] : memref<1x8x16xbf16, #tpu.memory_space<vmem>>, vector<1x8x16xbf16>
    %108 = vector.shape_cast %107 : vector<1x8x16xbf16> to vector<8x16xbf16>
    %109 = vector.shape_cast %106 : vector<8x16xbf16> to vector<1x8x16xbf16>
    tpu.vector_store %arg11[%c0_48, %c0_49, %c0_50], %109 {strides = array<i32>} : memref<1x8x16xbf16, #tpu.memory_space<vmem>>, vector<1x8x16xbf16>,
    return
  }
  func.func @transform_0(%arg0: i32) -> (i32, i32, i32) {
    %c0_i32 = arith.constant 0 : i32
    %c0_i32_0 = arith.constant 0 : i32
    %c0_i32_1 = arith.constant 0 : i32
    return %arg0, %c0_i32, %c0_i32_0 : i32, i32, i32
  }
  func.func @transform_1(%arg0: i32) -> (i32, i32, i32) {
    %c0_i32 = arith.constant 0 : i32
    %c0_i32_0 = arith.constant 0 : i32
    %c0_i32_1 = arith.constant 0 : i32
    %c0_i32_2 = arith.constant 0 : i32
    return %c0_i32, %c0_i32_0, %c0_i32_1 : i32, i32, i32
  }
  func.func @transform_2(%arg0: i32) -> (i32, i32) {
    %c0_i32 = arith.constant 0 : i32
    %c0_i32_0 = arith.constant 0 : i32
    %c0_i32_1 = arith.constant 0 : i32
    return %c0_i32, %c0_i32_0 : i32, i32
  }
  func.func @transform_3(%arg0: i32) -> (i32, i32) {
    %c0_i32 = arith.constant 0 : i32
    %c0_i32_0 = arith.constant 0 : i32
    %c0_i32_1 = arith.constant 0 : i32
    return %c0_i32, %c0_i32_0 : i32, i32
  }
  func.func @transform_4(%arg0: i32) -> (i32, i32) {
    %c0_i32 = arith.constant 0 : i32
    %c0_i32_0 = arith.constant 0 : i32
    %c0_i32_1 = arith.constant 0 : i32
    return %c0_i32, %c0_i32_0 : i32, i32
  }
  func.func @transform_5(%arg0: i32) -> (i32, i32) {
    %c0_i32 = arith.constant 0 : i32
    %c0_i32_0 = arith.constant 0 : i32
    %c0_i32_1 = arith.constant 0 : i32
    return %c0_i32, %c0_i32_0 : i32, i32
  }
  func.func @transform_6(%arg0: i32) -> (i32, i32) {
    %c0_i32 = arith.constant 0 : i32
    %c0_i32_0 = arith.constant 0 : i32
    %c0_i32_1 = arith.constant 0 : i32
    return %c0_i32, %c0_i32_0 : i32, i32
  }
  func.func @transform_7(%arg0: i32) -> (i32, i32) {
    %c0_i32 = arith.constant 0 : i32
    %c0_i32_0 = arith.constant 0 : i32
    %c0_i32_1 = arith.constant 0 : i32
    return %c0_i32, %c0_i32_0 : i32, i32
  }
  func.func @transform_8(%arg0: i32) -> (i32, i32) {
    %c0_i32 = arith.constant 0 : i32
    %c0_i32_0 = arith.constant 0 : i32
    %c0_i32_1 = arith.constant 0 : i32
    return %c0_i32, %c0_i32_0 : i32, i32
  }
  func.func @transform_9(%arg0: i32) -> (i32, i32) {
    %c0_i32 = arith.constant 0 : i32
    %c0_i32_0 = arith.constant 0 : i32
    %c0_i32_1 = arith.constant 0 : i32
    return %c0_i32, %c0_i32_0 : i32, i32
  }
  func.func @transform_10(%arg0: i32) -> (i32, i32, i32) {
    %c0_i32 = arith.constant 0 : i32
    %c0_i32_0 = arith.constant 0 : i32
    %c0_i32_1 = arith.constant 0 : i32
    return %arg0, %c0_i32, %c0_i32_0 : i32, i32, i32
  }
}

module attributes {stable_mosaic.version = 11 : i64} {
  func.func @_conv_act_kernel(%arg0: i32, %arg1: i32, %arg2: memref<1x8x16xbf16, #tpu.memory_space<vmem>>, %arg3: memref<1x16x8xbf16, #tpu.memory_space<vmem>>, %arg4: memref<16x1xf32, #tpu.memory_space<vmem>>, %arg5: memref<1x8x16xbf16, #tpu.memory_space<vmem>>) attributes {dimension_semantics = [#tpu.dimension_semantics<parallel>, #tpu.dimension_semantics<parallel>], iteration_bounds = array<i64: 2, 1>, scalar_prefetch = 0 : i64, scratch_operands = 0 : i64, tpu.core_type = #tpu.core_type<tc>, window_params = [{transform_indices = @transform_0, window_bounds = array<i64: 1, 8, 16>}, {pipeline_mode = #tpu.pipeline_mode<synchronous>, transform_indices = @transform_1, window_bounds = array<i64: 1, 16, 8>}, {pipeline_mode = #tpu.pipeline_mode<synchronous>, transform_indices = @transform_2, window_bounds = array<i64: 16, 1>}, {transform_indices = @transform_3, window_bounds = array<i64: 1, 8, 16>}]} {
    %c0 = arith.constant 0 : index
    %c0_0 = arith.constant 0 : index
    %c0_1 = arith.constant 0 : index
    %0 = vector.load %arg2[%c0, %c0_0, %c0_1] : memref<1x8x16xbf16, #tpu.memory_space<vmem>>, vector<1x8x16xbf16>
    %1 = vector.shape_cast %0 : vector<1x8x16xbf16> to vector<8x16xbf16>
    %cst = arith.constant 0.000000e+00 : f32
    %2 = vector.broadcast %cst : f32 to vector<16x16xf32>
    %c0_2 = arith.constant 0 : index
    %c0_3 = arith.constant 0 : index
    %c0_4 = arith.constant 0 : index
    %3 = vector.load %arg3[%c0_2, %c0_3, %c0_4] : memref<1x16x8xbf16, #tpu.memory_space<vmem>>, vector<1x16x8xbf16>
    %4 = vector.shape_cast %3 : vector<1x16x8xbf16> to vector<16x8xbf16>
    %cst_5 = arith.constant dense<0.000000e+00> : vector<16x16xf32>
    %5 = tpu.matmul %4, %1, %cst_5 {dimension_numbers = #tpu.dot_dimension_numbers<[1], [0], [0], [1], [0, 0, 1, 1], [], []>} : vector<16x8xbf16>, vector<8x16xbf16>, vector<16x16xf32> -> vector<16x16xf32>
    %6 = arith.addf %2, %5 : vector<16x16xf32>
    %c0_6 = arith.constant 0 : index
    %c0_7 = arith.constant 0 : index
    %7 = vector.load %arg4[%c0_6, %c0_7] : memref<16x1xf32, #tpu.memory_space<vmem>>, vector<16x1xf32>
    %8 = vector.broadcast %7 : vector<16x1xf32> to vector<16x16xf32>
    %9 = arith.addf %6, %8 : vector<16x16xf32>
    %10 = vector.extract_strided_slice %9 {offsets = [0, 0], sizes = [8, 16], strides = [1, 1]} : vector<16x16xf32> to vector<8x16xf32>
    %11 = vector.extract_strided_slice %9 {offsets = [8, 0], sizes = [8, 16], strides = [1, 1]} : vector<16x16xf32> to vector<8x16xf32>
    %12 = arith.negf %11 : vector<8x16xf32>
    %13 = math.exp %12 : vector<8x16xf32>
    %cst_8 = arith.constant 1.000000e+00 : f32
    %14 = vector.broadcast %cst_8 : f32 to vector<8x16xf32>
    %15 = arith.addf %14, %13 : vector<8x16xf32>
    %16 = arith.divf %14, %15 : vector<8x16xf32>
    %17 = arith.mulf %10, %16 : vector<8x16xf32>
    %18 = arith.truncf %17 : vector<8x16xf32> to vector<8x16xbf16>
    %c0_9 = arith.constant 0 : index
    %c0_10 = arith.constant 0 : index
    %c0_11 = arith.constant 0 : index
    %19 = vector.load %arg5[%c0_9, %c0_10, %c0_11] : memref<1x8x16xbf16, #tpu.memory_space<vmem>>, vector<1x8x16xbf16>
    %20 = vector.shape_cast %19 : vector<1x8x16xbf16> to vector<8x16xbf16>
    %21 = vector.shape_cast %18 : vector<8x16xbf16> to vector<1x8x16xbf16>
    tpu.vector_store %arg5[%c0_9, %c0_10, %c0_11], %21 {strides = array<i32>} : memref<1x8x16xbf16, #tpu.memory_space<vmem>>, vector<1x8x16xbf16>,
    return
  }
  func.func @transform_0(%arg0: i32, %arg1: i32) -> (i32, i32, i32) {
    %c0_i32 = arith.constant 0 : i32
    %c0_i32_0 = arith.constant 0 : i32
    %c0_i32_1 = arith.constant 0 : i32
    return %arg0, %c0_i32, %c0_i32_0 : i32, i32, i32
  }
  func.func @transform_1(%arg0: i32, %arg1: i32) -> (i32, i32, i32) {
    %c0_i32 = arith.constant 0 : i32
    %c0_i32_0 = arith.constant 0 : i32
    %c0_i32_1 = arith.constant 0 : i32
    %c0_i32_2 = arith.constant 0 : i32
    return %c0_i32, %c0_i32_0, %c0_i32_1 : i32, i32, i32
  }
  func.func @transform_2(%arg0: i32, %arg1: i32) -> (i32, i32) {
    %c0_i32 = arith.constant 0 : i32
    %c0_i32_0 = arith.constant 0 : i32
    %c0_i32_1 = arith.constant 0 : i32
    return %c0_i32, %c0_i32_0 : i32, i32
  }
  func.func @transform_3(%arg0: i32, %arg1: i32) -> (i32, i32, i32) {
    %c0_i32 = arith.constant 0 : i32
    %c0_i32_0 = arith.constant 0 : i32
    return %arg0, %c0_i32, %arg1 : i32, i32, i32
  }
}

module attributes {stable_mosaic.version = 11 : i64} {
  func.func @_conv_act_kernel(%arg0: i32, %arg1: i32, %arg2: memref<1x32x4xbf16, #tpu.memory_space<vmem>>, %arg3: memref<2x16x32xbf16, #tpu.memory_space<vmem>>, %arg4: memref<16x1xf32, #tpu.memory_space<vmem>>, %arg5: memref<1x16x3xbf16, #tpu.memory_space<vmem>>) attributes {dimension_semantics = [#tpu.dimension_semantics<parallel>, #tpu.dimension_semantics<parallel>], iteration_bounds = array<i64: 2, 1>, scalar_prefetch = 0 : i64, scratch_operands = 0 : i64, tpu.core_type = #tpu.core_type<tc>, window_params = [{transform_indices = @transform_0, window_bounds = array<i64: 1, 32, 4>}, {pipeline_mode = #tpu.pipeline_mode<synchronous>, transform_indices = @transform_1, window_bounds = array<i64: 2, 16, 32>}, {pipeline_mode = #tpu.pipeline_mode<synchronous>, transform_indices = @transform_2, window_bounds = array<i64: 16, 1>}, {transform_indices = @transform_3, window_bounds = array<i64: 1, 16, 3>}]} {
    %c0 = arith.constant 0 : index
    %c0_0 = arith.constant 0 : index
    %c0_1 = arith.constant 0 : index
    %0 = vector.load %arg2[%c0, %c0_0, %c0_1] : memref<1x32x4xbf16, #tpu.memory_space<vmem>>, vector<1x32x4xbf16>
    %1 = vector.shape_cast %0 : vector<1x32x4xbf16> to vector<32x4xbf16>
    %cst = arith.constant 0.000000e+00 : f32
    %2 = vector.broadcast %cst : f32 to vector<16x3xf32>
    %c0_2 = arith.constant 0 : index
    %c0_3 = arith.constant 0 : index
    %c0_4 = arith.constant 0 : index
    %3 = vector.load %arg3[%c0_2, %c0_3, %c0_4] : memref<2x16x32xbf16, #tpu.memory_space<vmem>>, vector<1x16x32xbf16>
    %4 = vector.shape_cast %3 : vector<1x16x32xbf16> to vector<16x32xbf16>
    %5 = vector.extract_strided_slice %1 {offsets = [0, 0], sizes = [32, 3], strides = [1, 1]} : vector<32x4xbf16> to vector<32x3xbf16>
    %cst_5 = arith.constant dense<0.000000e+00> : vector<16x3xf32>
    %6 = tpu.matmul %4, %5, %cst_5 {dimension_numbers = #tpu.dot_dimension_numbers<[1], [0], [0], [1], [0, 0, 1, 1], [], []>} : vector<16x32xbf16>, vector<32x3xbf16>, vector<16x3xf32> -> vector<16x3xf32>
    %7 = arith.addf %2, %6 : vector<16x3xf32>
    %c1 = arith.constant 1 : index
    %c0_6 = arith.constant 0 : index
    %c0_7 = arith.constant 0 : index
    %8 = vector.load %arg3[%c1, %c0_6, %c0_7] : memref<2x16x32xbf16, #tpu.memory_space<vmem>>, vector<1x16x32xbf16>
    %9 = vector.shape_cast %8 : vector<1x16x32xbf16> to vector<16x32xbf16>
    %10 = vector.extract_strided_slice %1 {offsets = [0, 1], sizes = [32, 3], strides = [1, 1]} : vector<32x4xbf16> to vector<32x3xbf16>
    %cst_8 = arith.constant dense<0.000000e+00> : vector<16x3xf32>
    %11 = tpu.matmul %9, %10, %cst_8 {dimension_numbers = #tpu.dot_dimension_numbers<[1], [0], [0], [1], [0, 0, 1, 1], [], []>} : vector<16x32xbf16>, vector<32x3xbf16>, vector<16x3xf32> -> vector<16x3xf32>
    %12 = arith.addf %7, %11 : vector<16x3xf32>
    %c0_9 = arith.constant 0 : index
    %c0_10 = arith.constant 0 : index
    %13 = vector.load %arg4[%c0_9, %c0_10] : memref<16x1xf32, #tpu.memory_space<vmem>>, vector<16x1xf32>
    %14 = vector.broadcast %13 : vector<16x1xf32> to vector<16x3xf32>
    %15 = arith.addf %12, %14 : vector<16x3xf32>
    %cst_11 = arith.constant 5.000000e-01 : f32
    %16 = vector.broadcast %cst_11 : f32 to vector<16x3xf32>
    %17 = arith.mulf %16, %15 : vector<16x3xf32>
    %cst_12 = arith.constant 4.471500e-02 : f32
    %18 = vector.broadcast %cst_12 : f32 to vector<16x3xf32>
    %19 = arith.mulf %18, %15 : vector<16x3xf32>
    %20 = arith.mulf %19, %15 : vector<16x3xf32>
    %21 = arith.mulf %20, %15 : vector<16x3xf32>
    %22 = arith.addf %15, %21 : vector<16x3xf32>
    %cst_13 = arith.constant 0.797884583 : f32
    %23 = vector.broadcast %cst_13 : f32 to vector<16x3xf32>
    %24 = arith.mulf %23, %22 : vector<16x3xf32>
    %25 = math.tanh %24 : vector<16x3xf32>
    %cst_14 = arith.constant 1.000000e+00 : f32
    %26 = vector.broadcast %cst_14 : f32 to vector<16x3xf32>
    %27 = arith.addf %26, %25 : vector<16x3xf32>
    %28 = arith.mulf %17, %27 : vector<16x3xf32>
    %29 = arith.truncf %28 : vector<16x3xf32> to vector<16x3xbf16>
    %c0_15 = arith.constant 0 : index
    %c0_16 = arith.constant 0 : index
    %c0_17 = arith.constant 0 : index
    %30 = vector.load %arg5[%c0_15, %c0_16, %c0_17] : memref<1x16x3xbf16, #tpu.memory_space<vmem>>, vector<1x16x3xbf16>
    %31 = vector.shape_cast %30 : vector<1x16x3xbf16> to vector<16x3xbf16>
    %32 = vector.shape_cast %29 : vector<16x3xbf16> to vector<1x16x3xbf16>
    tpu.vector_store %arg5[%c0_15, %c0_16, %c0_17], %32 {strides = array<i32>} : memref<1x16x3xbf16, #tpu.memory_space<vmem>>, vector<1x16x3xbf16>,
    return
  }
  func.func @transform_0(%arg0: i32, %arg1: i32) -> (i32, i32, i32) {
    %c0_i32 = arith.constant 0 : i32
    %c0_i32_0 = arith.constant 0 : i32
    %c0_i32_1 = arith.constant 0 : i32
    return %arg0, %c0_i32, %c0_i32_0 : i32, i32, i32
  }
  func.func @transform_1(%arg0: i32, %arg1: i32) -> (i32, i32, i32) {
    %c0_i32 = arith.constant 0 : i32
    %c0_i32_0 = arith.constant 0 : i32
    %c0_i32_1 = arith.constant 0 : i32
    %c0_i32_2 = arith.constant 0 : i32
    return %c0_i32, %c0_i32_0, %c0_i32_1 : i32, i32, i32
  }
  func.func @transform_2(%arg0: i32, %arg1: i32) -> (i32, i32) {
    %c0_i32 = arith.constant 0 : i32
    %c0_i32_0 = arith.constant 0 : i32
    %c0_i32_1 = arith.constant 0 : i32
    return %c0_i32, %c0_i32_0 : i32, i32
  }
  func.func @transform_3(%arg0: i32, %arg1: i32) -> (i32, i32, i32) {
    %c0_i32 = arith.constant 0 : i32
    %c0_i32_0 = arith.constant 0 : i32
    return %arg0, %c0_i32, %arg1 : i32, i32, i32
  }
}

module attributes {stable_mosaic.version = 11 : i64} {
  func.func @_compres_kernel(%arg0: i32, %arg1: memref<1x16x5xbf16, #tpu.memory_space<vmem>>, %arg2: memref<3x4x16xbf16, #tpu.memory_space<vmem>>, %arg3: memref<4x1xf32, #tpu.memory_space<vmem>>, %arg4: memref<4x1xf32, #tpu.memory_space<vmem>>, %arg5: memref<4x1xf32, #tpu.memory_space<vmem>>, %arg6: memref<32x4xbf16, #tpu.memory_space<vmem>>, %arg7: memref<32x1xf32, #tpu.memory_space<vmem>>, %arg8: memref<32x1xf32, #tpu.memory_space<vmem>>, %arg9: memref<32x1xf32, #tpu.memory_space<vmem>>, %arg10: memref<16x1xf32, #tpu.memory_space<vmem>>, %arg11: memref<1x16x3xbf16, #tpu.memory_space<vmem>>) attributes {dimension_semantics = [#tpu.dimension_semantics<parallel>], iteration_bounds = array<i64: 2>, scalar_prefetch = 0 : i64, scratch_operands = 0 : i64, tpu.core_type = #tpu.core_type<tc>, window_params = [{transform_indices = @transform_0, window_bounds = array<i64: 1, 16, 5>}, {pipeline_mode = #tpu.pipeline_mode<synchronous>, transform_indices = @transform_1, window_bounds = array<i64: 3, 4, 16>}, {pipeline_mode = #tpu.pipeline_mode<synchronous>, transform_indices = @transform_2, window_bounds = array<i64: 4, 1>}, {pipeline_mode = #tpu.pipeline_mode<synchronous>, transform_indices = @transform_3, window_bounds = array<i64: 4, 1>}, {pipeline_mode = #tpu.pipeline_mode<synchronous>, transform_indices = @transform_4, window_bounds = array<i64: 4, 1>}, {pipeline_mode = #tpu.pipeline_mode<synchronous>, transform_indices = @transform_5, window_bounds = array<i64: 32, 4>}, {pipeline_mode = #tpu.pipeline_mode<synchronous>, transform_indices = @transform_6, window_bounds = array<i64: 32, 1>}, {pipeline_mode = #tpu.pipeline_mode<synchronous>, transform_indices = @transform_7, window_bounds = array<i64: 32, 1>}, {pipeline_mode = #tpu.pipeline_mode<synchronous>, transform_indices = @transform_8, window_bounds = array<i64: 32, 1>}, {pipeline_mode = #tpu.pipeline_mode<synchronous>, transform_indices = @transform_9, window_bounds = array<i64: 16, 1>}, {transform_indices = @transform_10, window_bounds = array<i64: 1, 16, 3>}]} {
    %c0 = arith.constant 0 : index
    %c0_0 = arith.constant 0 : index
    %c0_1 = arith.constant 0 : index
    %0 = vector.load %arg1[%c0, %c0_0, %c0_1] : memref<1x16x5xbf16, #tpu.memory_space<vmem>>, vector<1x16x5xbf16>
    %1 = vector.shape_cast %0 : vector<1x16x5xbf16> to vector<16x5xbf16>
    %cst = arith.constant 0.000000e+00 : f32
    %2 = vector.broadcast %cst : f32 to vector<4x3xf32>
    %c0_2 = arith.constant 0 : index
    %c0_3 = arith.constant 0 : index
    %c0_4 = arith.constant 0 : index
    %3 = vector.load %arg2[%c0_2, %c0_3, %c0_4] : memref<3x4x16xbf16, #tpu.memory_space<vmem>>, vector<1x4x16xbf16>
    %4 = vector.shape_cast %3 : vector<1x4x16xbf16> to vector<4x16xbf16>
    %5 = vector.extract_strided_slice %1 {offsets = [0, 0], sizes = [16, 3], strides = [1, 1]} : vector<16x5xbf16> to vector<16x3xbf16>
    %cst_5 = arith.constant dense<0.000000e+00> : vector<4x3xf32>
    %6 = tpu.matmul %4, %5, %cst_5 {dimension_numbers = #tpu.dot_dimension_numbers<[1], [0], [0], [1], [0, 0, 1, 1], [], []>} : vector<4x16xbf16>, vector<16x3xbf16>, vector<4x3xf32> -> vector<4x3xf32>
    %7 = arith.addf %2, %6 : vector<4x3xf32>
    %c1 = arith.constant 1 : index
    %c0_6 = arith.constant 0 : index
    %c0_7 = arith.constant 0 : index
    %8 = vector.load %arg2[%c1, %c0_6, %c0_7] : memref<3x4x16xbf16, #tpu.memory_space<vmem>>, vector<1x4x16xbf16>
    %9 = vector.shape_cast %8 : vector<1x4x16xbf16> to vector<4x16xbf16>
    %10 = vector.extract_strided_slice %1 {offsets = [0, 1], sizes = [16, 3], strides = [1, 1]} : vector<16x5xbf16> to vector<16x3xbf16>
    %cst_8 = arith.constant dense<0.000000e+00> : vector<4x3xf32>
    %11 = tpu.matmul %9, %10, %cst_8 {dimension_numbers = #tpu.dot_dimension_numbers<[1], [0], [0], [1], [0, 0, 1, 1], [], []>} : vector<4x16xbf16>, vector<16x3xbf16>, vector<4x3xf32> -> vector<4x3xf32>
    %12 = arith.addf %7, %11 : vector<4x3xf32>
    %c2 = arith.constant 2 : index
    %c0_9 = arith.constant 0 : index
    %c0_10 = arith.constant 0 : index
    %13 = vector.load %arg2[%c2, %c0_9, %c0_10] : memref<3x4x16xbf16, #tpu.memory_space<vmem>>, vector<1x4x16xbf16>
    %14 = vector.shape_cast %13 : vector<1x4x16xbf16> to vector<4x16xbf16>
    %15 = vector.extract_strided_slice %1 {offsets = [0, 2], sizes = [16, 3], strides = [1, 1]} : vector<16x5xbf16> to vector<16x3xbf16>
    %cst_11 = arith.constant dense<0.000000e+00> : vector<4x3xf32>
    %16 = tpu.matmul %14, %15, %cst_11 {dimension_numbers = #tpu.dot_dimension_numbers<[1], [0], [0], [1], [0, 0, 1, 1], [], []>} : vector<4x16xbf16>, vector<16x3xbf16>, vector<4x3xf32> -> vector<4x3xf32>
    %17 = arith.addf %12, %16 : vector<4x3xf32>
    %c0_12 = arith.constant 0 : index
    %c0_13 = arith.constant 0 : index
    %18 = vector.load %arg3[%c0_12, %c0_13] : memref<4x1xf32, #tpu.memory_space<vmem>>, vector<4x1xf32>
    %19 = vector.broadcast %18 : vector<4x1xf32> to vector<4x3xf32>
    %20 = arith.addf %17, %19 : vector<4x3xf32>
    %cst_14 = arith.constant dense<0.000000e+00> : vector<4xf32>
    %21 = vector.multi_reduction <add>, %20, %cst_14 [1] : vector<4x3xf32> to vector<4xf32>
    %22 = vector.shape_cast %21 : vector<4xf32> to vector<4x1xf32>
    %cst_15 = arith.constant dense<0.000000e+00> : vector<1xf32>
    %23 = vector.multi_reduction <add>, %22, %cst_15 [0] : vector<4x1xf32> to vector<1xf32>
    %24 = vector.shape_cast %23 : vector<1xf32> to vector<1x1xf32>
    %cst_16 = arith.constant 1.200000e+01 : f32
    %25 = vector.broadcast %cst_16 : f32 to vector<1x1xf32>
    %26 = arith.divf %24, %25 : vector<1x1xf32>
    %27 = vector.broadcast %26 : vector<1x1xf32> to vector<4x3xf32>
    %28 = arith.subf %20, %27 : vector<4x3xf32>
    %29 = arith.mulf %28, %28 : vector<4x3xf32>
    %cst_17 = arith.constant dense<0.000000e+00> : vector<4xf32>
    %30 = vector.multi_reduction <add>, %29, %cst_17 [1] : vector<4x3xf32> to vector<4xf32>
    %31 = vector.shape_cast %30 : vector<4xf32> to vector<4x1xf32>
    %cst_18 = arith.constant dense<0.000000e+00> : vector<1xf32>
    %32 = vector.multi_reduction <add>, %31, %cst_18 [0] : vector<4x1xf32> to vector<1xf32>
    %33 = vector.shape_cast %32 : vector<1xf32> to vector<1x1xf32>
    %cst_19 = arith.constant 1.200000e+01 : f32
    %34 = vector.broadcast %cst_19 : f32 to vector<1x1xf32>
    %35 = arith.divf %33, %34 : vector<1x1xf32>
    %c0_20 = arith.constant 0 : index
    %c0_21 = arith.constant 0 : index
    %36 = vector.load %arg4[%c0_20, %c0_21] : memref<4x1xf32, #tpu.memory_space<vmem>>, vector<4x1xf32>
    %cst_22 = arith.constant 9.99999974E-6 : f32
    %37 = vector.broadcast %cst_22 : f32 to vector<1x1xf32>
    %38 = arith.addf %35, %37 : vector<1x1xf32>
    %39 = math.rsqrt %38 : vector<1x1xf32>
    %40 = vector.broadcast %39 : vector<1x1xf32> to vector<4x1xf32>
    %41 = arith.mulf %36, %40 : vector<4x1xf32>
    %42 = vector.broadcast %41 : vector<4x1xf32> to vector<4x3xf32>
    %43 = arith.mulf %28, %42 : vector<4x3xf32>
    %c0_23 = arith.constant 0 : index
    %c0_24 = arith.constant 0 : index
    %44 = vector.load %arg5[%c0_23, %c0_24] : memref<4x1xf32, #tpu.memory_space<vmem>>, vector<4x1xf32>
    %45 = vector.broadcast %44 : vector<4x1xf32> to vector<4x3xf32>
    %46 = arith.addf %43, %45 : vector<4x3xf32>
    %cst_25 = arith.constant 5.000000e-01 : f32
    %47 = vector.broadcast %cst_25 : f32 to vector<4x3xf32>
    %48 = arith.mulf %47, %46 : vector<4x3xf32>
    %cst_26 = arith.constant 4.471500e-02 : f32
    %49 = vector.broadcast %cst_26 : f32 to vector<4x3xf32>
    %50 = arith.mulf %49, %46 : vector<4x3xf32>
    %51 = arith.mulf %50, %46 : vector<4x3xf32>
    %52 = arith.mulf %51, %46 : vector<4x3xf32>
    %53 = arith.addf %46, %52 : vector<4x3xf32>
    %cst_27 = arith.constant 0.797884583 : f32
    %54 = vector.broadcast %cst_27 : f32 to vector<4x3xf32>
    %55 = arith.mulf %54, %53 : vector<4x3xf32>
    %56 = math.tanh %55 : vector<4x3xf32>
    %cst_28 = arith.constant 1.000000e+00 : f32
    %57 = vector.broadcast %cst_28 : f32 to vector<4x3xf32>
    %58 = arith.addf %57, %56 : vector<4x3xf32>
    %59 = arith.mulf %48, %58 : vector<4x3xf32>
    %c0_29 = arith.constant 0 : index
    %c0_30 = arith.constant 0 : index
    %60 = vector.load %arg6[%c0_29, %c0_30] : memref<32x4xbf16, #tpu.memory_space<vmem>>, vector<32x4xbf16>
    %61 = arith.truncf %59 : vector<4x3xf32> to vector<4x3xbf16>
    %cst_31 = arith.constant dense<0.000000e+00> : vector<32x3xf32>
    %62 = tpu.matmul %60, %61, %cst_31 {dimension_numbers = #tpu.dot_dimension_numbers<[1], [0], [0], [1], [0, 0, 1, 1], [], []>} : vector<32x4xbf16>, vector<4x3xbf16>, vector<32x3xf32> -> vector<32x3xf32>
    %c0_32 = arith.constant 0 : index
    %c0_33 = arith.constant 0 : index
    %63 = vector.load %arg7[%c0_32, %c0_33] : memref<32x1xf32, #tpu.memory_space<vmem>>, vector<32x1xf32>
    %64 = vector.broadcast %63 : vector<32x1xf32> to vector<32x3xf32>
    %65 = arith.addf %62, %64 : vector<32x3xf32>
    %cst_34 = arith.constant dense<0.000000e+00> : vector<32xf32>
    %66 = vector.multi_reduction <add>, %65, %cst_34 [1] : vector<32x3xf32> to vector<32xf32>
    %67 = vector.shape_cast %66 : vector<32xf32> to vector<32x1xf32>
    %cst_35 = arith.constant dense<0.000000e+00> : vector<1xf32>
    %68 = vector.multi_reduction <add>, %67, %cst_35 [0] : vector<32x1xf32> to vector<1xf32>
    %69 = vector.shape_cast %68 : vector<1xf32> to vector<1x1xf32>
    %cst_36 = arith.constant 9.600000e+01 : f32
    %70 = vector.broadcast %cst_36 : f32 to vector<1x1xf32>
    %71 = arith.divf %69, %70 : vector<1x1xf32>
    %72 = vector.broadcast %71 : vector<1x1xf32> to vector<32x3xf32>
    %73 = arith.subf %65, %72 : vector<32x3xf32>
    %74 = arith.mulf %73, %73 : vector<32x3xf32>
    %cst_37 = arith.constant dense<0.000000e+00> : vector<32xf32>
    %75 = vector.multi_reduction <add>, %74, %cst_37 [1] : vector<32x3xf32> to vector<32xf32>
    %76 = vector.shape_cast %75 : vector<32xf32> to vector<32x1xf32>
    %cst_38 = arith.constant dense<0.000000e+00> : vector<1xf32>
    %77 = vector.multi_reduction <add>, %76, %cst_38 [0] : vector<32x1xf32> to vector<1xf32>
    %78 = vector.shape_cast %77 : vector<1xf32> to vector<1x1xf32>
    %cst_39 = arith.constant 9.600000e+01 : f32
    %79 = vector.broadcast %cst_39 : f32 to vector<1x1xf32>
    %80 = arith.divf %78, %79 : vector<1x1xf32>
    %c0_40 = arith.constant 0 : index
    %c0_41 = arith.constant 0 : index
    %81 = vector.load %arg8[%c0_40, %c0_41] : memref<32x1xf32, #tpu.memory_space<vmem>>, vector<32x1xf32>
    %cst_42 = arith.constant 9.99999974E-6 : f32
    %82 = vector.broadcast %cst_42 : f32 to vector<1x1xf32>
    %83 = arith.addf %80, %82 : vector<1x1xf32>
    %84 = math.rsqrt %83 : vector<1x1xf32>
    %85 = vector.broadcast %84 : vector<1x1xf32> to vector<32x1xf32>
    %86 = arith.mulf %81, %85 : vector<32x1xf32>
    %87 = vector.broadcast %86 : vector<32x1xf32> to vector<32x3xf32>
    %88 = arith.mulf %73, %87 : vector<32x3xf32>
    %c0_43 = arith.constant 0 : index
    %c0_44 = arith.constant 0 : index
    %89 = vector.load %arg9[%c0_43, %c0_44] : memref<32x1xf32, #tpu.memory_space<vmem>>, vector<32x1xf32>
    %90 = vector.broadcast %89 : vector<32x1xf32> to vector<32x3xf32>
    %91 = arith.addf %88, %90 : vector<32x3xf32>
    %92 = vector.extract_strided_slice %91 {offsets = [0, 0], sizes = [16, 3], strides = [1, 1]} : vector<32x3xf32> to vector<16x3xf32>
    %93 = vector.extract_strided_slice %91 {offsets = [16, 0], sizes = [16, 3], strides = [1, 1]} : vector<32x3xf32> to vector<16x3xf32>
    %94 = arith.negf %93 : vector<16x3xf32>
    %95 = math.exp %94 : vector<16x3xf32>
    %cst_45 = arith.constant 1.000000e+00 : f32
    %96 = vector.broadcast %cst_45 : f32 to vector<16x3xf32>
    %97 = arith.addf %96, %95 : vector<16x3xf32>
    %98 = arith.divf %96, %97 : vector<16x3xf32>
    %99 = arith.mulf %92, %98 : vector<16x3xf32>
    %100 = vector.extract_strided_slice %1 {offsets = [0, 1], sizes = [16, 3], strides = [1, 1]} : vector<16x5xbf16> to vector<16x3xbf16>
    %101 = arith.extf %100 : vector<16x3xbf16> to vector<16x3xf32>
    %c0_46 = arith.constant 0 : index
    %c0_47 = arith.constant 0 : index
    %102 = vector.load %arg10[%c0_46, %c0_47] : memref<16x1xf32, #tpu.memory_space<vmem>>, vector<16x1xf32>
    %103 = vector.broadcast %102 : vector<16x1xf32> to vector<16x3xf32>
    %104 = arith.mulf %103, %99 : vector<16x3xf32>
    %105 = arith.addf %101, %104 : vector<16x3xf32>
    %106 = arith.truncf %105 : vector<16x3xf32> to vector<16x3xbf16>
    %c0_48 = arith.constant 0 : index
    %c0_49 = arith.constant 0 : index
    %c0_50 = arith.constant 0 : index
    %107 = vector.load %arg11[%c0_48, %c0_49, %c0_50] : memref<1x16x3xbf16, #tpu.memory_space<vmem>>, vector<1x16x3xbf16>
    %108 = vector.shape_cast %107 : vector<1x16x3xbf16> to vector<16x3xbf16>
    %109 = vector.shape_cast %106 : vector<16x3xbf16> to vector<1x16x3xbf16>
    tpu.vector_store %arg11[%c0_48, %c0_49, %c0_50], %109 {strides = array<i32>} : memref<1x16x3xbf16, #tpu.memory_space<vmem>>, vector<1x16x3xbf16>,
    return
  }
  func.func @transform_0(%arg0: i32) -> (i32, i32, i32) {
    %c0_i32 = arith.constant 0 : i32
    %c0_i32_0 = arith.constant 0 : i32
    %c0_i32_1 = arith.constant 0 : i32
    return %arg0, %c0_i32, %c0_i32_0 : i32, i32, i32
  }
  func.func @transform_1(%arg0: i32) -> (i32, i32, i32) {
    %c0_i32 = arith.constant 0 : i32
    %c0_i32_0 = arith.constant 0 : i32
    %c0_i32_1 = arith.constant 0 : i32
    %c0_i32_2 = arith.constant 0 : i32
    return %c0_i32, %c0_i32_0, %c0_i32_1 : i32, i32, i32
  }
  func.func @transform_2(%arg0: i32) -> (i32, i32) {
    %c0_i32 = arith.constant 0 : i32
    %c0_i32_0 = arith.constant 0 : i32
    %c0_i32_1 = arith.constant 0 : i32
    return %c0_i32, %c0_i32_0 : i32, i32
  }
  func.func @transform_3(%arg0: i32) -> (i32, i32) {
    %c0_i32 = arith.constant 0 : i32
    %c0_i32_0 = arith.constant 0 : i32
    %c0_i32_1 = arith.constant 0 : i32
    return %c0_i32, %c0_i32_0 : i32, i32
  }
  func.func @transform_4(%arg0: i32) -> (i32, i32) {
    %c0_i32 = arith.constant 0 : i32
    %c0_i32_0 = arith.constant 0 : i32
    %c0_i32_1 = arith.constant 0 : i32
    return %c0_i32, %c0_i32_0 : i32, i32
  }
  func.func @transform_5(%arg0: i32) -> (i32, i32) {
    %c0_i32 = arith.constant 0 : i32
    %c0_i32_0 = arith.constant 0 : i32
    %c0_i32_1 = arith.constant 0 : i32
    return %c0_i32, %c0_i32_0 : i32, i32
  }
  func.func @transform_6(%arg0: i32) -> (i32, i32) {
    %c0_i32 = arith.constant 0 : i32
    %c0_i32_0 = arith.constant 0 : i32
    %c0_i32_1 = arith.constant 0 : i32
    return %c0_i32, %c0_i32_0 : i32, i32
  }
  func.func @transform_7(%arg0: i32) -> (i32, i32) {
    %c0_i32 = arith.constant 0 : i32
    %c0_i32_0 = arith.constant 0 : i32
    %c0_i32_1 = arith.constant 0 : i32
    return %c0_i32, %c0_i32_0 : i32, i32
  }
  func.func @transform_8(%arg0: i32) -> (i32, i32) {
    %c0_i32 = arith.constant 0 : i32
    %c0_i32_0 = arith.constant 0 : i32
    %c0_i32_1 = arith.constant 0 : i32
    return %c0_i32, %c0_i32_0 : i32, i32
  }
  func.func @transform_9(%arg0: i32) -> (i32, i32) {
    %c0_i32 = arith.constant 0 : i32
    %c0_i32_0 = arith.constant 0 : i32
    %c0_i32_1 = arith.constant 0 : i32
    return %c0_i32, %c0_i32_0 : i32, i32
  }
  func.func @transform_10(%arg0: i32) -> (i32, i32, i32) {
    %c0_i32 = arith.constant 0 : i32
    %c0_i32_0 = arith.constant 0 : i32
    %c0_i32_1 = arith.constant 0 : i32
    return %arg0, %c0_i32, %c0_i32_0 : i32, i32, i32
  }
}

module attributes {stable_mosaic.version = 11 : i64} {
  func.func @_compres_kernel(%arg0: i32, %arg1: memref<1x16x7xbf16, #tpu.memory_space<vmem>>, %arg2: memref<3x4x16xbf16, #tpu.memory_space<vmem>>, %arg3: memref<4x1xf32, #tpu.memory_space<vmem>>, %arg4: memref<4x1xf32, #tpu.memory_space<vmem>>, %arg5: memref<4x1xf32, #tpu.memory_space<vmem>>, %arg6: memref<32x4xbf16, #tpu.memory_space<vmem>>, %arg7: memref<32x1xf32, #tpu.memory_space<vmem>>, %arg8: memref<32x1xf32, #tpu.memory_space<vmem>>, %arg9: memref<32x1xf32, #tpu.memory_space<vmem>>, %arg10: memref<16x1xf32, #tpu.memory_space<vmem>>, %arg11: memref<1x16x3xbf16, #tpu.memory_space<vmem>>) attributes {dimension_semantics = [#tpu.dimension_semantics<parallel>], iteration_bounds = array<i64: 2>, scalar_prefetch = 0 : i64, scratch_operands = 0 : i64, tpu.core_type = #tpu.core_type<tc>, window_params = [{transform_indices = @transform_0, window_bounds = array<i64: 1, 16, 7>}, {pipeline_mode = #tpu.pipeline_mode<synchronous>, transform_indices = @transform_1, window_bounds = array<i64: 3, 4, 16>}, {pipeline_mode = #tpu.pipeline_mode<synchronous>, transform_indices = @transform_2, window_bounds = array<i64: 4, 1>}, {pipeline_mode = #tpu.pipeline_mode<synchronous>, transform_indices = @transform_3, window_bounds = array<i64: 4, 1>}, {pipeline_mode = #tpu.pipeline_mode<synchronous>, transform_indices = @transform_4, window_bounds = array<i64: 4, 1>}, {pipeline_mode = #tpu.pipeline_mode<synchronous>, transform_indices = @transform_5, window_bounds = array<i64: 32, 4>}, {pipeline_mode = #tpu.pipeline_mode<synchronous>, transform_indices = @transform_6, window_bounds = array<i64: 32, 1>}, {pipeline_mode = #tpu.pipeline_mode<synchronous>, transform_indices = @transform_7, window_bounds = array<i64: 32, 1>}, {pipeline_mode = #tpu.pipeline_mode<synchronous>, transform_indices = @transform_8, window_bounds = array<i64: 32, 1>}, {pipeline_mode = #tpu.pipeline_mode<synchronous>, transform_indices = @transform_9, window_bounds = array<i64: 16, 1>}, {transform_indices = @transform_10, window_bounds = array<i64: 1, 16, 3>}]} {
    %c0 = arith.constant 0 : index
    %c0_0 = arith.constant 0 : index
    %c0_1 = arith.constant 0 : index
    %0 = vector.load %arg1[%c0, %c0_0, %c0_1] : memref<1x16x7xbf16, #tpu.memory_space<vmem>>, vector<1x16x7xbf16>
    %1 = vector.shape_cast %0 : vector<1x16x7xbf16> to vector<16x7xbf16>
    %cst = arith.constant 0.000000e+00 : f32
    %2 = vector.broadcast %cst : f32 to vector<4x3xf32>
    %c0_2 = arith.constant 0 : index
    %c0_3 = arith.constant 0 : index
    %c0_4 = arith.constant 0 : index
    %3 = vector.load %arg2[%c0_2, %c0_3, %c0_4] : memref<3x4x16xbf16, #tpu.memory_space<vmem>>, vector<1x4x16xbf16>
    %4 = vector.shape_cast %3 : vector<1x4x16xbf16> to vector<4x16xbf16>
    %5 = vector.extract_strided_slice %1 {offsets = [0, 0], sizes = [16, 3], strides = [1, 1]} : vector<16x7xbf16> to vector<16x3xbf16>
    %cst_5 = arith.constant dense<0.000000e+00> : vector<4x3xf32>
    %6 = tpu.matmul %4, %5, %cst_5 {dimension_numbers = #tpu.dot_dimension_numbers<[1], [0], [0], [1], [0, 0, 1, 1], [], []>} : vector<4x16xbf16>, vector<16x3xbf16>, vector<4x3xf32> -> vector<4x3xf32>
    %7 = arith.addf %2, %6 : vector<4x3xf32>
    %c1 = arith.constant 1 : index
    %c0_6 = arith.constant 0 : index
    %c0_7 = arith.constant 0 : index
    %8 = vector.load %arg2[%c1, %c0_6, %c0_7] : memref<3x4x16xbf16, #tpu.memory_space<vmem>>, vector<1x4x16xbf16>
    %9 = vector.shape_cast %8 : vector<1x4x16xbf16> to vector<4x16xbf16>
    %10 = vector.extract_strided_slice %1 {offsets = [0, 2], sizes = [16, 3], strides = [1, 1]} : vector<16x7xbf16> to vector<16x3xbf16>
    %cst_8 = arith.constant dense<0.000000e+00> : vector<4x3xf32>
    %11 = tpu.matmul %9, %10, %cst_8 {dimension_numbers = #tpu.dot_dimension_numbers<[1], [0], [0], [1], [0, 0, 1, 1], [], []>} : vector<4x16xbf16>, vector<16x3xbf16>, vector<4x3xf32> -> vector<4x3xf32>
    %12 = arith.addf %7, %11 : vector<4x3xf32>
    %c2 = arith.constant 2 : index
    %c0_9 = arith.constant 0 : index
    %c0_10 = arith.constant 0 : index
    %13 = vector.load %arg2[%c2, %c0_9, %c0_10] : memref<3x4x16xbf16, #tpu.memory_space<vmem>>, vector<1x4x16xbf16>
    %14 = vector.shape_cast %13 : vector<1x4x16xbf16> to vector<4x16xbf16>
    %15 = vector.extract_strided_slice %1 {offsets = [0, 4], sizes = [16, 3], strides = [1, 1]} : vector<16x7xbf16> to vector<16x3xbf16>
    %cst_11 = arith.constant dense<0.000000e+00> : vector<4x3xf32>
    %16 = tpu.matmul %14, %15, %cst_11 {dimension_numbers = #tpu.dot_dimension_numbers<[1], [0], [0], [1], [0, 0, 1, 1], [], []>} : vector<4x16xbf16>, vector<16x3xbf16>, vector<4x3xf32> -> vector<4x3xf32>
    %17 = arith.addf %12, %16 : vector<4x3xf32>
    %c0_12 = arith.constant 0 : index
    %c0_13 = arith.constant 0 : index
    %18 = vector.load %arg3[%c0_12, %c0_13] : memref<4x1xf32, #tpu.memory_space<vmem>>, vector<4x1xf32>
    %19 = vector.broadcast %18 : vector<4x1xf32> to vector<4x3xf32>
    %20 = arith.addf %17, %19 : vector<4x3xf32>
    %cst_14 = arith.constant dense<0.000000e+00> : vector<4xf32>
    %21 = vector.multi_reduction <add>, %20, %cst_14 [1] : vector<4x3xf32> to vector<4xf32>
    %22 = vector.shape_cast %21 : vector<4xf32> to vector<4x1xf32>
    %cst_15 = arith.constant dense<0.000000e+00> : vector<1xf32>
    %23 = vector.multi_reduction <add>, %22, %cst_15 [0] : vector<4x1xf32> to vector<1xf32>
    %24 = vector.shape_cast %23 : vector<1xf32> to vector<1x1xf32>
    %cst_16 = arith.constant 1.200000e+01 : f32
    %25 = vector.broadcast %cst_16 : f32 to vector<1x1xf32>
    %26 = arith.divf %24, %25 : vector<1x1xf32>
    %27 = vector.broadcast %26 : vector<1x1xf32> to vector<4x3xf32>
    %28 = arith.subf %20, %27 : vector<4x3xf32>
    %29 = arith.mulf %28, %28 : vector<4x3xf32>
    %cst_17 = arith.constant dense<0.000000e+00> : vector<4xf32>
    %30 = vector.multi_reduction <add>, %29, %cst_17 [1] : vector<4x3xf32> to vector<4xf32>
    %31 = vector.shape_cast %30 : vector<4xf32> to vector<4x1xf32>
    %cst_18 = arith.constant dense<0.000000e+00> : vector<1xf32>
    %32 = vector.multi_reduction <add>, %31, %cst_18 [0] : vector<4x1xf32> to vector<1xf32>
    %33 = vector.shape_cast %32 : vector<1xf32> to vector<1x1xf32>
    %cst_19 = arith.constant 1.200000e+01 : f32
    %34 = vector.broadcast %cst_19 : f32 to vector<1x1xf32>
    %35 = arith.divf %33, %34 : vector<1x1xf32>
    %c0_20 = arith.constant 0 : index
    %c0_21 = arith.constant 0 : index
    %36 = vector.load %arg4[%c0_20, %c0_21] : memref<4x1xf32, #tpu.memory_space<vmem>>, vector<4x1xf32>
    %cst_22 = arith.constant 9.99999974E-6 : f32
    %37 = vector.broadcast %cst_22 : f32 to vector<1x1xf32>
    %38 = arith.addf %35, %37 : vector<1x1xf32>
    %39 = math.rsqrt %38 : vector<1x1xf32>
    %40 = vector.broadcast %39 : vector<1x1xf32> to vector<4x1xf32>
    %41 = arith.mulf %36, %40 : vector<4x1xf32>
    %42 = vector.broadcast %41 : vector<4x1xf32> to vector<4x3xf32>
    %43 = arith.mulf %28, %42 : vector<4x3xf32>
    %c0_23 = arith.constant 0 : index
    %c0_24 = arith.constant 0 : index
    %44 = vector.load %arg5[%c0_23, %c0_24] : memref<4x1xf32, #tpu.memory_space<vmem>>, vector<4x1xf32>
    %45 = vector.broadcast %44 : vector<4x1xf32> to vector<4x3xf32>
    %46 = arith.addf %43, %45 : vector<4x3xf32>
    %cst_25 = arith.constant 5.000000e-01 : f32
    %47 = vector.broadcast %cst_25 : f32 to vector<4x3xf32>
    %48 = arith.mulf %47, %46 : vector<4x3xf32>
    %cst_26 = arith.constant 4.471500e-02 : f32
    %49 = vector.broadcast %cst_26 : f32 to vector<4x3xf32>
    %50 = arith.mulf %49, %46 : vector<4x3xf32>
    %51 = arith.mulf %50, %46 : vector<4x3xf32>
    %52 = arith.mulf %51, %46 : vector<4x3xf32>
    %53 = arith.addf %46, %52 : vector<4x3xf32>
    %cst_27 = arith.constant 0.797884583 : f32
    %54 = vector.broadcast %cst_27 : f32 to vector<4x3xf32>
    %55 = arith.mulf %54, %53 : vector<4x3xf32>
    %56 = math.tanh %55 : vector<4x3xf32>
    %cst_28 = arith.constant 1.000000e+00 : f32
    %57 = vector.broadcast %cst_28 : f32 to vector<4x3xf32>
    %58 = arith.addf %57, %56 : vector<4x3xf32>
    %59 = arith.mulf %48, %58 : vector<4x3xf32>
    %c0_29 = arith.constant 0 : index
    %c0_30 = arith.constant 0 : index
    %60 = vector.load %arg6[%c0_29, %c0_30] : memref<32x4xbf16, #tpu.memory_space<vmem>>, vector<32x4xbf16>
    %61 = arith.truncf %59 : vector<4x3xf32> to vector<4x3xbf16>
    %cst_31 = arith.constant dense<0.000000e+00> : vector<32x3xf32>
    %62 = tpu.matmul %60, %61, %cst_31 {dimension_numbers = #tpu.dot_dimension_numbers<[1], [0], [0], [1], [0, 0, 1, 1], [], []>} : vector<32x4xbf16>, vector<4x3xbf16>, vector<32x3xf32> -> vector<32x3xf32>
    %c0_32 = arith.constant 0 : index
    %c0_33 = arith.constant 0 : index
    %63 = vector.load %arg7[%c0_32, %c0_33] : memref<32x1xf32, #tpu.memory_space<vmem>>, vector<32x1xf32>
    %64 = vector.broadcast %63 : vector<32x1xf32> to vector<32x3xf32>
    %65 = arith.addf %62, %64 : vector<32x3xf32>
    %cst_34 = arith.constant dense<0.000000e+00> : vector<32xf32>
    %66 = vector.multi_reduction <add>, %65, %cst_34 [1] : vector<32x3xf32> to vector<32xf32>
    %67 = vector.shape_cast %66 : vector<32xf32> to vector<32x1xf32>
    %cst_35 = arith.constant dense<0.000000e+00> : vector<1xf32>
    %68 = vector.multi_reduction <add>, %67, %cst_35 [0] : vector<32x1xf32> to vector<1xf32>
    %69 = vector.shape_cast %68 : vector<1xf32> to vector<1x1xf32>
    %cst_36 = arith.constant 9.600000e+01 : f32
    %70 = vector.broadcast %cst_36 : f32 to vector<1x1xf32>
    %71 = arith.divf %69, %70 : vector<1x1xf32>
    %72 = vector.broadcast %71 : vector<1x1xf32> to vector<32x3xf32>
    %73 = arith.subf %65, %72 : vector<32x3xf32>
    %74 = arith.mulf %73, %73 : vector<32x3xf32>
    %cst_37 = arith.constant dense<0.000000e+00> : vector<32xf32>
    %75 = vector.multi_reduction <add>, %74, %cst_37 [1] : vector<32x3xf32> to vector<32xf32>
    %76 = vector.shape_cast %75 : vector<32xf32> to vector<32x1xf32>
    %cst_38 = arith.constant dense<0.000000e+00> : vector<1xf32>
    %77 = vector.multi_reduction <add>, %76, %cst_38 [0] : vector<32x1xf32> to vector<1xf32>
    %78 = vector.shape_cast %77 : vector<1xf32> to vector<1x1xf32>
    %cst_39 = arith.constant 9.600000e+01 : f32
    %79 = vector.broadcast %cst_39 : f32 to vector<1x1xf32>
    %80 = arith.divf %78, %79 : vector<1x1xf32>
    %c0_40 = arith.constant 0 : index
    %c0_41 = arith.constant 0 : index
    %81 = vector.load %arg8[%c0_40, %c0_41] : memref<32x1xf32, #tpu.memory_space<vmem>>, vector<32x1xf32>
    %cst_42 = arith.constant 9.99999974E-6 : f32
    %82 = vector.broadcast %cst_42 : f32 to vector<1x1xf32>
    %83 = arith.addf %80, %82 : vector<1x1xf32>
    %84 = math.rsqrt %83 : vector<1x1xf32>
    %85 = vector.broadcast %84 : vector<1x1xf32> to vector<32x1xf32>
    %86 = arith.mulf %81, %85 : vector<32x1xf32>
    %87 = vector.broadcast %86 : vector<32x1xf32> to vector<32x3xf32>
    %88 = arith.mulf %73, %87 : vector<32x3xf32>
    %c0_43 = arith.constant 0 : index
    %c0_44 = arith.constant 0 : index
    %89 = vector.load %arg9[%c0_43, %c0_44] : memref<32x1xf32, #tpu.memory_space<vmem>>, vector<32x1xf32>
    %90 = vector.broadcast %89 : vector<32x1xf32> to vector<32x3xf32>
    %91 = arith.addf %88, %90 : vector<32x3xf32>
    %92 = vector.extract_strided_slice %91 {offsets = [0, 0], sizes = [16, 3], strides = [1, 1]} : vector<32x3xf32> to vector<16x3xf32>
    %93 = vector.extract_strided_slice %91 {offsets = [16, 0], sizes = [16, 3], strides = [1, 1]} : vector<32x3xf32> to vector<16x3xf32>
    %94 = arith.negf %93 : vector<16x3xf32>
    %95 = math.exp %94 : vector<16x3xf32>
    %cst_45 = arith.constant 1.000000e+00 : f32
    %96 = vector.broadcast %cst_45 : f32 to vector<16x3xf32>
    %97 = arith.addf %96, %95 : vector<16x3xf32>
    %98 = arith.divf %96, %97 : vector<16x3xf32>
    %99 = arith.mulf %92, %98 : vector<16x3xf32>
    %100 = vector.extract_strided_slice %1 {offsets = [0, 2], sizes = [16, 3], strides = [1, 1]} : vector<16x7xbf16> to vector<16x3xbf16>
    %101 = arith.extf %100 : vector<16x3xbf16> to vector<16x3xf32>
    %c0_46 = arith.constant 0 : index
    %c0_47 = arith.constant 0 : index
    %102 = vector.load %arg10[%c0_46, %c0_47] : memref<16x1xf32, #tpu.memory_space<vmem>>, vector<16x1xf32>
    %103 = vector.broadcast %102 : vector<16x1xf32> to vector<16x3xf32>
    %104 = arith.mulf %103, %99 : vector<16x3xf32>
    %105 = arith.addf %101, %104 : vector<16x3xf32>
    %106 = arith.truncf %105 : vector<16x3xf32> to vector<16x3xbf16>
    %c0_48 = arith.constant 0 : index
    %c0_49 = arith.constant 0 : index
    %c0_50 = arith.constant 0 : index
    %107 = vector.load %arg11[%c0_48, %c0_49, %c0_50] : memref<1x16x3xbf16, #tpu.memory_space<vmem>>, vector<1x16x3xbf16>
    %108 = vector.shape_cast %107 : vector<1x16x3xbf16> to vector<16x3xbf16>
    %109 = vector.shape_cast %106 : vector<16x3xbf16> to vector<1x16x3xbf16>
    tpu.vector_store %arg11[%c0_48, %c0_49, %c0_50], %109 {strides = array<i32>} : memref<1x16x3xbf16, #tpu.memory_space<vmem>>, vector<1x16x3xbf16>,
    return
  }
  func.func @transform_0(%arg0: i32) -> (i32, i32, i32) {
    %c0_i32 = arith.constant 0 : i32
    %c0_i32_0 = arith.constant 0 : i32
    %c0_i32_1 = arith.constant 0 : i32
    return %arg0, %c0_i32, %c0_i32_0 : i32, i32, i32
  }
  func.func @transform_1(%arg0: i32) -> (i32, i32, i32) {
    %c0_i32 = arith.constant 0 : i32
    %c0_i32_0 = arith.constant 0 : i32
    %c0_i32_1 = arith.constant 0 : i32
    %c0_i32_2 = arith.constant 0 : i32
    return %c0_i32, %c0_i32_0, %c0_i32_1 : i32, i32, i32
  }
  func.func @transform_2(%arg0: i32) -> (i32, i32) {
    %c0_i32 = arith.constant 0 : i32
    %c0_i32_0 = arith.constant 0 : i32
    %c0_i32_1 = arith.constant 0 : i32
    return %c0_i32, %c0_i32_0 : i32, i32
  }
  func.func @transform_3(%arg0: i32) -> (i32, i32) {
    %c0_i32 = arith.constant 0 : i32
    %c0_i32_0 = arith.constant 0 : i32
    %c0_i32_1 = arith.constant 0 : i32
    return %c0_i32, %c0_i32_0 : i32, i32
  }
  func.func @transform_4(%arg0: i32) -> (i32, i32) {
    %c0_i32 = arith.constant 0 : i32
    %c0_i32_0 = arith.constant 0 : i32
    %c0_i32_1 = arith.constant 0 : i32
    return %c0_i32, %c0_i32_0 : i32, i32
  }
  func.func @transform_5(%arg0: i32) -> (i32, i32) {
    %c0_i32 = arith.constant 0 : i32
    %c0_i32_0 = arith.constant 0 : i32
    %c0_i32_1 = arith.constant 0 : i32
    return %c0_i32, %c0_i32_0 : i32, i32
  }
  func.func @transform_6(%arg0: i32) -> (i32, i32) {
    %c0_i32 = arith.constant 0 : i32
    %c0_i32_0 = arith.constant 0 : i32
    %c0_i32_1 = arith.constant 0 : i32
    return %c0_i32, %c0_i32_0 : i32, i32
  }
  func.func @transform_7(%arg0: i32) -> (i32, i32) {
    %c0_i32 = arith.constant 0 : i32
    %c0_i32_0 = arith.constant 0 : i32
    %c0_i32_1 = arith.constant 0 : i32
    return %c0_i32, %c0_i32_0 : i32, i32
  }
  func.func @transform_8(%arg0: i32) -> (i32, i32) {
    %c0_i32 = arith.constant 0 : i32
    %c0_i32_0 = arith.constant 0 : i32
    %c0_i32_1 = arith.constant 0 : i32
    return %c0_i32, %c0_i32_0 : i32, i32
  }
  func.func @transform_9(%arg0: i32) -> (i32, i32) {
    %c0_i32 = arith.constant 0 : i32
    %c0_i32_0 = arith.constant 0 : i32
    %c0_i32_1 = arith.constant 0 : i32
    return %c0_i32, %c0_i32_0 : i32, i32
  }
  func.func @transform_10(%arg0: i32) -> (i32, i32, i32) {
    %c0_i32 = arith.constant 0 : i32
    %c0_i32_0 = arith.constant 0 : i32
    %c0_i32_1 = arith.constant 0 : i32
    return %arg0, %c0_i32, %c0_i32_0 : i32, i32, i32
  }
}

module attributes {stable_mosaic.version = 11 : i64} {
  func.func @_conv_act_kernel(%arg0: i32, %arg1: i32, %arg2: memref<1x16x3xbf16, #tpu.memory_space<vmem>>, %arg3: memref<1x32x16xbf16, #tpu.memory_space<vmem>>, %arg4: memref<32x1xf32, #tpu.memory_space<vmem>>, %arg5: memref<1x16x3xbf16, #tpu.memory_space<vmem>>) attributes {dimension_semantics = [#tpu.dimension_semantics<parallel>, #tpu.dimension_semantics<parallel>], iteration_bounds = array<i64: 2, 1>, scalar_prefetch = 0 : i64, scratch_operands = 0 : i64, tpu.core_type = #tpu.core_type<tc>, window_params = [{transform_indices = @transform_0, window_bounds = array<i64: 1, 16, 3>}, {pipeline_mode = #tpu.pipeline_mode<synchronous>, transform_indices = @transform_1, window_bounds = array<i64: 1, 32, 16>}, {pipeline_mode = #tpu.pipeline_mode<synchronous>, transform_indices = @transform_2, window_bounds = array<i64: 32, 1>}, {transform_indices = @transform_3, window_bounds = array<i64: 1, 16, 3>}]} {
    %c0 = arith.constant 0 : index
    %c0_0 = arith.constant 0 : index
    %c0_1 = arith.constant 0 : index
    %0 = vector.load %arg2[%c0, %c0_0, %c0_1] : memref<1x16x3xbf16, #tpu.memory_space<vmem>>, vector<1x16x3xbf16>
    %1 = vector.shape_cast %0 : vector<1x16x3xbf16> to vector<16x3xbf16>
    %cst = arith.constant 0.000000e+00 : f32
    %2 = vector.broadcast %cst : f32 to vector<32x3xf32>
    %c0_2 = arith.constant 0 : index
    %c0_3 = arith.constant 0 : index
    %c0_4 = arith.constant 0 : index
    %3 = vector.load %arg3[%c0_2, %c0_3, %c0_4] : memref<1x32x16xbf16, #tpu.memory_space<vmem>>, vector<1x32x16xbf16>
    %4 = vector.shape_cast %3 : vector<1x32x16xbf16> to vector<32x16xbf16>
    %cst_5 = arith.constant dense<0.000000e+00> : vector<32x3xf32>
    %5 = tpu.matmul %4, %1, %cst_5 {dimension_numbers = #tpu.dot_dimension_numbers<[1], [0], [0], [1], [0, 0, 1, 1], [], []>} : vector<32x16xbf16>, vector<16x3xbf16>, vector<32x3xf32> -> vector<32x3xf32>
    %6 = arith.addf %2, %5 : vector<32x3xf32>
    %c0_6 = arith.constant 0 : index
    %c0_7 = arith.constant 0 : index
    %7 = vector.load %arg4[%c0_6, %c0_7] : memref<32x1xf32, #tpu.memory_space<vmem>>, vector<32x1xf32>
    %8 = vector.broadcast %7 : vector<32x1xf32> to vector<32x3xf32>
    %9 = arith.addf %6, %8 : vector<32x3xf32>
    %10 = vector.extract_strided_slice %9 {offsets = [0, 0], sizes = [16, 3], strides = [1, 1]} : vector<32x3xf32> to vector<16x3xf32>
    %11 = vector.extract_strided_slice %9 {offsets = [16, 0], sizes = [16, 3], strides = [1, 1]} : vector<32x3xf32> to vector<16x3xf32>
    %12 = arith.negf %11 : vector<16x3xf32>
    %13 = math.exp %12 : vector<16x3xf32>
    %cst_8 = arith.constant 1.000000e+00 : f32
    %14 = vector.broadcast %cst_8 : f32 to vector<16x3xf32>
    %15 = arith.addf %14, %13 : vector<16x3xf32>
    %16 = arith.divf %14, %15 : vector<16x3xf32>
    %17 = arith.mulf %10, %16 : vector<16x3xf32>
    %18 = arith.truncf %17 : vector<16x3xf32> to vector<16x3xbf16>
    %c0_9 = arith.constant 0 : index
    %c0_10 = arith.constant 0 : index
    %c0_11 = arith.constant 0 : index
    %19 = vector.load %arg5[%c0_9, %c0_10, %c0_11] : memref<1x16x3xbf16, #tpu.memory_space<vmem>>, vector<1x16x3xbf16>
    %20 = vector.shape_cast %19 : vector<1x16x3xbf16> to vector<16x3xbf16>
    %21 = vector.shape_cast %18 : vector<16x3xbf16> to vector<1x16x3xbf16>
    tpu.vector_store %arg5[%c0_9, %c0_10, %c0_11], %21 {strides = array<i32>} : memref<1x16x3xbf16, #tpu.memory_space<vmem>>, vector<1x16x3xbf16>,
    return
  }
  func.func @transform_0(%arg0: i32, %arg1: i32) -> (i32, i32, i32) {
    %c0_i32 = arith.constant 0 : i32
    %c0_i32_0 = arith.constant 0 : i32
    %c0_i32_1 = arith.constant 0 : i32
    return %arg0, %c0_i32, %c0_i32_0 : i32, i32, i32
  }
  func.func @transform_1(%arg0: i32, %arg1: i32) -> (i32, i32, i32) {
    %c0_i32 = arith.constant 0 : i32
    %c0_i32_0 = arith.constant 0 : i32
    %c0_i32_1 = arith.constant 0 : i32
    %c0_i32_2 = arith.constant 0 : i32
    return %c0_i32, %c0_i32_0, %c0_i32_1 : i32, i32, i32
  }
  func.func @transform_2(%arg0: i32, %arg1: i32) -> (i32, i32) {
    %c0_i32 = arith.constant 0 : i32
    %c0_i32_0 = arith.constant 0 : i32
    %c0_i32_1 = arith.constant 0 : i32
    return %c0_i32, %c0_i32_0 : i32, i32
  }
  func.func @transform_3(%arg0: i32, %arg1: i32) -> (i32, i32, i32) {
    %c0_i32 = arith.constant 0 : i32
    %c0_i32_0 = arith.constant 0 : i32
    return %arg0, %c0_i32, %arg1 : i32, i32, i32
  }
}

module attributes {stable_mosaic.version = 11 : i64} {
  func.func @_conv_act_kernel(%arg0: i32, %arg1: i32, %arg2: memref<1x16x5xbf16, #tpu.memory_space<vmem>>, %arg3: memref<1x16x5xbf16, #tpu.memory_space<vmem>>, %arg4: memref<3x32x16xbf16, #tpu.memory_space<vmem>>, %arg5: memref<32x1xf32, #tpu.memory_space<vmem>>, %arg6: memref<1x16x3xbf16, #tpu.memory_space<vmem>>) attributes {dimension_semantics = [#tpu.dimension_semantics<parallel>, #tpu.dimension_semantics<parallel>], iteration_bounds = array<i64: 2, 1>, scalar_prefetch = 0 : i64, scratch_operands = 0 : i64, tpu.core_type = #tpu.core_type<tc>, window_params = [{transform_indices = @transform_0, window_bounds = array<i64: 1, 16, 5>}, {transform_indices = @transform_1, window_bounds = array<i64: 1, 16, 5>}, {pipeline_mode = #tpu.pipeline_mode<synchronous>, transform_indices = @transform_2, window_bounds = array<i64: 3, 32, 16>}, {pipeline_mode = #tpu.pipeline_mode<synchronous>, transform_indices = @transform_3, window_bounds = array<i64: 32, 1>}, {transform_indices = @transform_4, window_bounds = array<i64: 1, 16, 3>}]} {
    %c0 = arith.constant 0 : index
    %c0_0 = arith.constant 0 : index
    %c0_1 = arith.constant 0 : index
    %0 = vector.load %arg2[%c0, %c0_0, %c0_1] : memref<1x16x5xbf16, #tpu.memory_space<vmem>>, vector<1x16x5xbf16>
    %1 = vector.shape_cast %0 : vector<1x16x5xbf16> to vector<16x5xbf16>
    %c0_2 = arith.constant 0 : index
    %c0_3 = arith.constant 0 : index
    %c0_4 = arith.constant 0 : index
    %2 = vector.load %arg3[%c0_2, %c0_3, %c0_4] : memref<1x16x5xbf16, #tpu.memory_space<vmem>>, vector<1x16x5xbf16>
    %3 = vector.shape_cast %2 : vector<1x16x5xbf16> to vector<16x5xbf16>
    %4 = arith.addf %1, %3 : vector<16x5xbf16>
    %cst = arith.constant 0.000000e+00 : f32
    %5 = vector.broadcast %cst : f32 to vector<32x3xf32>
    %c0_5 = arith.constant 0 : index
    %c0_6 = arith.constant 0 : index
    %c0_7 = arith.constant 0 : index
    %6 = vector.load %arg4[%c0_5, %c0_6, %c0_7] : memref<3x32x16xbf16, #tpu.memory_space<vmem>>, vector<1x32x16xbf16>
    %7 = vector.shape_cast %6 : vector<1x32x16xbf16> to vector<32x16xbf16>
    %8 = vector.extract_strided_slice %4 {offsets = [0, 0], sizes = [16, 3], strides = [1, 1]} : vector<16x5xbf16> to vector<16x3xbf16>
    %cst_8 = arith.constant dense<0.000000e+00> : vector<32x3xf32>
    %9 = tpu.matmul %7, %8, %cst_8 {dimension_numbers = #tpu.dot_dimension_numbers<[1], [0], [0], [1], [0, 0, 1, 1], [], []>} : vector<32x16xbf16>, vector<16x3xbf16>, vector<32x3xf32> -> vector<32x3xf32>
    %10 = arith.addf %5, %9 : vector<32x3xf32>
    %c1 = arith.constant 1 : index
    %c0_9 = arith.constant 0 : index
    %c0_10 = arith.constant 0 : index
    %11 = vector.load %arg4[%c1, %c0_9, %c0_10] : memref<3x32x16xbf16, #tpu.memory_space<vmem>>, vector<1x32x16xbf16>
    %12 = vector.shape_cast %11 : vector<1x32x16xbf16> to vector<32x16xbf16>
    %13 = vector.extract_strided_slice %4 {offsets = [0, 1], sizes = [16, 3], strides = [1, 1]} : vector<16x5xbf16> to vector<16x3xbf16>
    %cst_11 = arith.constant dense<0.000000e+00> : vector<32x3xf32>
    %14 = tpu.matmul %12, %13, %cst_11 {dimension_numbers = #tpu.dot_dimension_numbers<[1], [0], [0], [1], [0, 0, 1, 1], [], []>} : vector<32x16xbf16>, vector<16x3xbf16>, vector<32x3xf32> -> vector<32x3xf32>
    %15 = arith.addf %10, %14 : vector<32x3xf32>
    %c2 = arith.constant 2 : index
    %c0_12 = arith.constant 0 : index
    %c0_13 = arith.constant 0 : index
    %16 = vector.load %arg4[%c2, %c0_12, %c0_13] : memref<3x32x16xbf16, #tpu.memory_space<vmem>>, vector<1x32x16xbf16>
    %17 = vector.shape_cast %16 : vector<1x32x16xbf16> to vector<32x16xbf16>
    %18 = vector.extract_strided_slice %4 {offsets = [0, 2], sizes = [16, 3], strides = [1, 1]} : vector<16x5xbf16> to vector<16x3xbf16>
    %cst_14 = arith.constant dense<0.000000e+00> : vector<32x3xf32>
    %19 = tpu.matmul %17, %18, %cst_14 {dimension_numbers = #tpu.dot_dimension_numbers<[1], [0], [0], [1], [0, 0, 1, 1], [], []>} : vector<32x16xbf16>, vector<16x3xbf16>, vector<32x3xf32> -> vector<32x3xf32>
    %20 = arith.addf %15, %19 : vector<32x3xf32>
    %c0_15 = arith.constant 0 : index
    %c0_16 = arith.constant 0 : index
    %21 = vector.load %arg5[%c0_15, %c0_16] : memref<32x1xf32, #tpu.memory_space<vmem>>, vector<32x1xf32>
    %22 = vector.broadcast %21 : vector<32x1xf32> to vector<32x3xf32>
    %23 = arith.addf %20, %22 : vector<32x3xf32>
    %24 = vector.extract_strided_slice %23 {offsets = [0, 0], sizes = [16, 3], strides = [1, 1]} : vector<32x3xf32> to vector<16x3xf32>
    %25 = vector.extract_strided_slice %23 {offsets = [16, 0], sizes = [16, 3], strides = [1, 1]} : vector<32x3xf32> to vector<16x3xf32>
    %26 = arith.negf %25 : vector<16x3xf32>
    %27 = math.exp %26 : vector<16x3xf32>
    %cst_17 = arith.constant 1.000000e+00 : f32
    %28 = vector.broadcast %cst_17 : f32 to vector<16x3xf32>
    %29 = arith.addf %28, %27 : vector<16x3xf32>
    %30 = arith.divf %28, %29 : vector<16x3xf32>
    %31 = arith.mulf %24, %30 : vector<16x3xf32>
    %32 = arith.truncf %31 : vector<16x3xf32> to vector<16x3xbf16>
    %c0_18 = arith.constant 0 : index
    %c0_19 = arith.constant 0 : index
    %c0_20 = arith.constant 0 : index
    %33 = vector.load %arg6[%c0_18, %c0_19, %c0_20] : memref<1x16x3xbf16, #tpu.memory_space<vmem>>, vector<1x16x3xbf16>
    %34 = vector.shape_cast %33 : vector<1x16x3xbf16> to vector<16x3xbf16>
    %35 = vector.shape_cast %32 : vector<16x3xbf16> to vector<1x16x3xbf16>
    tpu.vector_store %arg6[%c0_18, %c0_19, %c0_20], %35 {strides = array<i32>} : memref<1x16x3xbf16, #tpu.memory_space<vmem>>, vector<1x16x3xbf16>,
    return
  }
  func.func @transform_0(%arg0: i32, %arg1: i32) -> (i32, i32, i32) {
    %c0_i32 = arith.constant 0 : i32
    %c0_i32_0 = arith.constant 0 : i32
    %c0_i32_1 = arith.constant 0 : i32
    return %arg0, %c0_i32, %c0_i32_0 : i32, i32, i32
  }
  func.func @transform_1(%arg0: i32, %arg1: i32) -> (i32, i32, i32) {
    %c0_i32 = arith.constant 0 : i32
    %c0_i32_0 = arith.constant 0 : i32
    %c0_i32_1 = arith.constant 0 : i32
    return %arg0, %c0_i32, %c0_i32_0 : i32, i32, i32
  }
  func.func @transform_2(%arg0: i32, %arg1: i32) -> (i32, i32, i32) {
    %c0_i32 = arith.constant 0 : i32
    %c0_i32_0 = arith.constant 0 : i32
    %c0_i32_1 = arith.constant 0 : i32
    %c0_i32_2 = arith.constant 0 : i32
    return %c0_i32, %c0_i32_0, %c0_i32_1 : i32, i32, i32
  }
  func.func @transform_3(%arg0: i32, %arg1: i32) -> (i32, i32) {
    %c0_i32 = arith.constant 0 : i32
    %c0_i32_0 = arith.constant 0 : i32
    %c0_i32_1 = arith.constant 0 : i32
    return %c0_i32, %c0_i32_0 : i32, i32
  }
  func.func @transform_4(%arg0: i32, %arg1: i32) -> (i32, i32, i32) {
    %c0_i32 = arith.constant 0 : i32
    %c0_i32_0 = arith.constant 0 : i32
    return %arg0, %c0_i32, %arg1 : i32, i32, i32
  }
}

module attributes {stable_mosaic.version = 11 : i64} {
  func.func @_conv_act_kernel(%arg0: i32, %arg1: i32, %arg2: memref<1x16x5xbf16, #tpu.memory_space<vmem>>, %arg3: memref<2x32x16xbf16, #tpu.memory_space<vmem>>, %arg4: memref<32x1xf32, #tpu.memory_space<vmem>>, %arg5: memref<1x32x4xbf16, #tpu.memory_space<vmem>>) attributes {dimension_semantics = [#tpu.dimension_semantics<parallel>, #tpu.dimension_semantics<parallel>], iteration_bounds = array<i64: 2, 1>, scalar_prefetch = 0 : i64, scratch_operands = 0 : i64, tpu.core_type = #tpu.core_type<tc>, window_params = [{transform_indices = @transform_0, window_bounds = array<i64: 1, 16, 5>}, {pipeline_mode = #tpu.pipeline_mode<synchronous>, transform_indices = @transform_1, window_bounds = array<i64: 2, 32, 16>}, {pipeline_mode = #tpu.pipeline_mode<synchronous>, transform_indices = @transform_2, window_bounds = array<i64: 32, 1>}, {transform_indices = @transform_3, window_bounds = array<i64: 1, 32, 4>}]} {
    %c0 = arith.constant 0 : index
    %c0_0 = arith.constant 0 : index
    %c0_1 = arith.constant 0 : index
    %0 = vector.load %arg2[%c0, %c0_0, %c0_1] : memref<1x16x5xbf16, #tpu.memory_space<vmem>>, vector<1x16x5xbf16>
    %1 = vector.shape_cast %0 : vector<1x16x5xbf16> to vector<16x5xbf16>
    %cst = arith.constant 0.000000e+00 : f32
    %2 = vector.broadcast %cst : f32 to vector<32x4xf32>
    %c0_2 = arith.constant 0 : index
    %c0_3 = arith.constant 0 : index
    %c0_4 = arith.constant 0 : index
    %3 = vector.load %arg3[%c0_2, %c0_3, %c0_4] : memref<2x32x16xbf16, #tpu.memory_space<vmem>>, vector<1x32x16xbf16>
    %4 = vector.shape_cast %3 : vector<1x32x16xbf16> to vector<32x16xbf16>
    %5 = vector.extract_strided_slice %1 {offsets = [0, 0], sizes = [16, 4], strides = [1, 1]} : vector<16x5xbf16> to vector<16x4xbf16>
    %cst_5 = arith.constant dense<0.000000e+00> : vector<32x4xf32>
    %6 = tpu.matmul %4, %5, %cst_5 {dimension_numbers = #tpu.dot_dimension_numbers<[1], [0], [0], [1], [0, 0, 1, 1], [], []>} : vector<32x16xbf16>, vector<16x4xbf16>, vector<32x4xf32> -> vector<32x4xf32>
    %7 = arith.addf %2, %6 : vector<32x4xf32>
    %c1 = arith.constant 1 : index
    %c0_6 = arith.constant 0 : index
    %c0_7 = arith.constant 0 : index
    %8 = vector.load %arg3[%c1, %c0_6, %c0_7] : memref<2x32x16xbf16, #tpu.memory_space<vmem>>, vector<1x32x16xbf16>
    %9 = vector.shape_cast %8 : vector<1x32x16xbf16> to vector<32x16xbf16>
    %10 = vector.extract_strided_slice %1 {offsets = [0, 1], sizes = [16, 4], strides = [1, 1]} : vector<16x5xbf16> to vector<16x4xbf16>
    %cst_8 = arith.constant dense<0.000000e+00> : vector<32x4xf32>
    %11 = tpu.matmul %9, %10, %cst_8 {dimension_numbers = #tpu.dot_dimension_numbers<[1], [0], [0], [1], [0, 0, 1, 1], [], []>} : vector<32x16xbf16>, vector<16x4xbf16>, vector<32x4xf32> -> vector<32x4xf32>
    %12 = arith.addf %7, %11 : vector<32x4xf32>
    %c0_9 = arith.constant 0 : index
    %c0_10 = arith.constant 0 : index
    %13 = vector.load %arg4[%c0_9, %c0_10] : memref<32x1xf32, #tpu.memory_space<vmem>>, vector<32x1xf32>
    %14 = vector.broadcast %13 : vector<32x1xf32> to vector<32x4xf32>
    %15 = arith.addf %12, %14 : vector<32x4xf32>
    %cst_11 = arith.constant 5.000000e-01 : f32
    %16 = vector.broadcast %cst_11 : f32 to vector<32x4xf32>
    %17 = arith.mulf %16, %15 : vector<32x4xf32>
    %cst_12 = arith.constant 4.471500e-02 : f32
    %18 = vector.broadcast %cst_12 : f32 to vector<32x4xf32>
    %19 = arith.mulf %18, %15 : vector<32x4xf32>
    %20 = arith.mulf %19, %15 : vector<32x4xf32>
    %21 = arith.mulf %20, %15 : vector<32x4xf32>
    %22 = arith.addf %15, %21 : vector<32x4xf32>
    %cst_13 = arith.constant 0.797884583 : f32
    %23 = vector.broadcast %cst_13 : f32 to vector<32x4xf32>
    %24 = arith.mulf %23, %22 : vector<32x4xf32>
    %25 = math.tanh %24 : vector<32x4xf32>
    %cst_14 = arith.constant 1.000000e+00 : f32
    %26 = vector.broadcast %cst_14 : f32 to vector<32x4xf32>
    %27 = arith.addf %26, %25 : vector<32x4xf32>
    %28 = arith.mulf %17, %27 : vector<32x4xf32>
    %29 = arith.truncf %28 : vector<32x4xf32> to vector<32x4xbf16>
    %c0_15 = arith.constant 0 : index
    %c0_16 = arith.constant 0 : index
    %c0_17 = arith.constant 0 : index
    %30 = vector.load %arg5[%c0_15, %c0_16, %c0_17] : memref<1x32x4xbf16, #tpu.memory_space<vmem>>, vector<1x32x4xbf16>
    %31 = vector.shape_cast %30 : vector<1x32x4xbf16> to vector<32x4xbf16>
    %32 = vector.shape_cast %29 : vector<32x4xbf16> to vector<1x32x4xbf16>
    tpu.vector_store %arg5[%c0_15, %c0_16, %c0_17], %32 {strides = array<i32>} : memref<1x32x4xbf16, #tpu.memory_space<vmem>>, vector<1x32x4xbf16>,
    return
  }
  func.func @transform_0(%arg0: i32, %arg1: i32) -> (i32, i32, i32) {
    %c0_i32 = arith.constant 0 : i32
    %c0_i32_0 = arith.constant 0 : i32
    %c0_i32_1 = arith.constant 0 : i32
    return %arg0, %c0_i32, %c0_i32_0 : i32, i32, i32
  }
  func.func @transform_1(%arg0: i32, %arg1: i32) -> (i32, i32, i32) {
    %c0_i32 = arith.constant 0 : i32
    %c0_i32_0 = arith.constant 0 : i32
    %c0_i32_1 = arith.constant 0 : i32
    %c0_i32_2 = arith.constant 0 : i32
    return %c0_i32, %c0_i32_0, %c0_i32_1 : i32, i32, i32
  }
  func.func @transform_2(%arg0: i32, %arg1: i32) -> (i32, i32) {
    %c0_i32 = arith.constant 0 : i32
    %c0_i32_0 = arith.constant 0 : i32
    %c0_i32_1 = arith.constant 0 : i32
    return %c0_i32, %c0_i32_0 : i32, i32
  }
  func.func @transform_3(%arg0: i32, %arg1: i32) -> (i32, i32, i32) {
    %c0_i32 = arith.constant 0 : i32
    %c0_i32_0 = arith.constant 0 : i32
    return %arg0, %c0_i32, %arg1 : i32, i32, i32
  }
}

module attributes {stable_mosaic.version = 11 : i64} {
  func.func @_conv_act_kernel(%arg0: i32, %arg1: i32, %arg2: memref<1x8x18xbf16, #tpu.memory_space<vmem>>, %arg3: memref<1x8x18xbf16, #tpu.memory_space<vmem>>, %arg4: memref<3x16x8xbf16, #tpu.memory_space<vmem>>, %arg5: memref<16x1xf32, #tpu.memory_space<vmem>>, %arg6: memref<1x8x16xbf16, #tpu.memory_space<vmem>>) attributes {dimension_semantics = [#tpu.dimension_semantics<parallel>, #tpu.dimension_semantics<parallel>], iteration_bounds = array<i64: 2, 1>, scalar_prefetch = 0 : i64, scratch_operands = 0 : i64, tpu.core_type = #tpu.core_type<tc>, window_params = [{transform_indices = @transform_0, window_bounds = array<i64: 1, 8, 18>}, {transform_indices = @transform_1, window_bounds = array<i64: 1, 8, 18>}, {pipeline_mode = #tpu.pipeline_mode<synchronous>, transform_indices = @transform_2, window_bounds = array<i64: 3, 16, 8>}, {pipeline_mode = #tpu.pipeline_mode<synchronous>, transform_indices = @transform_3, window_bounds = array<i64: 16, 1>}, {transform_indices = @transform_4, window_bounds = array<i64: 1, 8, 16>}]} {
    %c0 = arith.constant 0 : index
    %c0_0 = arith.constant 0 : index
    %c0_1 = arith.constant 0 : index
    %0 = vector.load %arg2[%c0, %c0_0, %c0_1] : memref<1x8x18xbf16, #tpu.memory_space<vmem>>, vector<1x8x18xbf16>
    %1 = vector.shape_cast %0 : vector<1x8x18xbf16> to vector<8x18xbf16>
    %c0_2 = arith.constant 0 : index
    %c0_3 = arith.constant 0 : index
    %c0_4 = arith.constant 0 : index
    %2 = vector.load %arg3[%c0_2, %c0_3, %c0_4] : memref<1x8x18xbf16, #tpu.memory_space<vmem>>, vector<1x8x18xbf16>
    %3 = vector.shape_cast %2 : vector<1x8x18xbf16> to vector<8x18xbf16>
    %4 = arith.addf %1, %3 : vector<8x18xbf16>
    %cst = arith.constant 0.000000e+00 : f32
    %5 = vector.broadcast %cst : f32 to vector<16x16xf32>
    %c0_5 = arith.constant 0 : index
    %c0_6 = arith.constant 0 : index
    %c0_7 = arith.constant 0 : index
    %6 = vector.load %arg4[%c0_5, %c0_6, %c0_7] : memref<3x16x8xbf16, #tpu.memory_space<vmem>>, vector<1x16x8xbf16>
    %7 = vector.shape_cast %6 : vector<1x16x8xbf16> to vector<16x8xbf16>
    %8 = vector.extract_strided_slice %4 {offsets = [0, 0], sizes = [8, 16], strides = [1, 1]} : vector<8x18xbf16> to vector<8x16xbf16>
    %cst_8 = arith.constant dense<0.000000e+00> : vector<16x16xf32>
    %9 = tpu.matmul %7, %8, %cst_8 {dimension_numbers = #tpu.dot_dimension_numbers<[1], [0], [0], [1], [0, 0, 1, 1], [], []>} : vector<16x8xbf16>, vector<8x16xbf16>, vector<16x16xf32> -> vector<16x16xf32>
    %10 = arith.addf %5, %9 : vector<16x16xf32>
    %c1 = arith.constant 1 : index
    %c0_9 = arith.constant 0 : index
    %c0_10 = arith.constant 0 : index
    %11 = vector.load %arg4[%c1, %c0_9, %c0_10] : memref<3x16x8xbf16, #tpu.memory_space<vmem>>, vector<1x16x8xbf16>
    %12 = vector.shape_cast %11 : vector<1x16x8xbf16> to vector<16x8xbf16>
    %13 = vector.extract_strided_slice %4 {offsets = [0, 1], sizes = [8, 16], strides = [1, 1]} : vector<8x18xbf16> to vector<8x16xbf16>
    %cst_11 = arith.constant dense<0.000000e+00> : vector<16x16xf32>
    %14 = tpu.matmul %12, %13, %cst_11 {dimension_numbers = #tpu.dot_dimension_numbers<[1], [0], [0], [1], [0, 0, 1, 1], [], []>} : vector<16x8xbf16>, vector<8x16xbf16>, vector<16x16xf32> -> vector<16x16xf32>
    %15 = arith.addf %10, %14 : vector<16x16xf32>
    %c2 = arith.constant 2 : index
    %c0_12 = arith.constant 0 : index
    %c0_13 = arith.constant 0 : index
    %16 = vector.load %arg4[%c2, %c0_12, %c0_13] : memref<3x16x8xbf16, #tpu.memory_space<vmem>>, vector<1x16x8xbf16>
    %17 = vector.shape_cast %16 : vector<1x16x8xbf16> to vector<16x8xbf16>
    %18 = vector.extract_strided_slice %4 {offsets = [0, 2], sizes = [8, 16], strides = [1, 1]} : vector<8x18xbf16> to vector<8x16xbf16>
    %cst_14 = arith.constant dense<0.000000e+00> : vector<16x16xf32>
    %19 = tpu.matmul %17, %18, %cst_14 {dimension_numbers = #tpu.dot_dimension_numbers<[1], [0], [0], [1], [0, 0, 1, 1], [], []>} : vector<16x8xbf16>, vector<8x16xbf16>, vector<16x16xf32> -> vector<16x16xf32>
    %20 = arith.addf %15, %19 : vector<16x16xf32>
    %c0_15 = arith.constant 0 : index
    %c0_16 = arith.constant 0 : index
    %21 = vector.load %arg5[%c0_15, %c0_16] : memref<16x1xf32, #tpu.memory_space<vmem>>, vector<16x1xf32>
    %22 = vector.broadcast %21 : vector<16x1xf32> to vector<16x16xf32>
    %23 = arith.addf %20, %22 : vector<16x16xf32>
    %24 = vector.extract_strided_slice %23 {offsets = [0, 0], sizes = [8, 16], strides = [1, 1]} : vector<16x16xf32> to vector<8x16xf32>
    %25 = vector.extract_strided_slice %23 {offsets = [8, 0], sizes = [8, 16], strides = [1, 1]} : vector<16x16xf32> to vector<8x16xf32>
    %26 = arith.negf %25 : vector<8x16xf32>
    %27 = math.exp %26 : vector<8x16xf32>
    %cst_17 = arith.constant 1.000000e+00 : f32
    %28 = vector.broadcast %cst_17 : f32 to vector<8x16xf32>
    %29 = arith.addf %28, %27 : vector<8x16xf32>
    %30 = arith.divf %28, %29 : vector<8x16xf32>
    %31 = arith.mulf %24, %30 : vector<8x16xf32>
    %32 = arith.truncf %31 : vector<8x16xf32> to vector<8x16xbf16>
    %c0_18 = arith.constant 0 : index
    %c0_19 = arith.constant 0 : index
    %c0_20 = arith.constant 0 : index
    %33 = vector.load %arg6[%c0_18, %c0_19, %c0_20] : memref<1x8x16xbf16, #tpu.memory_space<vmem>>, vector<1x8x16xbf16>
    %34 = vector.shape_cast %33 : vector<1x8x16xbf16> to vector<8x16xbf16>
    %35 = vector.shape_cast %32 : vector<8x16xbf16> to vector<1x8x16xbf16>
    tpu.vector_store %arg6[%c0_18, %c0_19, %c0_20], %35 {strides = array<i32>} : memref<1x8x16xbf16, #tpu.memory_space<vmem>>, vector<1x8x16xbf16>,
    return
  }
  func.func @transform_0(%arg0: i32, %arg1: i32) -> (i32, i32, i32) {
    %c0_i32 = arith.constant 0 : i32
    %c0_i32_0 = arith.constant 0 : i32
    %c0_i32_1 = arith.constant 0 : i32
    return %arg0, %c0_i32, %c0_i32_0 : i32, i32, i32
  }
  func.func @transform_1(%arg0: i32, %arg1: i32) -> (i32, i32, i32) {
    %c0_i32 = arith.constant 0 : i32
    %c0_i32_0 = arith.constant 0 : i32
    %c0_i32_1 = arith.constant 0 : i32
    return %arg0, %c0_i32, %c0_i32_0 : i32, i32, i32
  }
  func.func @transform_2(%arg0: i32, %arg1: i32) -> (i32, i32, i32) {
    %c0_i32 = arith.constant 0 : i32
    %c0_i32_0 = arith.constant 0 : i32
    %c0_i32_1 = arith.constant 0 : i32
    %c0_i32_2 = arith.constant 0 : i32
    return %c0_i32, %c0_i32_0, %c0_i32_1 : i32, i32, i32
  }
  func.func @transform_3(%arg0: i32, %arg1: i32) -> (i32, i32) {
    %c0_i32 = arith.constant 0 : i32
    %c0_i32_0 = arith.constant 0 : i32
    %c0_i32_1 = arith.constant 0 : i32
    return %c0_i32, %c0_i32_0 : i32, i32
  }
  func.func @transform_4(%arg0: i32, %arg1: i32) -> (i32, i32, i32) {
    %c0_i32 = arith.constant 0 : i32
    %c0_i32_0 = arith.constant 0 : i32
    return %arg0, %c0_i32, %arg1 : i32, i32, i32
  }
}

module attributes {stable_mosaic.version = 11 : i64} {
  func.func @_conv_act_kernel(%arg0: i32, %arg1: i32, %arg2: memref<1x8x18xbf16, #tpu.memory_space<vmem>>, %arg3: memref<2x16x8xbf16, #tpu.memory_space<vmem>>, %arg4: memref<16x1xf32, #tpu.memory_space<vmem>>, %arg5: memref<1x16x17xf32, #tpu.memory_space<vmem>>) attributes {dimension_semantics = [#tpu.dimension_semantics<parallel>, #tpu.dimension_semantics<parallel>], iteration_bounds = array<i64: 2, 1>, scalar_prefetch = 0 : i64, scratch_operands = 0 : i64, tpu.core_type = #tpu.core_type<tc>, window_params = [{transform_indices = @transform_0, window_bounds = array<i64: 1, 8, 18>}, {pipeline_mode = #tpu.pipeline_mode<synchronous>, transform_indices = @transform_1, window_bounds = array<i64: 2, 16, 8>}, {pipeline_mode = #tpu.pipeline_mode<synchronous>, transform_indices = @transform_2, window_bounds = array<i64: 16, 1>}, {transform_indices = @transform_3, window_bounds = array<i64: 1, 16, 17>}]} {
    %c0 = arith.constant 0 : index
    %c0_0 = arith.constant 0 : index
    %c0_1 = arith.constant 0 : index
    %0 = vector.load %arg2[%c0, %c0_0, %c0_1] : memref<1x8x18xbf16, #tpu.memory_space<vmem>>, vector<1x8x18xbf16>
    %1 = vector.shape_cast %0 : vector<1x8x18xbf16> to vector<8x18xbf16>
    %cst = arith.constant 0.000000e+00 : f32
    %2 = vector.broadcast %cst : f32 to vector<16x17xf32>
    %c0_2 = arith.constant 0 : index
    %c0_3 = arith.constant 0 : index
    %c0_4 = arith.constant 0 : index
    %3 = vector.load %arg3[%c0_2, %c0_3, %c0_4] : memref<2x16x8xbf16, #tpu.memory_space<vmem>>, vector<1x16x8xbf16>
    %4 = vector.shape_cast %3 : vector<1x16x8xbf16> to vector<16x8xbf16>
    %5 = vector.extract_strided_slice %1 {offsets = [0, 0], sizes = [8, 17], strides = [1, 1]} : vector<8x18xbf16> to vector<8x17xbf16>
    %cst_5 = arith.constant dense<0.000000e+00> : vector<16x17xf32>
    %6 = tpu.matmul %4, %5, %cst_5 {dimension_numbers = #tpu.dot_dimension_numbers<[1], [0], [0], [1], [0, 0, 1, 1], [], []>} : vector<16x8xbf16>, vector<8x17xbf16>, vector<16x17xf32> -> vector<16x17xf32>
    %7 = arith.addf %2, %6 : vector<16x17xf32>
    %c1 = arith.constant 1 : index
    %c0_6 = arith.constant 0 : index
    %c0_7 = arith.constant 0 : index
    %8 = vector.load %arg3[%c1, %c0_6, %c0_7] : memref<2x16x8xbf16, #tpu.memory_space<vmem>>, vector<1x16x8xbf16>
    %9 = vector.shape_cast %8 : vector<1x16x8xbf16> to vector<16x8xbf16>
    %10 = vector.extract_strided_slice %1 {offsets = [0, 1], sizes = [8, 17], strides = [1, 1]} : vector<8x18xbf16> to vector<8x17xbf16>
    %cst_8 = arith.constant dense<0.000000e+00> : vector<16x17xf32>
    %11 = tpu.matmul %9, %10, %cst_8 {dimension_numbers = #tpu.dot_dimension_numbers<[1], [0], [0], [1], [0, 0, 1, 1], [], []>} : vector<16x8xbf16>, vector<8x17xbf16>, vector<16x17xf32> -> vector<16x17xf32>
    %12 = arith.addf %7, %11 : vector<16x17xf32>
    %c0_9 = arith.constant 0 : index
    %c0_10 = arith.constant 0 : index
    %13 = vector.load %arg4[%c0_9, %c0_10] : memref<16x1xf32, #tpu.memory_space<vmem>>, vector<16x1xf32>
    %14 = vector.broadcast %13 : vector<16x1xf32> to vector<16x17xf32>
    %15 = arith.addf %12, %14 : vector<16x17xf32>
    %c0_11 = arith.constant 0 : index
    %c0_12 = arith.constant 0 : index
    %c0_13 = arith.constant 0 : index
    %16 = vector.load %arg5[%c0_11, %c0_12, %c0_13] : memref<1x16x17xf32, #tpu.memory_space<vmem>>, vector<1x16x17xf32>
    %17 = vector.shape_cast %16 : vector<1x16x17xf32> to vector<16x17xf32>
    %18 = vector.shape_cast %15 : vector<16x17xf32> to vector<1x16x17xf32>
    tpu.vector_store %arg5[%c0_11, %c0_12, %c0_13], %18 {strides = array<i32>} : memref<1x16x17xf32, #tpu.memory_space<vmem>>, vector<1x16x17xf32>,
    return
  }
  func.func @transform_0(%arg0: i32, %arg1: i32) -> (i32, i32, i32) {
    %c0_i32 = arith.constant 0 : i32
    %c0_i32_0 = arith.constant 0 : i32
    %c0_i32_1 = arith.constant 0 : i32
    return %arg0, %c0_i32, %c0_i32_0 : i32, i32, i32
  }
  func.func @transform_1(%arg0: i32, %arg1: i32) -> (i32, i32, i32) {
    %c0_i32 = arith.constant 0 : i32
    %c0_i32_0 = arith.constant 0 : i32
    %c0_i32_1 = arith.constant 0 : i32
    %c0_i32_2 = arith.constant 0 : i32
    return %c0_i32, %c0_i32_0, %c0_i32_1 : i32, i32, i32
  }
  func.func @transform_2(%arg0: i32, %arg1: i32) -> (i32, i32) {
    %c0_i32 = arith.constant 0 : i32
    %c0_i32_0 = arith.constant 0 : i32
    %c0_i32_1 = arith.constant 0 : i32
    return %c0_i32, %c0_i32_0 : i32, i32
  }
  func.func @transform_3(%arg0: i32, %arg1: i32) -> (i32, i32, i32) {
    %c0_i32 = arith.constant 0 : i32
    %c0_i32_0 = arith.constant 0 : i32
    return %arg0, %c0_i32, %arg1 : i32, i32, i32
  }
}

</mosaic_0001>

<bundles_post_ra>
// kernel: drumamba_forward.15
= control target key start
LH: loop header
LB: loop body
LE: loop exit
PB: predicated region body
PF: predicated region fallthrough
CT: control target
= control target key end

     0   :  { %s437_s12 = smov 0   ;;  %s439_s13 = smov 0   ;;  %s482_s0 = inlined_call_operand.vmem [shape: bf16[2,8,16], index: 0, kind: input, shape index: {}]   ;;  %s483_s1 = inlined_call_operand.vmem [shape: bf16[1,16,8], index: 1, kind: input, shape index: {}]   ;;  %s484_s2 = inlined_call_operand.vmem [shape: f32[16,1], index: 2, kind: input, shape index: {}]   ;;  %s485_s3 = inlined_call_operand.vmem [shape: bf16[2,8,16], index: 3, kind: output, shape index: {}]  }
   0x1   :  { %s441_s14 = smov 0  }
   0x2 LB: > { %s25_s15 = sadd.s32 1, %s408_s13  ;;  %p341_p0 = scmp.ge.s32.totalorder %s412_s14, 1  ;;  %s412_s14 = sphi %s441_s14, %s13_s14   ;;  %s408_s13 = sphi %s439_s13, %s487_s13   ;;  %s404_s12 = sphi %s437_s12, %s486_s12  }
   0x3   : > { %p27_p1 = scmp.ge.s32.totalorder %s25_s15, 2  ;;  %p150_p2 = scmp.lt.s32.totalorder %s412_s14, 3 }
   0x5   : > { %s489_s15 = smov (%p27_p1, %s25_s15), 0  ;;  %p151_p3 = pnand %p341_p0, %p150_p2 }
   0x6   : > { %p175_p4 = scmp.lt.s32.totalorder (!%p151_p3), %s404_s12, 1 }
   0x7   : > { %154 = sbr.rel (%p151_p3) target bundleno = 256 (0x100), region = 32 }
   0xc   : > { %v414_v0 = vmov 0.0   ;;  %vm415_vm0 = vmmov 0   ;;  %v191_v1 = vld [vmem:[%s484_s2 + $0x8] sm:$0xff]  ;;  %s491_s12 = smov (!%p175_p4, %s404_s12), 1  ;;  %v416_v2 = vmov 0   ;;  %vm211_vm1 = vcmask 1043456  }
   0xd   : > { %351 = vmatprep.subr.bf16.mxu0 %v414_v0  ;;  %353 = vmatprep.mubr.msk.bf16.mxu0 %vm415_vm0, %v414_v0  ;;  %s342_s18 = sshll.u32 %s491_s12, 2  ;;  %v190_v3 = vld [vmem:[%s484_s2] sm:$0xff]  ;;  %vm207_vm2 = vcmask 64512   ;;  %vm264_vm3 = vcmask 125952  }
   0xe   : > { %384 = vset.pattern.permute.xlu0 %v416_v2  ;;  %s178_s23 = scalar_lea.vmem %s482_s0, %s342_s18  ;;  %v385_v6 = vld [vmem:[%s483_s1] sm:$0xff]   ;;  %s185_s28 = scalar_lea.vmem %s485_s3, %s342_s18 }
   0xf   : > { %199 = vperm.xlu0 %384, %v191_v1   ;;  %v187_v4 = vld [vmem:[%s178_s23] sm:$0xf] }
  0x10   : > { %v213_v5 = vsel %vm211_vm1, %v187_v4, 0 }
  0x11   : > { %352 = vmatpush3.bf16.msra.mxu0 %v213_v5 }
  0x13   : > { %194 = vperm.xlu0 %384, %v190_v3  }
  0x14   : > { %354 = vmatmul.mubr.msk.bf16.vlgmr.msra.gmra.mxu0 %vm207_vm2, %v385_v6 }
  0x8a   : > { %v200_v9 = vpop.permute.xlu0 %199 }
  0x8e   : > { %v195_v16 = vpop.permute.xlu0 %194 }
  0xd4   : > { %v249_v7 = vpop.f32.mrf.mxu0 }
  0xd5   : > { %v250_v17 = vadd.f32 %v249_v7, %v195_v16 }
  0xd6   : > { %v355_v8 = vpop.f32.mrf.mxu0 }
  0xd8   : > { %v252_v10 = vpop.f32.mrf.mxu0 }
  0xd9   : > { %v253_v11 = vadd.f32 %v252_v10, %v200_v9 }
  0xda   : > { %v356_v12 = vpop.f32.mrf.mxu0 }
  0xdb   : > { %v346_v13 = vmul.f32 -1.442695, %v253_v11 }
  0xdd   : > { %386 = vpow2.f32 %v346_v13 }
  0xea   : > { %v387_v14 = vpop.eup %386 }
  0xeb   : > { %v259_v15 = vadd.f32 1.0, %v387_v14 }
  0xed   : > { %388 = vrcp.f32 %v259_v15 }
  0xfa   : > { %v389_v18 = vpop.eup %388 }
  0xfb   : > { %v262_v19 = vmul.f32 %v389_v18, %v250_v17 }
  0xfd   : > { %v263_v20 = vpack.c.bf16 %v262_v19, %v262_v19 }
  0xff   : > { %265 = vst.msk [vmem:[%s185_s28] sm:$0xf] %vm264_vm3, %v263_v20 }
 0x100 PF: > { %s13_s14 = sadd.s32 1, %s412_s14   ;;  %s486_s12 = smov %s408_s13 }
 0x101   : > { %p10_p5 = scmp.ge.s32.totalorder %s13_s14, 4   ;;  %s487_s13 = smov %s489_s15 }
 0x103   :  { %12 = sbr.rel (!%p10_p5) target bundleno = 2 (0x2), region = 62 }

// kernel: drumamba_forward.12
= control target key start
LH: loop header
LB: loop body
LE: loop exit
PB: predicated region body
PF: predicated region fallthrough
CT: control target
= control target key end

     0   :  { %s489_s12 = smov 0   ;;  %s491_s13 = smov 0   ;;  %s538_s0 = inlined_call_operand.vmem [shape: bf16[2,8,17], index: 0, kind: input, shape index: {}]   ;;  %s539_s1 = inlined_call_operand.vmem [shape: bf16[2,8,8], index: 1, kind: input, shape index: {}]   ;;  %s540_s2 = inlined_call_operand.vmem [shape: f32[8,1], index: 2, kind: input, shape index: {}]   ;;  %s541_s3 = inlined_call_operand.vmem [shape: bf16[2,8,16], index: 3, kind: output, shape index: {}]  }
   0x1   :  { %s493_s14 = smov 0  }
   0x2 LB: > { %s25_s15 = sadd.s32 1, %s459_s13  ;;  %p384_p0 = scmp.ge.s32.totalorder %s463_s14, 1  ;;  %s463_s14 = sphi %s493_s14, %s13_s14   ;;  %s459_s13 = sphi %s491_s13, %s543_s13   ;;  %s455_s12 = sphi %s489_s12, %s542_s12  }
   0x3   : > { %p27_p1 = scmp.ge.s32.totalorder %s25_s15, 2  ;;  %p150_p2 = scmp.lt.s32.totalorder %s463_s14, 3 }
   0x5   : > { %s545_s15 = smov (%p27_p1, %s25_s15), 0  ;;  %p151_p3 = pnand %p384_p0, %p150_p2 }
   0x6   : > { %p175_p4 = scmp.lt.s32.totalorder (!%p151_p3), %s455_s12, 1  ;;  %s468_s22 = smov (!%p151_p3), 127  }
   0x7   : > { %154 = sbr.rel (%p151_p3) target bundleno = 365 (0x16d), region = 32 }
   0xc   : > { %v465_v0 = vmov 0.0   ;;  %vm466_vm0 = vmmov 0   ;;  %s547_s12 = smov (!%p175_p4, %s455_s12), 1  ;;  %v467_v1 = vmov 0   ;;  %vm200_vm1 = vcmask 1043456   ;;  %v290_v6 = vld [vmem:[%s540_s2] sm:$0xff] }
   0xd   : > { %403 = vmatprep.subr.bf16.mxu1 %v465_v0  ;;  %405 = vmatprep.mubr.msk.bf16.mxu1 %vm466_vm0, %v465_v0  ;;  %s385_s16 = sshll.u32 %s547_s12, 2  ;;  %v188_v5 = vld [vmem:[%s539_s1] sm:$0xf]  ;;  %vm196_vm2 = vcmask 64512   ;;  %v387_v9 = vld [vmem:[%s539_s1 + $0x4] sm:$0xf] }
   0xe   : > { %397 = vmatprep.subr.bf16.mxu0 %v465_v0  ;;  %399 = vmatprep.mubr.msk.bf16.mxu0 %vm466_vm0, %v465_v0  ;;  %s178_s19 = scalar_lea.vmem %s538_s0, %s385_s16  ;;  %s185_s29 = scalar_lea.vmem %s541_s3, %s385_s16  ;;  %vm307_vm3 = vcmask 125952  }
   0xf   : > { %437 = vset.pattern.permute.xlu0 %v467_v1  ;;  %v187_v2 = vld [vmem:[%s178_s19] sm:$0xf] }
  0x10   : > { %v388_v3 = vcombine.low %v187_v2, %v187_v2  ;;  %v248_v4 = vsel %vm200_vm1, %v187_v2, 0 }
  0x11   : > { %404 = vmatpush3.bf16.msra.mxu1 %v248_v4 }
  0x12   : > { %194 = vrot.lane.b32.xlu0 %v388_v3, %s468_s22 }
  0x14   : > { %406 = vmatmul.mubr.msk.bf16.vlgmr.msra.gmra.mxu1 %vm196_vm2, %v188_v5 }
  0x16   : > { %293 = vperm.xlu0 %437, %v290_v6  }
  0x84   : > { %v195_v7 = vpop.permute.xlu0 %194 }
  0x85   : > { %v202_v8 = vsel %vm200_vm1, %v195_v7, 0 }
  0x86   : > { %398 = vmatpush3.bf16.msra.mxu0 %v202_v8 }
  0x89   : > { %400 = vmatmul.mubr.msk.bf16.vlgmr.msra.gmra.mxu0 %vm196_vm2, %v387_v9 }
  0x91   : > { %v294_v15 = vpop.permute.xlu0 %293 }
  0xd4   : > { %v284_v10 = vpop.f32.mrf.mxu1 }
  0xd6   : > { %v407_v11 = vpop.f32.mrf.mxu1 }
  0xd8   : > { %v287_v12 = vpop.f32.mrf.mxu1 }
  0xda   : > { %v408_v13 = vpop.f32.mrf.mxu1 }
 0x149   : > { %v238_v14 = vpop.f32.mrf.mxu0 }
 0x14a   : > { %v285_v16 = vadd.f32 %v284_v10, %v238_v14 }
 0x14b   : > { %v401_v17 = vpop.f32.mrf.mxu0 }
 0x14c   : > { %v296_v18 = vadd.f32 %v294_v15, %v285_v16 }
 0x14d   : > { %v241_v19 = vpop.f32.mrf.mxu0 }
 0x14e   : > { %v298_v20 = vmul.f32 0.044715, %v296_v18  ;;  %v297_v27 = vmul.f32 0.5, %v296_v18 }
 0x14f   : > { %v402_v21 = vpop.f32.mrf.mxu0 }
 0x150   : > { %v299_v22 = vmul.f32 %v298_v20, %v296_v18 }
 0x152   : > { %v300_v23 = vmul.f32 %v299_v22, %v296_v18 }
 0x154   : > { %v301_v24 = vadd.f32 %v300_v23, %v296_v18 }
 0x156   : > { %v302_v25 = vmul.f32 0.7978846, %v301_v24 }
 0x158   : > { %439 = vtanh.f32 %v302_v25 }
 0x165   : > { %v440_v26 = vpop.eup %439 }
 0x166   : > { %v304_v28 = vadd.f32 1.0, %v440_v26 }
 0x168   : > { %v305_v29 = vmul.f32 %v304_v28, %v297_v27 }
 0x16a   : > { %v306_v30 = vpack.c.bf16 %v305_v29, %v305_v29 }
 0x16c   : > { %308 = vst.msk [vmem:[%s185_s29] sm:$0xf] %vm307_vm3, %v306_v30 }
 0x16d PF: > { %s13_s14 = sadd.s32 1, %s463_s14   ;;  %s542_s12 = smov %s459_s13 }
 0x16e   : > { %p10_p5 = scmp.ge.s32.totalorder %s13_s14, 4   ;;  %s543_s13 = smov %s545_s15 }
 0x170   :  { %12 = sbr.rel (!%p10_p5) target bundleno = 2 (0x2), region = 63 }

// kernel: drumamba_forward.13
= control target key start
LH: loop header
LB: loop body
LE: loop exit
PB: predicated region body
PF: predicated region fallthrough
CT: control target
= control target key end

     0   :  { %s936_s13 = smov 0   ;;  %s1026_s0 = inlined_call_operand.vmem [shape: bf16[2,8,18], index: 0, kind: input, shape index: {}]   ;;  %s1027_s1 = inlined_call_operand.vmem [shape: bf16[3,2,8], index: 1, kind: input, shape index: {}]   ;;  %s1028_s2 = inlined_call_operand.vmem [shape: f32[2,1], index: 2, kind: input, shape index: {}]   ;;  %s1029_s3 = inlined_call_operand.vmem [shape: f32[2,1], index: 3, kind: input, shape index: {}]   ;;  %s1030_s4 = inlined_call_operand.vmem [shape: f32[2,1], index: 4, kind: input, shape index: {}]   ;;  %s1031_s5 = inlined_call_operand.vmem [shape: bf16[16,2], index: 5, kind: input, shape index: {}]   ;;  %s1032_s6 = inlined_call_operand.vmem [shape: f32[16,1], index: 6, kind: input, shape index: {}]   ;;  %s1033_s7 = inlined_call_operand.vmem [shape: f32[16,1], index: 7, kind: input, shape index: {}]   ;;  %s1034_s8 = inlined_call_operand.vmem [shape: f32[16,1], index: 8, kind: input, shape index: {}]   ;;  %s1035_s9 = inlined_call_operand.vmem [shape: f32[8,1], index: 9, kind: input, shape index: {}]   ;;  %s1036_s10 = inlined_call_operand.vmem [shape: bf16[2,8,16], index: 10, kind: output, shape index: {}]  }
   0x1 LB: > { %s787_s14 = sadd.s32 4294967295, %s873_s13   ;;  %p791_p0 = scmp.ge.s32.totalorder %s873_s13, 1  ;;  %s873_s13 = sphi %s936_s13, %s20_s13  }
   0x2   : > { %p311_p1 = scmp.lt.s32.totalorder %s873_s13, 3 }
   0x4   : > { %p312_p2 = pnand %p791_p0, %p311_p1 }
   0x5   : > { %p347_p3 = scmp.lt.s32.totalorder (!%p312_p2), %s787_s14, 1  ;;  %s877_s23 = smov (!%p312_p2), 127  }
   0x6   : > { %315 = sbr.rel (%p312_p2) target bundleno = 1767 (0x6e7), region = 60  ;;  %s879_s24 = smov (!%p312_p2), 126  }
   0x7   : > { %s880_s16 = smov (!%p312_p2), 1  }
   0xb   : > { %v875_v0 = vmov 0.0   ;;  %s1038_s14 = smov (!%p347_p3, %s787_s14), 1  ;;  %vm876_vm0 = vmmov 0   ;;  %vm369_vm1 = vcmask 1043456   ;;  %vm365_vm2 = vcmask 64512   ;;  %v573_v31 = vld [vmem:[%s1032_s6] sm:$0xff] }
   0xc   : > { %815 = vmatprep.subr.bf16.mxu0 %v875_v0  ;;  %821 = vmatprep.subr.bf16.mxu1 %v875_v0  ;;  %s792_s15 = sshll.u32 %s1038_s14, 2  ;;  %v357_v4 = vld [vmem:[%s1027_s1] sm:$0x1]  ;;  %v878_v6 = vmov 0   ;;  %v794_v9 = vld [vmem:[%s1027_s1 + $0x1] sm:$0x1] }
   0xd   : > { %817 = vmatprep.mubr.msk.bf16.mxu0 %vm876_vm0, %v875_v0  ;;  %823 = vmatprep.mubr.msk.bf16.mxu1 %vm876_vm0, %v875_v0  ;;  %s350_s18 = scalar_lea.vmem %s1026_s0, %s792_s15  ;;  %v510_v5 = vld [vmem:[%s1028_s2] sm:$0x3]  ;;  %v798_v12 = vld [vmem:[%s1027_s1 + $0x2] sm:$0x1]  ;;  %vm517_vm3 = vcmask 123904   ;;  %v574_v32 = vld [vmem:[%s1032_s6 + $0x8] sm:$0xff]  ;;  %s354_s19 = scalar_lea.vmem %s1036_s10, %s792_s15 }
   0xe   : > { %v954_v1 = vld [vmem:[%s350_s18] sm:$0xf]  ;;  %853 = vset.pattern.permute.xlu1 %v878_v6  ;;  %854 = vset.pattern.permute.xlu0 %v878_v6  ;;  %vm521_vm4 = vcmask 1041408   ;;  %vm594_vm5 = vcmask 1040384   ;;  %vm590_vm6 = vcmask 15360   ;;  %vm639_vm7 = vcmask 130048  }
   0xf   : > { %v795_v2 = vcombine.low %v954_v1, %v954_v1  ;;  %v417_v3 = vsel %vm369_vm1, %v954_v1, 0  ;;  %513 = vperm.xlu1 %853, %v510_v5   ;;  %v554_v30 = vld [vmem:[%s1030_s4] sm:$0x3]  ;;  %vm732_vm8 = vcmask 125952  }
  0x10   : > { %822 = vmatpush3.bf16.msra.mxu1 %v417_v3  ;;  %v544_v55 = vld [vmem:[%s1029_s3] sm:$0x3] }
  0x11   : > { %363 = vrot.lane.b32.xlu0 %v795_v2, %s877_s23  ;;  %833 = vmatprep.subr.bf16.mxu1 %v875_v0 }
  0x13   : > { %824 = vmatmul.mubr.msk.bf16.vlgmr.msra.gmra.mxu1 %vm365_vm2, %v357_v4 }
  0x14   : > { %835 = vmatprep.mubr.msk.bf16.mxu1 %vm876_vm0, %v875_v0 }
  0x15   : > { %461 = vrot.lane.b32.xlu0 %v795_v2, %s879_s24 }
  0x83   : > { %v364_v7 = vpop.permute.xlu0 %363 }
  0x84   : > { %v371_v8 = vsel %vm369_vm1, %v364_v7, 0 }
  0x85   : > { %816 = vmatpush3.bf16.msra.mxu0 %v371_v8 }
  0x86   : > { %827 = vmatprep.subr.bf16.mxu0 %v875_v0 }
  0x87   : > { %v462_v10 = vpop.permute.xlu0 %461 }
  0x88   : > { %818 = vmatmul.mubr.msk.bf16.vlgmr.msra.gmra.mxu0 %vm365_vm2, %v794_v9  ;;  %v467_v11 = vsel %vm369_vm1, %v462_v10, 0  ;;  %v856_v10 = vld [vmem:[%s1031_s5] sm:$0xff]  }
  0x89   : > { %828 = vmatpush3.bf16.msra.mxu0 %v467_v11  ;;  %829 = vmatprep.mubr.msk.bf16.mxu0 %vm876_vm0, %v875_v0 }
  0x8a   : > { %v514_v23 = vpop.permute.xlu1 %513 }
  0x90   : > { %830 = vmatmul.mubr.msk.bf16.vlgmr.msra.gmra.mxu0 %vm365_vm2, %v798_v12 }
  0xd3   : > { %v453_v13 = vpop.f32.mrf.mxu1 }
  0xd5   : > { %v825_v14 = vpop.f32.mrf.mxu1 }
  0xd7   : > { %v456_v15 = vpop.f32.mrf.mxu1 }
  0xd9   : > { %v826_v16 = vpop.f32.mrf.mxu1 }
 0x148   : > { %v407_v17 = vpop.f32.mrf.mxu0 }
 0x149   : > { %v454_v21 = vadd.f32 %v453_v13, %v407_v17 }
 0x14a   : > { %v819_v18 = vpop.f32.mrf.mxu0 }
 0x14c   : > { %v410_v19 = vpop.f32.mrf.mxu0 }
 0x14e   : > { %v820_v20 = vpop.f32.mrf.mxu0 }
 0x150   : > { %v503_v22 = vpop.f32.mrf.mxu0 }
 0x151   : > { %v509_v24 = vadd.f32 %v503_v22, %v454_v21  ;;  %v692_v21 = vld [vmem:[%s1034_s8 + $0x8] sm:$0xff] }
 0x152   : > { %v831_v25 = vpop.f32.mrf.mxu0 }
 0x153   : > { %v516_v26 = vadd.f32 %v514_v23, %v509_v24 }
 0x154   : > { %v506_v27 = vpop.f32.mrf.mxu0 }
 0x155   : > { %v518_v28 = vsel %vm517_vm3, %v516_v26, 0.0 }
 0x156   : > { %519 = vadd.xlane.f32.xlu1 %v518_v28  ;;  %v832_v29 = vpop.f32.mrf.mxu0 }
 0x167   : > { %557 = vperm.xlu1 %853, %v554_v30  }
 0x16b   : > { %577 = vperm.xlu1 %853, %v573_v31  }
 0x16f   : > { %582 = vperm.xlu1 %853, %v574_v32  }
 0x1df   : > { %v520_v33 = vpop.xlane.xlu1 %519 }
 0x1e0   : > { %v522_v34 = vsel %vm521_vm4, %v520_v33, 0.0 }
 0x1e1   : > { %v523_v35 = vrot.slane %v522_v34, 4 }
 0x1e3   : > { %v524_v36 = vadd.f32 %v523_v35, %v522_v34  ;;  %v558_v60 = vpop.permute.xlu1 %557 }
 0x1e5   : > { %v525_v37 = vrot.slane %v524_v36, 2 }
 0x1e7   : > { %v526_v38 = vadd.f32 %v525_v37, %v524_v36  ;;  %v578_v11 = vpop.permute.xlu1 %577 }
 0x1e9   : > { %v527_v39 = vrot.slane %v526_v38, 1 }
 0x1eb   : > { %v528_v40 = vadd.f32 %v527_v39, %v526_v38  ;;  %v583_v16 = vpop.permute.xlu1 %582 }
 0x1ed   : > { %v530_v41 = vmul.f32 0.03125, %v528_v40 }
 0x1ef   : > { %v531_v42 = vsub.f32 %v516_v26, %v530_v41 }
 0x1f1   : > { %v532_v43 = vmul.f32 %v531_v42, %v531_v42 }
 0x1f3   : > { %v533_v44 = vsel %vm517_vm3, %v532_v43, 0.0 }
 0x1f4   : > { %534 = vadd.xlane.f32.xlu0 %v533_v44 }
 0x27d   : > { %v535_v45 = vpop.xlane.xlu0 %534 }
 0x27e   : > { %v536_v46 = vsel %vm521_vm4, %v535_v45, 0.0 }
 0x27f   : > { %v537_v47 = vrot.slane %v536_v46, 4 }
 0x281   : > { %v538_v48 = vadd.f32 %v537_v47, %v536_v46 }
 0x283   : > { %v539_v49 = vrot.slane %v538_v48, 2 }
 0x285   : > { %v540_v50 = vadd.f32 %v539_v49, %v538_v48  ;;  %v674_v49 = vld [vmem:[%s1033_s7 + $0x8] sm:$0xff] }
 0x287   : > { %v541_v51 = vrot.slane %v540_v50, 1 }
 0x289   : > { %v542_v52 = vadd.f32 %v541_v51, %v540_v50 }
 0x28b   : > { %v543_v53 = vmul.f32 0.03125, %v542_v52  ;;  %v673_v52 = vld [vmem:[%s1033_s7] sm:$0xff] }
 0x28d   : > { %v545_v54 = vadd.f32 1e-05, %v543_v53 }
 0x28f   : > { %857 = vrsqrt.f32 %v545_v54  ;;  %v691_v54 = vld [vmem:[%s1034_s8] sm:$0xff] }
 0x29c   : > { %v858_v56 = vpop.eup %857 }
 0x29d   : > { %v547_v57 = vmul.f32 %v858_v56, %v544_v55  ;;  %v713_v55 = vld [vmem:[%s1035_s9] sm:$0xff] }
 0x29f   : > { %550 = vperm.xlu0 %854, %v547_v57  }
 0x31a   : > { %v551_v58 = vpop.permute.xlu0 %550 }
 0x31b   : > { %v553_v59 = vmul.f32 %v551_v58, %v531_v42 }
 0x31d   : > { %v560_v61 = vadd.f32 %v558_v60, %v553_v59 }
 0x31f   : > { %v562_v62 = vmul.f32 0.044715, %v560_v61  ;;  %v561_v5 = vmul.f32 0.5, %v560_v61 }
 0x321   : > { %v563_v63 = vmul.f32 %v562_v62, %v560_v61 }
 0x323   : > { %v564_v0 = vmul.f32 %v563_v63, %v560_v61 }
 0x325   : > { %v565_v2 = vadd.f32 %v564_v0, %v560_v61 }
 0x327   : > { %v566_v3 = vmul.f32 0.7978846, %v565_v2 }
 0x329   : > { %859 = vtanh.f32 %v566_v3 }
 0x336   : > { %v860_v4 = vpop.eup %859 }
 0x337   : > { %v568_v6 = vadd.f32 1.0, %v860_v4 }
 0x339   : > { %v569_v7 = vmul.f32 %v568_v6, %v561_v5 }
 0x33b   : > { %v572_v8 = vpack.c.bf16 %v569_v7, %v569_v7 }
 0x33d   : > { %v596_v9 = vsel %vm594_vm5, %v572_v8, 0  ;;  %v712_v8 = vunpack.c.l.bf16 %v954_v1 }
 0x33e   : > { %834 = vmatpush3.bf16.msra.mxu1 %v596_v9 }
 0x341   : > { %836 = vmatmul.mubr.msk.bf16.vlgmr.msra.gmra.mxu1 %vm590_vm6, %v856_v10 }
 0x401   : > { %v632_v12 = vpop.f32.mrf.mxu1 }
 0x402   : > { %v633_v13 = vadd.f32 %v632_v12, %v578_v11 }
 0x403   : > { %v837_v14 = vpop.f32.mrf.mxu1 }
 0x404   : > { %v640_v15 = vsel %vm639_vm7, %v633_v13, 0.0 }
 0x405   : > { %v635_v17 = vpop.f32.mrf.mxu1  ;;  %641 = vadd.xlane.f32.xlu1 %v640_v15 }
 0x406   : > { %v636_v18 = vadd.f32 %v635_v17, %v583_v16 }
 0x407   : > { %v838_v19 = vpop.f32.mrf.mxu1 }
 0x408   : > { %v643_v20 = vsel %vm639_vm7, %v636_v18, 0.0 }
 0x409   : > { %644 = vadd.xlane.f32.xlu0 %v643_v20 }
 0x41f   : > { %700 = vperm.xlu0 %854, %v692_v21  }
 0x48e   : > { %v642_v22 = vpop.xlane.xlu1 %641 }
 0x492   : > { %v645_v23 = vpop.xlane.xlu0 %644 }
 0x493   : > { %v646_v24 = vadd.f32 %v645_v23, %v642_v22 }
 0x495   : > { %v647_v25 = vrot.slane %v646_v24, 4 }
 0x497   : > { %v648_v26 = vadd.f32 %v647_v25, %v646_v24 }
 0x499   : > { %v649_v27 = vrot.slane %v648_v26, 2 }
 0x49a   : > { %v701_v58 = vpop.permute.xlu0 %700 }
 0x49b   : > { %v650_v28 = vadd.f32 %v649_v27, %v648_v26 }
 0x49d   : > { %v651_v29 = vrot.slane %v650_v28, 1 }
 0x49f   : > { %v652_v30 = vadd.f32 %v651_v29, %v650_v28 }
 0x4a1   : > { %v654_v31 = vmul.f32 0.00390625, %v652_v30 }
 0x4a3   : > { %v655_v32 = vsub.f32 %v633_v13, %v654_v31  ;;  %v656_v33 = vsub.f32 %v636_v18, %v654_v31 }
 0x4a5   : > { %v657_v34 = vmul.f32 %v655_v32, %v655_v32  ;;  %v658_v36 = vmul.f32 %v656_v33, %v656_v33 }
 0x4a7   : > { %v659_v35 = vsel %vm639_vm7, %v657_v34, 0.0  ;;  %v662_v37 = vsel %vm639_vm7, %v658_v36, 0.0 }
 0x4a8   : > { %660 = vadd.xlane.f32.xlu1 %v659_v35 }
 0x4ac   : > { %663 = vadd.xlane.f32.xlu1 %v662_v37 }
 0x531   : > { %v661_v38 = vpop.xlane.xlu1 %660 }
 0x535   : > { %v664_v39 = vpop.xlane.xlu1 %663 }
 0x536   : > { %v665_v40 = vadd.f32 %v664_v39, %v661_v38 }
 0x538   : > { %v666_v41 = vrot.slane %v665_v40, 4 }
 0x53a   : > { %v667_v42 = vadd.f32 %v666_v41, %v665_v40 }
 0x53c   : > { %v668_v43 = vrot.slane %v667_v42, 2 }
 0x53e   : > { %v669_v44 = vadd.f32 %v668_v43, %v667_v42 }
 0x540   : > { %v670_v45 = vrot.slane %v669_v44, 1 }
 0x542   : > { %v671_v46 = vadd.f32 %v670_v45, %v669_v44 }
 0x544   : > { %v672_v47 = vmul.f32 0.00390625, %v671_v46 }
 0x546   : > { %v675_v48 = vadd.f32 1e-05, %v672_v47 }
 0x548   : > { %861 = vrsqrt.f32 %v675_v48 }
 0x555   : > { %v862_v50 = vpop.eup %861 }
 0x556   : > { %v678_v51 = vmul.f32 %v862_v50, %v674_v49  ;;  %v677_v53 = vmul.f32 %v862_v50, %v673_v52 }
 0x558   : > { %686 = vperm.xlu1 %853, %v678_v51  }
 0x55c   : > { %681 = vperm.xlu1 %853, %v677_v53  }
 0x560   : > { %695 = vperm.xlu1 %853, %v691_v54  }
 0x564   : > { %716 = vperm.xlu1 %853, %v713_v55  }
 0x5d3   : > { %v687_v56 = vpop.permute.xlu1 %686 }
 0x5d4   : > { %v690_v57 = vmul.f32 %v687_v56, %v656_v33 }
 0x5d6   : > { %v704_v59 = vadd.f32 %v701_v58, %v690_v57 }
 0x5d7   : > { %v682_v63 = vpop.permute.xlu1 %681 }
 0x5d8   : > { %v802_v60 = vmul.f32 -1.442695, %v704_v59  ;;  %v689_v2 = vmul.f32 %v682_v63, %v655_v32 }
 0x5da   : > { %863 = vpow2.f32 %v802_v60 }
 0x5db   : > { %v696_v0 = vpop.permute.xlu1 %695 }
 0x5dc   : > { %v703_v3 = vadd.f32 %v696_v0, %v689_v2 }
 0x5df   : > { %v717_v6 = vpop.permute.xlu1 %716 }
 0x5e7   : > { %v864_v61 = vpop.eup %863 }
 0x5e8   : > { %v708_v62 = vadd.f32 1.0, %v864_v61 }
 0x5ea   : > { %865 = vrcp.f32 %v708_v62 }
 0x5f7   : > { %v866_v4 = vpop.eup %865 }
 0x5f8   : > { %v711_v5 = vmul.f32 %v866_v4, %v703_v3 }
 0x5fa   : > { %v719_v7 = vmul.f32 %v717_v6, %v711_v5 }
 0x5fc   : > { %721 = vrot.lane.b32.xlu0 %v719_v7, %s880_s16 }
 0x66e   : > { %v722_v9 = vpop.permute.xlu0 %721 }
 0x66f   : > { %v724_v10 = vadd.f32 %v722_v9, %v712_v8 }
 0x671   : > { %v806_v11 = vpack.c.bf16 %v724_v10, %v724_v10 }
 0x673   : > { %729 = vrot.lane.b32.xlu1 %v806_v11, %s877_s23 }
 0x6e5   : > { %v730_v12 = vpop.permute.xlu1 %729 }
 0x6e6   : > { %733 = vst.msk [vmem:[%s354_s19] sm:$0xf] %vm732_vm8, %v730_v12 }
 0x6e7 PF: > { %s20_s13 = sadd.s32 1, %s873_s13  }
 0x6e8   : > { %p17_p4 = scmp.ge.s32.totalorder %s20_s13, 4  }
 0x6ea   :  { %19 = sbr.rel (!%p17_p4) target bundleno = 1 (0x1), region = 92 }

// kernel: drumamba_forward.14
= control target key start
LH: loop header
LB: loop body
LE: loop exit
PB: predicated region body
PF: predicated region fallthrough
CT: control target
= control target key end

     0   :  { %s936_s13 = smov 0   ;;  %s1026_s0 = inlined_call_operand.vmem [shape: bf16[2,8,20], index: 0, kind: input, shape index: {}]   ;;  %s1027_s1 = inlined_call_operand.vmem [shape: bf16[3,2,8], index: 1, kind: input, shape index: {}]   ;;  %s1028_s2 = inlined_call_operand.vmem [shape: f32[2,1], index: 2, kind: input, shape index: {}]   ;;  %s1029_s3 = inlined_call_operand.vmem [shape: f32[2,1], index: 3, kind: input, shape index: {}]   ;;  %s1030_s4 = inlined_call_operand.vmem [shape: f32[2,1], index: 4, kind: input, shape index: {}]   ;;  %s1031_s5 = inlined_call_operand.vmem [shape: bf16[16,2], index: 5, kind: input, shape index: {}]   ;;  %s1032_s6 = inlined_call_operand.vmem [shape: f32[16,1], index: 6, kind: input, shape index: {}]   ;;  %s1033_s7 = inlined_call_operand.vmem [shape: f32[16,1], index: 7, kind: input, shape index: {}]   ;;  %s1034_s8 = inlined_call_operand.vmem [shape: f32[16,1], index: 8, kind: input, shape index: {}]   ;;  %s1035_s9 = inlined_call_operand.vmem [shape: f32[8,1], index: 9, kind: input, shape index: {}]   ;;  %s1036_s10 = inlined_call_operand.vmem [shape: bf16[2,8,16], index: 10, kind: output, shape index: {}]  }
   0x1 LB: > { %s787_s14 = sadd.s32 4294967295, %s873_s13   ;;  %p791_p0 = scmp.ge.s32.totalorder %s873_s13, 1  ;;  %s873_s13 = sphi %s936_s13, %s20_s13  }
   0x2   : > { %p311_p1 = scmp.lt.s32.totalorder %s873_s13, 3 }
   0x4   : > { %p312_p2 = pnand %p791_p0, %p311_p1 }
   0x5   : > { %p347_p3 = scmp.lt.s32.totalorder (!%p312_p2), %s787_s14, 1  ;;  %s877_s23 = smov (!%p312_p2), 126  }
   0x6   : > { %315 = sbr.rel (%p312_p2) target bundleno = 1767 (0x6e7), region = 60  ;;  %s879_s24 = smov (!%p312_p2), 124  }
   0x7   : > { %s880_s16 = smov (!%p312_p2), 2  }
   0xb   : > { %v875_v0 = vmov 0.0   ;;  %s1038_s14 = smov (!%p347_p3, %s787_s14), 1  ;;  %vm876_vm0 = vmmov 0   ;;  %vm369_vm1 = vcmask 1043456   ;;  %vm365_vm2 = vcmask 64512   ;;  %v573_v31 = vld [vmem:[%s1032_s6] sm:$0xff] }
   0xc   : > { %815 = vmatprep.subr.bf16.mxu0 %v875_v0  ;;  %821 = vmatprep.subr.bf16.mxu1 %v875_v0  ;;  %s792_s15 = sshll.u32 %s1038_s14, 2  ;;  %v357_v4 = vld [vmem:[%s1027_s1] sm:$0x1]  ;;  %v878_v6 = vmov 0   ;;  %v794_v9 = vld [vmem:[%s1027_s1 + $0x1] sm:$0x1] }
   0xd   : > { %817 = vmatprep.mubr.msk.bf16.mxu0 %vm876_vm0, %v875_v0  ;;  %823 = vmatprep.mubr.msk.bf16.mxu1 %vm876_vm0, %v875_v0  ;;  %s350_s18 = scalar_lea.vmem %s1026_s0, %s792_s15  ;;  %v510_v5 = vld [vmem:[%s1028_s2] sm:$0x3]  ;;  %v798_v12 = vld [vmem:[%s1027_s1 + $0x2] sm:$0x1]  ;;  %vm517_vm3 = vcmask 123904   ;;  %v574_v32 = vld [vmem:[%s1032_s6 + $0x8] sm:$0xff]  ;;  %s354_s19 = scalar_lea.vmem %s1036_s10, %s792_s15 }
   0xe   : > { %v954_v1 = vld [vmem:[%s350_s18] sm:$0xf]  ;;  %853 = vset.pattern.permute.xlu1 %v878_v6  ;;  %854 = vset.pattern.permute.xlu0 %v878_v6  ;;  %vm521_vm4 = vcmask 1041408   ;;  %vm594_vm5 = vcmask 1040384   ;;  %vm590_vm6 = vcmask 15360   ;;  %vm639_vm7 = vcmask 130048  }
   0xf   : > { %v795_v2 = vcombine.low %v954_v1, %v954_v1  ;;  %v417_v3 = vsel %vm369_vm1, %v954_v1, 0  ;;  %513 = vperm.xlu1 %853, %v510_v5   ;;  %v554_v30 = vld [vmem:[%s1030_s4] sm:$0x3]  ;;  %vm732_vm8 = vcmask 125952  }
  0x10   : > { %822 = vmatpush3.bf16.msra.mxu1 %v417_v3  ;;  %v544_v55 = vld [vmem:[%s1029_s3] sm:$0x3] }
  0x11   : > { %363 = vrot.lane.b32.xlu0 %v795_v2, %s877_s23  ;;  %833 = vmatprep.subr.bf16.mxu1 %v875_v0 }
  0x13   : > { %824 = vmatmul.mubr.msk.bf16.vlgmr.msra.gmra.mxu1 %vm365_vm2, %v357_v4 }
  0x14   : > { %835 = vmatprep.mubr.msk.bf16.mxu1 %vm876_vm0, %v875_v0 }
  0x15   : > { %461 = vrot.lane.b32.xlu0 %v795_v2, %s879_s24 }
  0x83   : > { %v364_v7 = vpop.permute.xlu0 %363 }
  0x84   : > { %v371_v8 = vsel %vm369_vm1, %v364_v7, 0 }
  0x85   : > { %816 = vmatpush3.bf16.msra.mxu0 %v371_v8 }
  0x86   : > { %827 = vmatprep.subr.bf16.mxu0 %v875_v0 }
  0x87   : > { %v462_v10 = vpop.permute.xlu0 %461 }
  0x88   : > { %818 = vmatmul.mubr.msk.bf16.vlgmr.msra.gmra.mxu0 %vm365_vm2, %v794_v9  ;;  %v467_v11 = vsel %vm369_vm1, %v462_v10, 0  ;;  %v856_v10 = vld [vmem:[%s1031_s5] sm:$0xff]  }
  0x89   : > { %828 = vmatpush3.bf16.msra.mxu0 %v467_v11  ;;  %829 = vmatprep.mubr.msk.bf16.mxu0 %vm876_vm0, %v875_v0 }
  0x8a   : > { %v514_v23 = vpop.permute.xlu1 %513 }
  0x90   : > { %830 = vmatmul.mubr.msk.bf16.vlgmr.msra.gmra.mxu0 %vm365_vm2, %v798_v12 }
  0xd3   : > { %v453_v13 = vpop.f32.mrf.mxu1 }
  0xd5   : > { %v825_v14 = vpop.f32.mrf.mxu1 }
  0xd7   : > { %v456_v15 = vpop.f32.mrf.mxu1 }
  0xd9   : > { %v826_v16 = vpop.f32.mrf.mxu1 }
 0x148   : > { %v407_v17 = vpop.f32.mrf.mxu0 }
 0x149   : > { %v454_v21 = vadd.f32 %v453_v13, %v407_v17 }
 0x14a   : > { %v819_v18 = vpop.f32.mrf.mxu0 }
 0x14c   : > { %v410_v19 = vpop.f32.mrf.mxu0 }
 0x14e   : > { %v820_v20 = vpop.f32.mrf.mxu0 }
 0x150   : > { %v503_v22 = vpop.f32.mrf.mxu0 }
 0x151   : > { %v509_v24 = vadd.f32 %v503_v22, %v454_v21  ;;  %v692_v21 = vld [vmem:[%s1034_s8 + $0x8] sm:$0xff] }
 0x152   : > { %v831_v25 = vpop.f32.mrf.mxu0 }
 0x153   : > { %v516_v26 = vadd.f32 %v514_v23, %v509_v24 }
 0x154   : > { %v506_v27 = vpop.f32.mrf.mxu0 }
 0x155   : > { %v518_v28 = vsel %vm517_vm3, %v516_v26, 0.0 }
 0x156   : > { %519 = vadd.xlane.f32.xlu1 %v518_v28  ;;  %v832_v29 = vpop.f32.mrf.mxu0 }
 0x167   : > { %557 = vperm.xlu1 %853, %v554_v30  }
 0x16b   : > { %577 = vperm.xlu1 %853, %v573_v31  }
 0x16f   : > { %582 = vperm.xlu1 %853, %v574_v32  }
 0x1df   : > { %v520_v33 = vpop.xlane.xlu1 %519 }
 0x1e0   : > { %v522_v34 = vsel %vm521_vm4, %v520_v33, 0.0 }
 0x1e1   : > { %v523_v35 = vrot.slane %v522_v34, 4 }
 0x1e3   : > { %v524_v36 = vadd.f32 %v523_v35, %v522_v34  ;;  %v558_v60 = vpop.permute.xlu1 %557 }
 0x1e5   : > { %v525_v37 = vrot.slane %v524_v36, 2 }
 0x1e7   : > { %v526_v38 = vadd.f32 %v525_v37, %v524_v36  ;;  %v578_v11 = vpop.permute.xlu1 %577 }
 0x1e9   : > { %v527_v39 = vrot.slane %v526_v38, 1 }
 0x1eb   : > { %v528_v40 = vadd.f32 %v527_v39, %v526_v38  ;;  %v583_v16 = vpop.permute.xlu1 %582 }
 0x1ed   : > { %v530_v41 = vmul.f32 0.03125, %v528_v40 }
 0x1ef   : > { %v531_v42 = vsub.f32 %v516_v26, %v530_v41 }
 0x1f1   : > { %v532_v43 = vmul.f32 %v531_v42, %v531_v42 }
 0x1f3   : > { %v533_v44 = vsel %vm517_vm3, %v532_v43, 0.0 }
 0x1f4   : > { %534 = vadd.xlane.f32.xlu0 %v533_v44 }
 0x27d   : > { %v535_v45 = vpop.xlane.xlu0 %534 }
 0x27e   : > { %v536_v46 = vsel %vm521_vm4, %v535_v45, 0.0 }
 0x27f   : > { %v537_v47 = vrot.slane %v536_v46, 4 }
 0x281   : > { %v538_v48 = vadd.f32 %v537_v47, %v536_v46 }
 0x283   : > { %v539_v49 = vrot.slane %v538_v48, 2 }
 0x285   : > { %v540_v50 = vadd.f32 %v539_v49, %v538_v48  ;;  %v674_v49 = vld [vmem:[%s1033_s7 + $0x8] sm:$0xff] }
 0x287   : > { %v541_v51 = vrot.slane %v540_v50, 1 }
 0x289   : > { %v542_v52 = vadd.f32 %v541_v51, %v540_v50 }
 0x28b   : > { %v543_v53 = vmul.f32 0.03125, %v542_v52  ;;  %v673_v52 = vld [vmem:[%s1033_s7] sm:$0xff] }
 0x28d   : > { %v545_v54 = vadd.f32 1e-05, %v543_v53 }
 0x28f   : > { %857 = vrsqrt.f32 %v545_v54  ;;  %v691_v54 = vld [vmem:[%s1034_s8] sm:$0xff] }
 0x29c   : > { %v858_v56 = vpop.eup %857 }
 0x29d   : > { %v547_v57 = vmul.f32 %v858_v56, %v544_v55  ;;  %v713_v55 = vld [vmem:[%s1035_s9] sm:$0xff] }
 0x29f   : > { %550 = vperm.xlu0 %854, %v547_v57  }
 0x31a   : > { %v551_v58 = vpop.permute.xlu0 %550 }
 0x31b   : > { %v553_v59 = vmul.f32 %v551_v58, %v531_v42 }
 0x31d   : > { %v560_v61 = vadd.f32 %v558_v60, %v553_v59 }
 0x31f   : > { %v562_v62 = vmul.f32 0.044715, %v560_v61  ;;  %v561_v5 = vmul.f32 0.5, %v560_v61 }
 0x321   : > { %v563_v63 = vmul.f32 %v562_v62, %v560_v61 }
 0x323   : > { %v564_v0 = vmul.f32 %v563_v63, %v560_v61 }
 0x325   : > { %v565_v2 = vadd.f32 %v564_v0, %v560_v61 }
 0x327   : > { %v566_v3 = vmul.f32 0.7978846, %v565_v2 }
 0x329   : > { %859 = vtanh.f32 %v566_v3 }
 0x336   : > { %v860_v4 = vpop.eup %859 }
 0x337   : > { %v568_v6 = vadd.f32 1.0, %v860_v4 }
 0x339   : > { %v569_v7 = vmul.f32 %v568_v6, %v561_v5 }
 0x33b   : > { %v572_v8 = vpack.c.bf16 %v569_v7, %v569_v7 }
 0x33d   : > { %v596_v9 = vsel %vm594_vm5, %v572_v8, 0  ;;  %v712_v8 = vunpack.c.l.bf16 %v954_v1 }
 0x33e   : > { %834 = vmatpush3.bf16.msra.mxu1 %v596_v9 }
 0x341   : > { %836 = vmatmul.mubr.msk.bf16.vlgmr.msra.gmra.mxu1 %vm590_vm6, %v856_v10 }
 0x401   : > { %v632_v12 = vpop.f32.mrf.mxu1 }
 0x402   : > { %v633_v13 = vadd.f32 %v632_v12, %v578_v11 }
 0x403   : > { %v837_v14 = vpop.f32.mrf.mxu1 }
 0x404   : > { %v640_v15 = vsel %vm639_vm7, %v633_v13, 0.0 }
 0x405   : > { %v635_v17 = vpop.f32.mrf.mxu1  ;;  %641 = vadd.xlane.f32.xlu1 %v640_v15 }
 0x406   : > { %v636_v18 = vadd.f32 %v635_v17, %v583_v16 }
 0x407   : > { %v838_v19 = vpop.f32.mrf.mxu1 }
 0x408   : > { %v643_v20 = vsel %vm639_vm7, %v636_v18, 0.0 }
 0x409   : > { %644 = vadd.xlane.f32.xlu0 %v643_v20 }
 0x41f   : > { %700 = vperm.xlu0 %854, %v692_v21  }
 0x48e   : > { %v642_v22 = vpop.xlane.xlu1 %641 }
 0x492   : > { %v645_v23 = vpop.xlane.xlu0 %644 }
 0x493   : > { %v646_v24 = vadd.f32 %v645_v23, %v642_v22 }
 0x495   : > { %v647_v25 = vrot.slane %v646_v24, 4 }
 0x497   : > { %v648_v26 = vadd.f32 %v647_v25, %v646_v24 }
 0x499   : > { %v649_v27 = vrot.slane %v648_v26, 2 }
 0x49a   : > { %v701_v58 = vpop.permute.xlu0 %700 }
 0x49b   : > { %v650_v28 = vadd.f32 %v649_v27, %v648_v26 }
 0x49d   : > { %v651_v29 = vrot.slane %v650_v28, 1 }
 0x49f   : > { %v652_v30 = vadd.f32 %v651_v29, %v650_v28 }
 0x4a1   : > { %v654_v31 = vmul.f32 0.00390625, %v652_v30 }
 0x4a3   : > { %v655_v32 = vsub.f32 %v633_v13, %v654_v31  ;;  %v656_v33 = vsub.f32 %v636_v18, %v654_v31 }
 0x4a5   : > { %v657_v34 = vmul.f32 %v655_v32, %v655_v32  ;;  %v658_v36 = vmul.f32 %v656_v33, %v656_v33 }
 0x4a7   : > { %v659_v35 = vsel %vm639_vm7, %v657_v34, 0.0  ;;  %v662_v37 = vsel %vm639_vm7, %v658_v36, 0.0 }
 0x4a8   : > { %660 = vadd.xlane.f32.xlu1 %v659_v35 }
 0x4ac   : > { %663 = vadd.xlane.f32.xlu1 %v662_v37 }
 0x531   : > { %v661_v38 = vpop.xlane.xlu1 %660 }
 0x535   : > { %v664_v39 = vpop.xlane.xlu1 %663 }
 0x536   : > { %v665_v40 = vadd.f32 %v664_v39, %v661_v38 }
 0x538   : > { %v666_v41 = vrot.slane %v665_v40, 4 }
 0x53a   : > { %v667_v42 = vadd.f32 %v666_v41, %v665_v40 }
 0x53c   : > { %v668_v43 = vrot.slane %v667_v42, 2 }
 0x53e   : > { %v669_v44 = vadd.f32 %v668_v43, %v667_v42 }
 0x540   : > { %v670_v45 = vrot.slane %v669_v44, 1 }
 0x542   : > { %v671_v46 = vadd.f32 %v670_v45, %v669_v44 }
 0x544   : > { %v672_v47 = vmul.f32 0.00390625, %v671_v46 }
 0x546   : > { %v675_v48 = vadd.f32 1e-05, %v672_v47 }
 0x548   : > { %861 = vrsqrt.f32 %v675_v48 }
 0x555   : > { %v862_v50 = vpop.eup %861 }
 0x556   : > { %v678_v51 = vmul.f32 %v862_v50, %v674_v49  ;;  %v677_v53 = vmul.f32 %v862_v50, %v673_v52 }
 0x558   : > { %686 = vperm.xlu1 %853, %v678_v51  }
 0x55c   : > { %681 = vperm.xlu1 %853, %v677_v53  }
 0x560   : > { %695 = vperm.xlu1 %853, %v691_v54  }
 0x564   : > { %716 = vperm.xlu1 %853, %v713_v55  }
 0x5d3   : > { %v687_v56 = vpop.permute.xlu1 %686 }
 0x5d4   : > { %v690_v57 = vmul.f32 %v687_v56, %v656_v33 }
 0x5d6   : > { %v704_v59 = vadd.f32 %v701_v58, %v690_v57 }
 0x5d7   : > { %v682_v63 = vpop.permute.xlu1 %681 }
 0x5d8   : > { %v802_v60 = vmul.f32 -1.442695, %v704_v59  ;;  %v689_v2 = vmul.f32 %v682_v63, %v655_v32 }
 0x5da   : > { %863 = vpow2.f32 %v802_v60 }
 0x5db   : > { %v696_v0 = vpop.permute.xlu1 %695 }
 0x5dc   : > { %v703_v3 = vadd.f32 %v696_v0, %v689_v2 }
 0x5df   : > { %v717_v6 = vpop.permute.xlu1 %716 }
 0x5e7   : > { %v864_v61 = vpop.eup %863 }
 0x5e8   : > { %v708_v62 = vadd.f32 1.0, %v864_v61 }
 0x5ea   : > { %865 = vrcp.f32 %v708_v62 }
 0x5f7   : > { %v866_v4 = vpop.eup %865 }
 0x5f8   : > { %v711_v5 = vmul.f32 %v866_v4, %v703_v3 }
 0x5fa   : > { %v719_v7 = vmul.f32 %v717_v6, %v711_v5 }
 0x5fc   : > { %721 = vrot.lane.b32.xlu0 %v719_v7, %s880_s16 }
 0x66e   : > { %v722_v9 = vpop.permute.xlu0 %721 }
 0x66f   : > { %v724_v10 = vadd.f32 %v722_v9, %v712_v8 }
 0x671   : > { %v806_v11 = vpack.c.bf16 %v724_v10, %v724_v10 }
 0x673   : > { %729 = vrot.lane.b32.xlu1 %v806_v11, %s877_s23 }
 0x6e5   : > { %v730_v12 = vpop.permute.xlu1 %729 }
 0x6e6   : > { %733 = vst.msk [vmem:[%s354_s19] sm:$0xf] %vm732_vm8, %v730_v12 }
 0x6e7 PF: > { %s20_s13 = sadd.s32 1, %s873_s13  }
 0x6e8   : > { %p17_p4 = scmp.ge.s32.totalorder %s20_s13, 4  }
 0x6ea   :  { %19 = sbr.rel (!%p17_p4) target bundleno = 1 (0x1), region = 92 }

// kernel: drumamba_forward.16
= control target key start
LH: loop header
LB: loop body
LE: loop exit
PB: predicated region body
PF: predicated region fallthrough
CT: control target
= control target key end

     0   :  { %s571_s12 = smov 0   ;;  %s573_s13 = smov 0   ;;  %s620_s0 = inlined_call_operand.vmem [shape: bf16[2,32,4], index: 0, kind: input, shape index: {}]   ;;  %s621_s1 = inlined_call_operand.vmem [shape: bf16[2,16,32], index: 1, kind: input, shape index: {}]   ;;  %s622_s2 = inlined_call_operand.vmem [shape: f32[16,1], index: 2, kind: input, shape index: {}]   ;;  %s623_s3 = inlined_call_operand.vmem [shape: bf16[2,16,3], index: 3, kind: output, shape index: {}]  }
   0x1   :  { %s575_s14 = smov 0  }
   0x2 LB: > { %s25_s15 = sadd.s32 1, %s541_s13  ;;  %p442_p0 = scmp.ge.s32.totalorder %s545_s14, 1  ;;  %s545_s14 = sphi %s575_s14, %s13_s14   ;;  %s541_s13 = sphi %s573_s13, %s625_s13   ;;  %s537_s12 = sphi %s571_s12, %s624_s12  }
   0x3   : > { %p27_p1 = scmp.ge.s32.totalorder %s25_s15, 2  ;;  %p151_p2 = scmp.lt.s32.totalorder %s545_s14, 3 }
   0x5   : > { %s627_s15 = smov (%p27_p1, %s25_s15), 0  ;;  %p152_p3 = pnand %p442_p0, %p151_p2 }
   0x6   : > { %p178_p4 = scmp.lt.s32.totalorder (!%p152_p3), %s537_s12, 1  ;;  %s550_s24 = smov (!%p152_p3), 127  }
   0x7   : > { %155 = sbr.rel (%p152_p3) target bundleno = 370 (0x172), region = 32 }
   0xc   : > { %v547_v0 = vmov 0.0   ;;  %s629_s12 = smov (!%p178_p4, %s537_s12), 1  ;;  %vm548_vm0 = vmmov 0   ;;  %v318_v1 = vld [vmem:[%s622_s2] sm:$0xff]  ;;  %v549_v2 = vmov 0   ;;  %v319_v3 = vld [vmem:[%s622_s2 + $0x8] sm:$0xff] }
   0xd   : > { %477 = vmatprep.subr.bf16.mxu1 %v547_v0  ;;  %469 = vmatprep.subr.bf16.mxu0 %v547_v0  ;;  %s459_s18 = sshll.u32 %s629_s12, 4  ;;  %v517_v6 = vld [vmem:[%s621_s1] sm:$0xff]   ;;  %vm222_vm1 = vcmask 261120   ;;  %v518_v9 = vld [vmem:[%s621_s1 + $0x8] sm:$0xff]   ;;  %s460_s29 = sshll.u32 %s629_s12, 3  ;;  %vm358_vm2 = vcmask 19456  }
   0xe   : > { %481 = vmatprep.mubr.msk.bf16.mxu1 %vm548_vm0, %v547_v0  ;;  %473 = vmatprep.mubr.msk.bf16.mxu0 %vm548_vm0, %v547_v0  ;;  %s182_s21 = scalar_lea.vmem %s620_s0, %s459_s18  ;;  %s190_s5 = scalar_lea.vmem %s623_s3, %s460_s29 }
   0xf   : > { %513 = vset.pattern.permute.xlu1 %v549_v2  ;;  %514 = vset.pattern.permute.xlu0 %v549_v2  ;;  %v515_v4 = vld [vmem:[%s182_s21 + $0x8] sm:$0xff]   ;;  %v516_v5 = vld [vmem:[%s182_s21] sm:$0xff]  }
  0x10   : > { %322 = vperm.xlu1 %513, %v318_v1   ;;  %218 = vrot.lane.b32.xlu0 %v515_v4, %s550_s24 }
  0x11   : > { %478 = vmatpush3.bf16.msra.mxu1 %v515_v4 }
  0x12   : > { %479 = vmatprep.subr.bf16.mxu1 %v547_v0 }
  0x14   : > { %327 = vperm.xlu1 %513, %v319_v3   ;;  %216 = vrot.lane.b32.xlu0 %v516_v5, %s550_s24 }
  0x15   : > { %480 = vmatpush3.bf16.msra.mxu1 %v516_v5 }
  0x18   : > { %482 = vmatmul.mubr.msk.bf16.vlgmr.msra.gmra.mxu1 %vm222_vm1, %v517_v6 }
  0x82   : > { %v219_v7 = vpop.permute.xlu0 %218 }
  0x83   : > { %470 = vmatpush3.bf16.msra.mxu0 %v219_v7 }
  0x84   : > { %471 = vmatprep.subr.bf16.mxu0 %v547_v0 }
  0x86   : > { %v217_v8 = vpop.permute.xlu0 %216 }
  0x87   : > { %472 = vmatpush3.bf16.msra.mxu0 %v217_v8 }
  0x8a   : > { %474 = vmatmul.mubr.msk.bf16.vlgmr.msra.gmra.mxu0 %vm222_vm1, %v518_v9 }
  0x8b   : > { %v323_v14 = vpop.permute.xlu1 %322 }
  0x8f   : > { %v328_v22 = vpop.permute.xlu1 %327 }
  0xd8   : > { %v311_v10 = vpop.f32.mrf.mxu1 }
  0xda   : > { %v483_v11 = vpop.f32.mrf.mxu1 }
  0xdc   : > { %v314_v12 = vpop.f32.mrf.mxu1 }
  0xde   : > { %v484_v13 = vpop.f32.mrf.mxu1 }
 0x14a   : > { %v260_v15 = vpop.f32.mrf.mxu0 }
 0x14b   : > { %v312_v16 = vadd.f32 %v311_v10, %v260_v15 }
 0x14c   : > { %v475_v17 = vpop.f32.mrf.mxu0 }
 0x14d   : > { %v330_v18 = vadd.f32 %v323_v14, %v312_v16 }
 0x14e   : > { %v263_v19 = vpop.f32.mrf.mxu0 }
 0x14f   : > { %v334_v20 = vmul.f32 0.044715, %v330_v18  ;;  %v315_v21 = vadd.f32 %v314_v12, %v263_v19  ;;  %v332_v35 = vmul.f32 0.5, %v330_v18 }
 0x150   : > { %v476_v23 = vpop.f32.mrf.mxu0 }
 0x151   : > { %v336_v24 = vmul.f32 %v334_v20, %v330_v18  ;;  %v331_v25 = vadd.f32 %v328_v22, %v315_v21 }
 0x153   : > { %v338_v26 = vmul.f32 %v336_v24, %v330_v18  ;;  %v335_v27 = vmul.f32 0.044715, %v331_v25  ;;  %v333_v40 = vmul.f32 0.5, %v331_v25 }
 0x155   : > { %v340_v28 = vadd.f32 %v338_v26, %v330_v18  ;;  %v337_v29 = vmul.f32 %v335_v27, %v331_v25 }
 0x157   : > { %v342_v30 = vmul.f32 0.7978846, %v340_v28  ;;  %v339_v31 = vmul.f32 %v337_v29, %v331_v25 }
 0x159   : > { %519 = vtanh.f32 %v342_v30  ;;  %v341_v32 = vadd.f32 %v339_v31, %v331_v25 }
 0x15b   : > { %v343_v33 = vmul.f32 0.7978846, %v341_v32 }
 0x15d   : > { %521 = vtanh.f32 %v343_v33 }
 0x166   : > { %v520_v34 = vpop.eup %519 }
 0x167   : > { %v346_v36 = vadd.f32 1.0, %v520_v34 }
 0x169   : > { %v348_v37 = vmul.f32 %v346_v36, %v332_v35 }
 0x16a   : > { %v522_v38 = vpop.eup %521 }
 0x16b   : > { %v461_v39 = vpack.c.bf16 %v348_v37, %v348_v37  ;;  %v347_v41 = vadd.f32 1.0, %v522_v38 }
 0x16d   : > { %359 = vst.msk [vmem:[%s190_s5] sm:$0xf] %vm358_vm2, %v461_v39  ;;  %v349_v42 = vmul.f32 %v347_v41, %v333_v40 }
 0x16f   : > { %v462_v43 = vpack.c.bf16 %v349_v42, %v349_v42 }
 0x171   : > { %360 = vst.msk [vmem:[%s190_s5 + $0x4] sm:$0xf] %vm358_vm2, %v462_v43 }
 0x172 PF: > { %s13_s14 = sadd.s32 1, %s545_s14   ;;  %s624_s12 = smov %s541_s13 }
 0x173   : > { %p10_p5 = scmp.ge.s32.totalorder %s13_s14, 4   ;;  %s625_s13 = smov %s627_s15 }
 0x175   :  { %12 = sbr.rel (!%p10_p5) target bundleno = 2 (0x2), region = 63 }

// kernel: drumamba_forward.19
= control target key start
LH: loop header
LB: loop body
LE: loop exit
PB: predicated region body
PF: predicated region fallthrough
CT: control target
= control target key end

     0   :  { %s512_s12 = smov 0   ;;  %s514_s13 = smov 0   ;;  %s572_s0 = inlined_call_operand.vmem [shape: bf16[2,16,3], index: 0, kind: input, shape index: {}]   ;;  %s573_s1 = inlined_call_operand.vmem [shape: bf16[1,32,16], index: 1, kind: input, shape index: {}]   ;;  %s574_s2 = inlined_call_operand.vmem [shape: f32[32,1], index: 2, kind: input, shape index: {}]   ;;  %s575_s3 = inlined_call_operand.vmem [shape: bf16[2,16,3], index: 3, kind: output, shape index: {}]  }
   0x1   :  { %s516_s14 = smov 0  }
   0x2 LB: > { %s25_s15 = sadd.s32 1, %s485_s13  ;;  %p400_p0 = scmp.ge.s32.totalorder %s489_s14, 1  ;;  %s489_s14 = sphi %s516_s14, %s13_s14   ;;  %s485_s13 = sphi %s514_s13, %s577_s13   ;;  %s481_s12 = sphi %s512_s12, %s576_s12  }
   0x3   : > { %p27_p1 = scmp.ge.s32.totalorder %s25_s15, 2  ;;  %p151_p2 = scmp.lt.s32.totalorder %s489_s14, 3 }
   0x5   : > { %s579_s15 = smov (%p27_p1, %s25_s15), 0  ;;  %p152_p3 = pnand %p400_p0, %p151_p2 }
   0x6   : > { %p178_p4 = scmp.lt.s32.totalorder (!%p152_p3), %s481_s12, 1 }
   0x7   : > { %155 = sbr.rel (%p152_p3) target bundleno = 256 (0x100), region = 32 }
   0xc   : > { %v457_v0 = vld [vmem:[%s573_s1] sm:$0xff]   ;;  %vm238_vm0 = vcmask 130048   ;;  %s581_s12 = smov (!%p178_p4, %s481_s12), 1  ;;  %v200_v1 = vld [vmem:[%s574_s2 + $0x10] sm:$0xff]  ;;  %v491_v3 = vmov 0   ;;  %v201_v4 = vld [vmem:[%s574_s2 + $0x18] sm:$0xff] }
   0xd   : > { %425 = vmatprep.mubr.msk.bf16.mxu0 %vm238_vm0, %v457_v0  ;;  %v198_v2 = vld [vmem:[%s574_s2] sm:$0xff]  ;;  %454 = vset.pattern.permute.xlu0 %v491_v3  ;;  %s416_s22 = sshll.u32 %s581_s12, 3  ;;  %v199_v5 = vld [vmem:[%s574_s2 + $0x8] sm:$0xff]  ;;  %vm316_vm1 = vcmask 19456  }
   0xe   : > { %455 = vset.pattern.permute.xlu1 %v491_v3  ;;  %214 = vperm.xlu0 %454, %v200_v1   ;;  %s182_s25 = scalar_lea.vmem %s572_s0, %s416_s22  ;;  %v458_v7 = vld [vmem:[%s573_s1 + $0x8] sm:$0xff]   ;;  %s190_s7 = scalar_lea.vmem %s575_s3, %s416_s22 }
   0xf   : > { %204 = vperm.xlu1 %455, %v198_v2   ;;  %v456_v6 = vld [vmem:[%s182_s25] sm:$0xff]  }
  0x10   : > { %423 = vmatprep.subr.bf16.mxu0 %v456_v6 }
  0x11   : > { %424 = vmatpush3.bf16.msra.mxu0 %v456_v6 }
  0x12   : > { %219 = vperm.xlu0 %454, %v201_v4  }
  0x13   : > { %209 = vperm.xlu1 %455, %v199_v5  }
  0x14   : > { %426 = vmatmul.mubr.msk.bf16.vlgmr.msra.gmra.mxu0 %vm238_vm0, %v458_v7 }
  0x89   : > { %v215_v8 = vpop.permute.xlu0 %214 }
  0x8a   : > { %v205_v21 = vpop.permute.xlu1 %204 }
  0x8d   : > { %v220_v13 = vpop.permute.xlu0 %219 }
  0x8e   : > { %v210_v24 = vpop.permute.xlu1 %209 }
  0xd4   : > { %v427_v9 = vpop.f32.mrf.mxu0 }
  0xd5   : > { %v288_v10 = vadd.f32 %v427_v9, %v215_v8 }
  0xd6   : > { %v279_v11 = vpop.f32.mrf.mxu0 }
  0xd7   : > { %v410_v12 = vmul.f32 -1.442695, %v288_v10  ;;  %v280_v22 = vadd.f32 %v279_v11, %v205_v21 }
  0xd8   : > { %v428_v14 = vpop.f32.mrf.mxu0 }
  0xd9   : > { %459 = vpow2.f32 %v410_v12  ;;  %v291_v15 = vadd.f32 %v428_v14, %v220_v13 }
  0xda   : > { %v282_v25 = vpop.f32.mrf.mxu0 }
  0xdb   : > { %v411_v16 = vmul.f32 -1.442695, %v291_v15  ;;  %v283_v28 = vadd.f32 %v282_v25, %v210_v24 }
  0xdd   : > { %461 = vpow2.f32 %v411_v16 }
  0xe6   : > { %v460_v17 = vpop.eup %459 }
  0xe7   : > { %v300_v18 = vadd.f32 1.0, %v460_v17 }
  0xe9   : > { %463 = vrcp.f32 %v300_v18 }
  0xea   : > { %v462_v19 = vpop.eup %461 }
  0xeb   : > { %v301_v20 = vadd.f32 1.0, %v462_v19 }
  0xed   : > { %465 = vrcp.f32 %v301_v20 }
  0xf6   : > { %v464_v23 = vpop.eup %463 }
  0xf7   : > { %v306_v26 = vmul.f32 %v464_v23, %v280_v22 }
  0xf9   : > { %v418_v27 = vpack.c.bf16 %v306_v26, %v306_v26 }
  0xfa   : > { %v466_v29 = vpop.eup %465 }
  0xfb   : > { %317 = vst.msk [vmem:[%s190_s7] sm:$0xf] %vm316_vm1, %v418_v27  ;;  %v307_v30 = vmul.f32 %v466_v29, %v283_v28 }
  0xfd   : > { %v419_v31 = vpack.c.bf16 %v307_v30, %v307_v30 }
  0xff   : > { %318 = vst.msk [vmem:[%s190_s7 + $0x4] sm:$0xf] %vm316_vm1, %v419_v31 }
 0x100 PF: > { %s13_s14 = sadd.s32 1, %s489_s14   ;;  %s576_s12 = smov %s485_s13 }
 0x101   : > { %p10_p5 = scmp.ge.s32.totalorder %s13_s14, 4   ;;  %s577_s13 = smov %s579_s15 }
 0x103   :  { %12 = sbr.rel (!%p10_p5) target bundleno = 2 (0x2), region = 62 }

// kernel: drumamba_forward.18
= control target key start
LH: loop header
LB: loop body
LE: loop exit
PB: predicated region body
PF: predicated region fallthrough
CT: control target
= control target key end

     0   :  { %s1061_s13 = smov 0   ;;  %s1188_s0 = inlined_call_operand.vmem [shape: bf16[2,16,7], index: 0, kind: input, shape index: {}]   ;;  %s1189_s1 = inlined_call_operand.vmem [shape: bf16[3,4,16], index: 1, kind: input, shape index: {}]   ;;  %s1190_s2 = inlined_call_operand.vmem [shape: f32[4,1], index: 2, kind: input, shape index: {}]   ;;  %s1191_s3 = inlined_call_operand.vmem [shape: f32[4,1], index: 3, kind: input, shape index: {}]   ;;  %s1192_s4 = inlined_call_operand.vmem [shape: f32[4,1], index: 4, kind: input, shape index: {}]   ;;  %s1193_s5 = inlined_call_operand.vmem [shape: bf16[32,4], index: 5, kind: input, shape index: {}]   ;;  %s1194_s6 = inlined_call_operand.vmem [shape: f32[32,1], index: 6, kind: input, shape index: {}]   ;;  %s1195_s7 = inlined_call_operand.vmem [shape: f32[32,1], index: 7, kind: input, shape index: {}]   ;;  %s1196_s8 = inlined_call_operand.vmem [shape: f32[32,1], index: 8, kind: input, shape index: {}]   ;;  %s1197_s9 = inlined_call_operand.vmem [shape: f32[16,1], index: 9, kind: input, shape index: {}]   ;;  %s1198_s10 = inlined_call_operand.vmem [shape: bf16[2,16,3], index: 10, kind: output, shape index: {}]  }
   0x1 LB: > { %s895_s14 = sadd.s32 4294967295, %s998_s13   ;;  %p899_p0 = scmp.ge.s32.totalorder %s998_s13, 1  ;;  %s998_s13 = sphi %s1061_s13, %s20_s13  }
   0x2   : > { %p312_p1 = scmp.lt.s32.totalorder %s998_s13, 3 }
   0x4   : > { %p313_p2 = pnand %p899_p0, %p312_p1 }
   0x5   : > { %p350_p3 = scmp.lt.s32.totalorder (!%p313_p2), %s895_s14, 1  ;;  %s1003_s21 = smov (!%p313_p2), 126  }
   0x6   : > { %316 = sbr.rel (%p313_p2) target bundleno = 1775 (0x6ef), region = 60  ;;  %s1004_s24 = smov (!%p313_p2), 124  }
   0x7   : > { %s1005_s16 = smov (!%p313_p2), 2  }
   0xb   : > { %v1000_v0 = vmov 0.0   ;;  %s1200_s14 = smov (!%p350_p3, %s895_s14), 1  ;;  %vm1001_vm0 = vmmov 0   ;;  %v511_v2 = vld [vmem:[%s1190_s2] sm:$0xf]  ;;  %v1002_v3 = vmov 0  }
   0xc   : > { %933 = vmatprep.subr.bf16.mxu0 %v1000_v0  ;;  %939 = vmatprep.subr.bf16.mxu1 %v1000_v0  ;;  %s920_s15 = sshll.u32 %s1200_s14, 3  ;;  %vm374_vm1 = vcmask 130048   ;;  %v363_v4 = vld [vmem:[%s1189_s1] sm:$0x3]  ;;  %v904_v6 = vld [vmem:[%s1189_s1 + $0x2] sm:$0x3] }
   0xd   : > { %935 = vmatprep.mubr.msk.bf16.mxu0 %vm1001_vm0, %v1000_v0  ;;  %941 = vmatprep.mubr.msk.bf16.mxu1 %vm1001_vm0, %v1000_v0  ;;  %s354_s18 = scalar_lea.vmem %s1188_s0, %s920_s15  ;;  %v908_v8 = vld [vmem:[%s1189_s1 + $0x4] sm:$0x3]  ;;  %vm518_vm2 = vcmask 19456   ;;  %v555_v26 = vld [vmem:[%s1192_s4] sm:$0xf]  ;;  %v577_v28 = vld [vmem:[%s1194_s6 + $0x8] sm:$0xff]  ;;  %s359_s19 = scalar_lea.vmem %s1198_s10, %s920_s15 }
   0xe   : > { %v1079_v1 = vld [vmem:[%s354_s18] sm:$0xff]   ;;  %972 = vset.pattern.permute.xlu1 %v1002_v3  ;;  %973 = vset.pattern.permute.xlu0 %v1002_v3  ;;  %v578_v29 = vld [vmem:[%s1194_s6 + $0x10] sm:$0xff]  ;;  %v579_v30 = vld [vmem:[%s1194_s6 + $0x18] sm:$0xff]  ;;  %vm522_vm3 = vcmask 1043456   ;;  %vm610_vm4 = vcmask 31744   ;;  %vm617_vm5 = vcmask 1041408  }
   0xf   : > { %371 = vrot.lane.b32.xlu0 %v1079_v1, %s1003_s21  ;;  %940 = vmatpush3.bf16.msra.mxu1 %v1079_v1  ;;  %v576_v27 = vld [vmem:[%s1194_s6] sm:$0xff]  ;;  %vm670_vm6 = vcmask 23552  }
  0x10   : > { %514 = vperm.xlu1 %972, %v511_v2   ;;  %v545_v53 = vld [vmem:[%s1191_s3] sm:$0xf] }
  0x11   : > { %v975_v56 = vld [vmem:[%s1193_s5] sm:$0xff]  }
  0x12   : > { %942 = vmatmul.mubr.msk.bf16.vlgmr.msra.gmra.mxu1 %vm374_vm1, %v363_v4 }
  0x13   : > { %464 = vrot.lane.b32.xlu0 %v1079_v1, %s1004_s24  ;;  %953 = vmatprep.mubr.msk.bf16.mxu1 %vm610_vm4, %v975_v56 }
  0x81   : > { %v372_v5 = vpop.permute.xlu0 %371 }
  0x82   : > { %934 = vmatpush3.bf16.msra.mxu0 %v372_v5 }
  0x83   : > { %945 = vmatprep.subr.bf16.mxu0 %v1000_v0 }
  0x85   : > { %936 = vmatmul.mubr.msk.bf16.vlgmr.msra.gmra.mxu0 %vm374_vm1, %v904_v6  ;;  %v465_v7 = vpop.permute.xlu0 %464 }
  0x86   : > { %946 = vmatpush3.bf16.msra.mxu0 %v465_v7  ;;  %947 = vmatprep.mubr.msk.bf16.mxu0 %vm1001_vm0, %v1000_v0 }
  0x8b   : > { %v515_v19 = vpop.permute.xlu1 %514 }
  0x8d   : > { %948 = vmatmul.mubr.msk.bf16.vlgmr.msra.gmra.mxu0 %vm374_vm1, %v908_v8 }
  0xd2   : > { %v456_v9 = vpop.f32.mrf.mxu1 }
  0xd4   : > { %v943_v10 = vpop.f32.mrf.mxu1 }
  0xd6   : > { %v459_v11 = vpop.f32.mrf.mxu1 }
  0xd8   : > { %v944_v12 = vpop.f32.mrf.mxu1 }
 0x145   : > { %v412_v13 = vpop.f32.mrf.mxu0 }
 0x146   : > { %v457_v17 = vadd.f32 %v456_v9, %v412_v13  ;;  %v976_v9 = vld [vmem:[%s1193_s5 + $0x8] sm:$0xff]  }
 0x147   : > { %v937_v14 = vpop.f32.mrf.mxu0 }
 0x149   : > { %v415_v15 = vpop.f32.mrf.mxu0 }
 0x14b   : > { %v938_v16 = vpop.f32.mrf.mxu0 }
 0x14d   : > { %v504_v18 = vpop.f32.mrf.mxu0 }
 0x14e   : > { %v510_v20 = vadd.f32 %v504_v18, %v457_v17 }
 0x14f   : > { %v949_v21 = vpop.f32.mrf.mxu0 }
 0x150   : > { %v517_v22 = vadd.f32 %v515_v19, %v510_v20 }
 0x151   : > { %v507_v23 = vpop.f32.mrf.mxu0 }
 0x152   : > { %v519_v24 = vsel %vm518_vm2, %v517_v22, 0.0 }
 0x153   : > { %v950_v25 = vpop.f32.mrf.mxu0  ;;  %520 = vadd.xlane.f32.xlu1 %v519_v24 }
 0x164   : > { %558 = vperm.xlu1 %972, %v555_v26  }
 0x168   : > { %582 = vperm.xlu1 %972, %v576_v27  }
 0x16c   : > { %587 = vperm.xlu1 %972, %v577_v28  }
 0x170   : > { %592 = vperm.xlu1 %972, %v578_v29  }
 0x174   : > { %597 = vperm.xlu1 %972, %v579_v30  }
 0x1dc   : > { %v521_v31 = vpop.xlane.xlu1 %520 }
 0x1dd   : > { %v523_v32 = vsel %vm522_vm3, %v521_v31, 0.0 }
 0x1de   : > { %v524_v33 = vrot.slane %v523_v32, 4 }
 0x1e0   : > { %v525_v34 = vadd.f32 %v524_v33, %v523_v32  ;;  %v559_v59 = vpop.permute.xlu1 %558 }
 0x1e2   : > { %v526_v35 = vrot.slane %v525_v34, 2 }
 0x1e4   : > { %v527_v36 = vadd.f32 %v526_v35, %v525_v34  ;;  %v583_v10 = vpop.permute.xlu1 %582 }
 0x1e6   : > { %v528_v37 = vrot.slane %v527_v36, 1 }
 0x1e8   : > { %v529_v38 = vadd.f32 %v528_v37, %v527_v36  ;;  %v588_v11 = vpop.permute.xlu1 %587 }
 0x1ea   : > { %v531_v39 = vmul.f32 0.083333336, %v529_v38 }
 0x1ec   : > { %v532_v40 = vsub.f32 %v517_v22, %v531_v39  ;;  %v593_v13 = vpop.permute.xlu1 %592 }
 0x1ee   : > { %v533_v41 = vmul.f32 %v532_v40, %v532_v40 }
 0x1f0   : > { %v534_v42 = vsel %vm518_vm2, %v533_v41, 0.0  ;;  %v598_v21 = vpop.permute.xlu1 %597 }
 0x1f1   : > { %535 = vadd.xlane.f32.xlu0 %v534_v42 }
 0x27a   : > { %v536_v43 = vpop.xlane.xlu0 %535 }
 0x27b   : > { %v537_v44 = vsel %vm522_vm3, %v536_v43, 0.0 }
 0x27c   : > { %v538_v45 = vrot.slane %v537_v44, 4 }
 0x27e   : > { %v539_v46 = vadd.f32 %v538_v45, %v537_v44 }
 0x280   : > { %v540_v47 = vrot.slane %v539_v46, 2 }
 0x282   : > { %v541_v48 = vadd.f32 %v540_v47, %v539_v46 }
 0x284   : > { %v542_v49 = vrot.slane %v541_v48, 1 }
 0x286   : > { %v543_v50 = vadd.f32 %v542_v49, %v541_v48 }
 0x288   : > { %v544_v51 = vmul.f32 0.083333336, %v543_v50 }
 0x28a   : > { %v546_v52 = vadd.f32 1e-05, %v544_v51 }
 0x28c   : > { %978 = vrsqrt.f32 %v546_v52 }
 0x299   : > { %v979_v54 = vpop.eup %978 }
 0x29a   : > { %v548_v55 = vmul.f32 %v979_v54, %v545_v53 }
 0x29c   : > { %551 = vperm.xlu0 %973, %v548_v55  }
 0x317   : > { %v552_v57 = vpop.permute.xlu0 %551 }
 0x318   : > { %v554_v58 = vmul.f32 %v552_v57, %v532_v40 }
 0x31a   : > { %v561_v60 = vadd.f32 %v559_v59, %v554_v58 }
 0x31c   : > { %v563_v61 = vmul.f32 0.044715, %v561_v60  ;;  %v562_v4 = vmul.f32 0.5, %v561_v60 }
 0x31e   : > { %v564_v62 = vmul.f32 %v563_v61, %v561_v60 }
 0x320   : > { %v565_v63 = vmul.f32 %v564_v62, %v561_v60 }
 0x322   : > { %v566_v0 = vadd.f32 %v565_v63, %v561_v60 }
 0x324   : > { %v567_v2 = vmul.f32 0.7978846, %v566_v0 }
 0x326   : > { %980 = vtanh.f32 %v567_v2 }
 0x333   : > { %v981_v3 = vpop.eup %980 }
 0x334   : > { %v569_v5 = vadd.f32 1.0, %v981_v3 }
 0x336   : > { %v570_v6 = vmul.f32 %v569_v5, %v562_v4  ;;  %v727_v4 = vld [vmem:[%s1195_s7 + $0x18] sm:$0xff]  ;;  %v726_v5 = vld [vmem:[%s1195_s7 + $0x10] sm:$0xff] }
 0x338   : > { %v575_v7 = vpack.c.bf16 %v570_v6, %v570_v6 }
 0x33a   : > { %957 = vmatprep.subr.msk.bf16.mxu1 %vm617_vm5, %v575_v7  ;;  %v619_v8 = vsel %vm617_vm5, %v575_v7, 0 }
 0x33b   : > { %952 = vmatpush3.bf16.msra.mxu1 %v619_v8 }
 0x33e   : > { %954 = vmatmul.mubr.msk.bf16.vlgmr.msra.gmra.mxu1 %vm610_vm4, %v976_v9  ;;  %v760_v9 = vld [vmem:[%s1196_s8 + $0x10] sm:$0xff] }
 0x3fe   : > { %v955_v12 = vpop.f32.mrf.mxu1 }
 0x3ff   : > { %v664_v17 = vadd.f32 %v955_v12, %v593_v13  ;;  %v724_v12 = vld [vmem:[%s1195_s7] sm:$0xff] }
 0x400   : > { %v655_v14 = vpop.f32.mrf.mxu1 }
 0x401   : > { %v656_v15 = vadd.f32 %v655_v14, %v583_v10  ;;  %v677_v24 = vsel %vm670_vm6, %v664_v17, 0.0  ;;  %v761_v10 = vld [vmem:[%s1196_s8 + $0x18] sm:$0xff] }
 0x402   : > { %v956_v16 = vpop.f32.mrf.mxu1 }
 0x403   : > { %v671_v18 = vsel %vm670_vm6, %v656_v15, 0.0  ;;  %v667_v22 = vadd.f32 %v956_v16, %v598_v21  ;;  %v758_v16 = vld [vmem:[%s1196_s8] sm:$0xff] }
 0x404   : > { %v658_v19 = vpop.f32.mrf.mxu1  ;;  %672 = vadd.xlane.f32.xlu1 %v671_v18  ;;  %v802_v18 = vld [vmem:[%s1197_s9] sm:$0xff] }
 0x405   : > { %v659_v20 = vadd.f32 %v658_v19, %v588_v11  ;;  %v680_v25 = vsel %vm670_vm6, %v667_v22, 0.0  ;;  %v725_v11 = vld [vmem:[%s1195_s7 + $0x8] sm:$0xff] }
 0x407   : > { %v674_v23 = vsel %vm670_vm6, %v659_v20, 0.0 }
 0x408   : > { %675 = vadd.xlane.f32.xlu0 %v674_v23  ;;  %678 = vadd.xlane.f32.xlu1 %v677_v24 }
 0x40c   : > { %681 = vadd.xlane.f32.xlu1 %v680_v25 }
 0x48d   : > { %v673_v26 = vpop.xlane.xlu1 %672 }
 0x491   : > { %v676_v27 = vpop.xlane.xlu0 %675  ;;  %v679_v28 = vpop.xlane.xlu1 %678 }
 0x492   : > { %v683_v29 = vadd.f32 %v676_v27, %v673_v26 }
 0x494   : > { %v684_v30 = vadd.f32 %v683_v29, %v679_v28 }
 0x495   : > { %v682_v31 = vpop.xlane.xlu1 %681 }
 0x496   : > { %v685_v32 = vadd.f32 %v684_v30, %v682_v31 }
 0x498   : > { %v686_v33 = vrot.slane %v685_v32, 4 }
 0x49a   : > { %v687_v34 = vadd.f32 %v686_v33, %v685_v32 }
 0x49c   : > { %v688_v35 = vrot.slane %v687_v34, 2 }
 0x49e   : > { %v689_v36 = vadd.f32 %v688_v35, %v687_v34 }
 0x4a0   : > { %v690_v37 = vrot.slane %v689_v36, 1 }
 0x4a2   : > { %v691_v38 = vadd.f32 %v690_v37, %v689_v36 }
 0x4a4   : > { %v693_v39 = vmul.f32 0.010416667, %v691_v38 }
 0x4a6   : > { %v1130_v40 = vsub.f32 %v659_v20, %v693_v39  ;;  %v1132_v41 = vsub.f32 %v656_v15, %v693_v39  ;;  %v697_v42 = vsub.f32 %v667_v22, %v693_v39  ;;  %v696_v43 = vsub.f32 %v664_v17, %v693_v39  ;;  %v759_v15 = vld [vmem:[%s1196_s8 + $0x8] sm:$0xff] }
 0x4a7   : > { %v803_v17 = vld [vmem:[%s1197_s9 + $0x8] sm:$0xff] }
 0x4a8   : > { %v699_v44 = vmul.f32 %v1130_v40, %v1130_v40  ;;  %v698_v45 = vmul.f32 %v1132_v41, %v1132_v41  ;;  %v701_v48 = vmul.f32 %v697_v42, %v697_v42  ;;  %v700_v49 = vmul.f32 %v696_v43, %v696_v43 }
 0x4aa   : > { %v705_v46 = vsel %vm670_vm6, %v699_v44, 0.0  ;;  %v702_v47 = vsel %vm670_vm6, %v698_v45, 0.0  ;;  %v711_v50 = vsel %vm670_vm6, %v701_v48, 0.0  ;;  %v708_v51 = vsel %vm670_vm6, %v700_v49, 0.0 }
 0x4ab   : > { %706 = vadd.xlane.f32.xlu1 %v705_v46  ;;  %703 = vadd.xlane.f32.xlu0 %v702_v47 }
 0x4af   : > { %712 = vadd.xlane.f32.xlu1 %v711_v50  ;;  %709 = vadd.xlane.f32.xlu0 %v708_v51  ;;  %v800_v51 = vunpack.c.l.bf16 %v1079_v1 }
 0x534   : > { %v707_v52 = vpop.xlane.xlu1 %706  ;;  %v704_v53 = vpop.xlane.xlu0 %703 }
 0x535   : > { %v714_v54 = vadd.f32 %v707_v52, %v704_v53 }
 0x538   : > { %v710_v55 = vpop.xlane.xlu0 %709  ;;  %v713_v57 = vpop.xlane.xlu1 %712 }
 0x539   : > { %v715_v56 = vadd.f32 %v714_v54, %v710_v55 }
 0x53b   : > { %v716_v58 = vadd.f32 %v715_v56, %v713_v57 }
 0x53d   : > { %v717_v59 = vrot.slane %v716_v58, 4 }
 0x53f   : > { %v718_v60 = vadd.f32 %v717_v59, %v716_v58 }
 0x541   : > { %v719_v61 = vrot.slane %v718_v60, 2 }
 0x543   : > { %v720_v62 = vadd.f32 %v719_v61, %v718_v60 }
 0x545   : > { %v721_v63 = vrot.slane %v720_v62, 1 }
 0x547   : > { %v722_v0 = vadd.f32 %v721_v63, %v720_v62 }
 0x549   : > { %v723_v2 = vmul.f32 0.010416667, %v722_v0 }
 0x54b   : > { %v728_v3 = vadd.f32 1e-05, %v723_v2 }
 0x54d   : > { %982 = vrsqrt.f32 %v728_v3 }
 0x55a   : > { %v983_v6 = vpop.eup %982 }
 0x55b   : > { %v733_v7 = vmul.f32 %v983_v6, %v727_v4  ;;  %v732_v8 = vmul.f32 %v983_v6, %v726_v5  ;;  %v731_v13 = vmul.f32 %v983_v6, %v725_v11  ;;  %v730_v14 = vmul.f32 %v983_v6, %v724_v12 }
 0x55d   : > { %751 = vperm.xlu1 %972, %v733_v7   ;;  %746 = vperm.xlu0 %973, %v732_v8  }
 0x561   : > { %774 = vperm.xlu1 %972, %v760_v9   ;;  %779 = vperm.xlu0 %973, %v761_v10  }
 0x565   : > { %741 = vperm.xlu0 %973, %v731_v13   ;;  %736 = vperm.xlu1 %972, %v730_v14  }
 0x569   : > { %769 = vperm.xlu0 %973, %v759_v15   ;;  %764 = vperm.xlu1 %972, %v758_v16  }
 0x56d   : > { %811 = vperm.xlu0 %973, %v803_v17   ;;  %806 = vperm.xlu1 %972, %v802_v18  }
 0x5d8   : > { %v752_v19 = vpop.permute.xlu1 %751  ;;  %v747_v20 = vpop.permute.xlu0 %746 }
 0x5d9   : > { %v757_v21 = vmul.f32 %v752_v19, %v697_v42  ;;  %v756_v22 = vmul.f32 %v747_v20, %v696_v43 }
 0x5dc   : > { %v775_v23 = vpop.permute.xlu1 %774  ;;  %v780_v24 = vpop.permute.xlu0 %779 }
 0x5dd   : > { %v784_v25 = vadd.f32 %v775_v23, %v756_v22  ;;  %v785_v26 = vadd.f32 %v780_v24, %v757_v21 }
 0x5df   : > { %v914_v27 = vmul.f32 -1.442695, %v784_v25  ;;  %v915_v28 = vmul.f32 -1.442695, %v785_v26 }
 0x5e0   : > { %v737_v33 = vpop.permute.xlu1 %736  ;;  %v742_v34 = vpop.permute.xlu0 %741 }
 0x5e1   : > { %984 = vpow2.f32 %v914_v27  ;;  %v754_v36 = vmul.f32 %v737_v33, %v1132_v41  ;;  %v755_v38 = vmul.f32 %v742_v34, %v1130_v40  ;;  %v801_v41 = vunpack.c.h.bf16 %v1079_v1 }
 0x5e2   : > { %986 = vpow2.f32 %v915_v28 }
 0x5e4   : > { %v765_v35 = vpop.permute.xlu1 %764  ;;  %v770_v37 = vpop.permute.xlu0 %769 }
 0x5e5   : > { %v782_v39 = vadd.f32 %v765_v35, %v754_v36  ;;  %v783_v43 = vadd.f32 %v770_v37, %v755_v38 }
 0x5e8   : > { %v807_v47 = vpop.permute.xlu1 %806  ;;  %v812_v48 = vpop.permute.xlu0 %811 }
 0x5ee   : > { %v985_v29 = vpop.eup %984 }
 0x5ef   : > { %v987_v30 = vpop.eup %986  ;;  %v792_v31 = vadd.f32 1.0, %v985_v29 }
 0x5f0   : > { %v793_v32 = vadd.f32 1.0, %v987_v30 }
 0x5f1   : > { %988 = vrcp.f32 %v792_v31 }
 0x5f2   : > { %990 = vrcp.f32 %v793_v32 }
 0x5fe   : > { %v989_v42 = vpop.eup %988 }
 0x5ff   : > { %v991_v44 = vpop.eup %990  ;;  %v798_v45 = vmul.f32 %v989_v42, %v782_v39 }
 0x600   : > { %v799_v46 = vmul.f32 %v991_v44, %v783_v43 }
 0x601   : > { %v814_v49 = vmul.f32 %v807_v47, %v798_v45 }
 0x602   : > { %v815_v50 = vmul.f32 %v812_v48, %v799_v46 }
 0x603   : > { %818 = vrot.lane.b32.xlu1 %v814_v49, %s1005_s16 }
 0x604   : > { %820 = vrot.lane.b32.xlu0 %v815_v50, %s1005_s16 }
 0x675   : > { %v819_v52 = vpop.permute.xlu1 %818 }
 0x676   : > { %v821_v40 = vpop.permute.xlu0 %820  ;;  %v824_v53 = vadd.f32 %v819_v52, %v800_v51 }
 0x677   : > { %v825_v54 = vadd.f32 %v821_v40, %v801_v41 }
 0x678   : > { %v922_v55 = vpack.c.bf16 %v824_v53, %v824_v53 }
 0x679   : > { %v923_v56 = vpack.c.bf16 %v825_v54, %v825_v54 }
 0x67a   : > { %832 = vrot.lane.b32.xlu1 %v922_v55, %s1003_s21 }
 0x67b   : > { %834 = vrot.lane.b32.xlu0 %v923_v56, %s1003_s21 }
 0x6ec   : > { %v833_v57 = vpop.permute.xlu1 %832 }
 0x6ed   : > { %v835_v58 = vpop.permute.xlu0 %834  ;;  %838 = vst.msk [vmem:[%s359_s19] sm:$0xf] %vm518_vm2, %v833_v57 }
 0x6ee   : > { %839 = vst.msk [vmem:[%s359_s19 + $0x4] sm:$0xf] %vm518_vm2, %v835_v58 }
 0x6ef PF: > { %s20_s13 = sadd.s32 1, %s998_s13  }
 0x6f0   : > { %p17_p4 = scmp.ge.s32.totalorder %s20_s13, 4  }
 0x6f2   :  { %19 = sbr.rel (!%p17_p4) target bundleno = 1 (0x1), region = 92 }

// kernel: drumamba_forward.17
= control target key start
LH: loop header
LB: loop body
LE: loop exit
PB: predicated region body
PF: predicated region fallthrough
CT: control target
= control target key end

     0   :  { %s1061_s13 = smov 0   ;;  %s1188_s0 = inlined_call_operand.vmem [shape: bf16[2,16,5], index: 0, kind: input, shape index: {}]   ;;  %s1189_s1 = inlined_call_operand.vmem [shape: bf16[3,4,16], index: 1, kind: input, shape index: {}]   ;;  %s1190_s2 = inlined_call_operand.vmem [shape: f32[4,1], index: 2, kind: input, shape index: {}]   ;;  %s1191_s3 = inlined_call_operand.vmem [shape: f32[4,1], index: 3, kind: input, shape index: {}]   ;;  %s1192_s4 = inlined_call_operand.vmem [shape: f32[4,1], index: 4, kind: input, shape index: {}]   ;;  %s1193_s5 = inlined_call_operand.vmem [shape: bf16[32,4], index: 5, kind: input, shape index: {}]   ;;  %s1194_s6 = inlined_call_operand.vmem [shape: f32[32,1], index: 6, kind: input, shape index: {}]   ;;  %s1195_s7 = inlined_call_operand.vmem [shape: f32[32,1], index: 7, kind: input, shape index: {}]   ;;  %s1196_s8 = inlined_call_operand.vmem [shape: f32[32,1], index: 8, kind: input, shape index: {}]   ;;  %s1197_s9 = inlined_call_operand.vmem [shape: f32[16,1], index: 9, kind: input, shape index: {}]   ;;  %s1198_s10 = inlined_call_operand.vmem [shape: bf16[2,16,3], index: 10, kind: output, shape index: {}]  }
   0x1 LB: > { %s895_s14 = sadd.s32 4294967295, %s998_s13   ;;  %p899_p0 = scmp.ge.s32.totalorder %s998_s13, 1  ;;  %s998_s13 = sphi %s1061_s13, %s20_s13  }
   0x2   : > { %p312_p1 = scmp.lt.s32.totalorder %s998_s13, 3 }
   0x4   : > { %p313_p2 = pnand %p899_p0, %p312_p1 }
   0x5   : > { %p350_p3 = scmp.lt.s32.totalorder (!%p313_p2), %s895_s14, 1  ;;  %s1003_s21 = smov (!%p313_p2), 127  }
   0x6   : > { %316 = sbr.rel (%p313_p2) target bundleno = 1775 (0x6ef), region = 60  ;;  %s1004_s24 = smov (!%p313_p2), 126  }
   0x7   : > { %s1005_s16 = smov (!%p313_p2), 1  }
   0xb   : > { %v1000_v0 = vmov 0.0   ;;  %s1200_s14 = smov (!%p350_p3, %s895_s14), 1  ;;  %vm1001_vm0 = vmmov 0   ;;  %v511_v2 = vld [vmem:[%s1190_s2] sm:$0xf]  ;;  %v1002_v3 = vmov 0  }
   0xc   : > { %933 = vmatprep.subr.bf16.mxu0 %v1000_v0  ;;  %939 = vmatprep.subr.bf16.mxu1 %v1000_v0  ;;  %s920_s15 = sshll.u32 %s1200_s14, 3  ;;  %vm374_vm1 = vcmask 130048   ;;  %v363_v4 = vld [vmem:[%s1189_s1] sm:$0x3]  ;;  %v904_v6 = vld [vmem:[%s1189_s1 + $0x2] sm:$0x3] }
   0xd   : > { %935 = vmatprep.mubr.msk.bf16.mxu0 %vm1001_vm0, %v1000_v0  ;;  %941 = vmatprep.mubr.msk.bf16.mxu1 %vm1001_vm0, %v1000_v0  ;;  %s354_s18 = scalar_lea.vmem %s1188_s0, %s920_s15  ;;  %v908_v8 = vld [vmem:[%s1189_s1 + $0x4] sm:$0x3]  ;;  %vm518_vm2 = vcmask 19456   ;;  %v555_v26 = vld [vmem:[%s1192_s4] sm:$0xf]  ;;  %v577_v28 = vld [vmem:[%s1194_s6 + $0x8] sm:$0xff]  ;;  %s359_s19 = scalar_lea.vmem %s1198_s10, %s920_s15 }
   0xe   : > { %v1079_v1 = vld [vmem:[%s354_s18] sm:$0xff]   ;;  %972 = vset.pattern.permute.xlu1 %v1002_v3  ;;  %973 = vset.pattern.permute.xlu0 %v1002_v3  ;;  %v578_v29 = vld [vmem:[%s1194_s6 + $0x10] sm:$0xff]  ;;  %v579_v30 = vld [vmem:[%s1194_s6 + $0x18] sm:$0xff]  ;;  %vm522_vm3 = vcmask 1043456   ;;  %vm610_vm4 = vcmask 31744   ;;  %vm617_vm5 = vcmask 1041408  }
   0xf   : > { %371 = vrot.lane.b32.xlu0 %v1079_v1, %s1003_s21  ;;  %940 = vmatpush3.bf16.msra.mxu1 %v1079_v1  ;;  %v576_v27 = vld [vmem:[%s1194_s6] sm:$0xff]  ;;  %vm670_vm6 = vcmask 23552  }
  0x10   : > { %514 = vperm.xlu1 %972, %v511_v2   ;;  %v545_v53 = vld [vmem:[%s1191_s3] sm:$0xf] }
  0x11   : > { %v975_v56 = vld [vmem:[%s1193_s5] sm:$0xff]  }
  0x12   : > { %942 = vmatmul.mubr.msk.bf16.vlgmr.msra.gmra.mxu1 %vm374_vm1, %v363_v4 }
  0x13   : > { %464 = vrot.lane.b32.xlu0 %v1079_v1, %s1004_s24  ;;  %953 = vmatprep.mubr.msk.bf16.mxu1 %vm610_vm4, %v975_v56 }
  0x81   : > { %v372_v5 = vpop.permute.xlu0 %371 }
  0x82   : > { %934 = vmatpush3.bf16.msra.mxu0 %v372_v5 }
  0x83   : > { %945 = vmatprep.subr.bf16.mxu0 %v1000_v0 }
  0x85   : > { %936 = vmatmul.mubr.msk.bf16.vlgmr.msra.gmra.mxu0 %vm374_vm1, %v904_v6  ;;  %v465_v7 = vpop.permute.xlu0 %464 }
  0x86   : > { %946 = vmatpush3.bf16.msra.mxu0 %v465_v7  ;;  %947 = vmatprep.mubr.msk.bf16.mxu0 %vm1001_vm0, %v1000_v0 }
  0x8b   : > { %v515_v19 = vpop.permute.xlu1 %514 }
  0x8d   : > { %948 = vmatmul.mubr.msk.bf16.vlgmr.msra.gmra.mxu0 %vm374_vm1, %v908_v8 }
  0xd2   : > { %v456_v9 = vpop.f32.mrf.mxu1 }
  0xd4   : > { %v943_v10 = vpop.f32.mrf.mxu1 }
  0xd6   : > { %v459_v11 = vpop.f32.mrf.mxu1 }
  0xd8   : > { %v944_v12 = vpop.f32.mrf.mxu1 }
 0x145   : > { %v412_v13 = vpop.f32.mrf.mxu0 }
 0x146   : > { %v457_v17 = vadd.f32 %v456_v9, %v412_v13  ;;  %v976_v9 = vld [vmem:[%s1193_s5 + $0x8] sm:$0xff]  }
 0x147   : > { %v937_v14 = vpop.f32.mrf.mxu0 }
 0x149   : > { %v415_v15 = vpop.f32.mrf.mxu0 }
 0x14b   : > { %v938_v16 = vpop.f32.mrf.mxu0 }
 0x14d   : > { %v504_v18 = vpop.f32.mrf.mxu0 }
 0x14e   : > { %v510_v20 = vadd.f32 %v504_v18, %v457_v17 }
 0x14f   : > { %v949_v21 = vpop.f32.mrf.mxu0 }
 0x150   : > { %v517_v22 = vadd.f32 %v515_v19, %v510_v20 }
 0x151   : > { %v507_v23 = vpop.f32.mrf.mxu0 }
 0x152   : > { %v519_v24 = vsel %vm518_vm2, %v517_v22, 0.0 }
 0x153   : > { %v950_v25 = vpop.f32.mrf.mxu0  ;;  %520 = vadd.xlane.f32.xlu1 %v519_v24 }
 0x164   : > { %558 = vperm.xlu1 %972, %v555_v26  }
 0x168   : > { %582 = vperm.xlu1 %972, %v576_v27  }
 0x16c   : > { %587 = vperm.xlu1 %972, %v577_v28  }
 0x170   : > { %592 = vperm.xlu1 %972, %v578_v29  }
 0x174   : > { %597 = vperm.xlu1 %972, %v579_v30  }
 0x1dc   : > { %v521_v31 = vpop.xlane.xlu1 %520 }
 0x1dd   : > { %v523_v32 = vsel %vm522_vm3, %v521_v31, 0.0 }
 0x1de   : > { %v524_v33 = vrot.slane %v523_v32, 4 }
 0x1e0   : > { %v525_v34 = vadd.f32 %v524_v33, %v523_v32  ;;  %v559_v59 = vpop.permute.xlu1 %558 }
 0x1e2   : > { %v526_v35 = vrot.slane %v525_v34, 2 }
 0x1e4   : > { %v527_v36 = vadd.f32 %v526_v35, %v525_v34  ;;  %v583_v10 = vpop.permute.xlu1 %582 }
 0x1e6   : > { %v528_v37 = vrot.slane %v527_v36, 1 }
 0x1e8   : > { %v529_v38 = vadd.f32 %v528_v37, %v527_v36  ;;  %v588_v11 = vpop.permute.xlu1 %587 }
 0x1ea   : > { %v531_v39 = vmul.f32 0.083333336, %v529_v38 }
 0x1ec   : > { %v532_v40 = vsub.f32 %v517_v22, %v531_v39  ;;  %v593_v13 = vpop.permute.xlu1 %592 }
 0x1ee   : > { %v533_v41 = vmul.f32 %v532_v40, %v532_v40 }
 0x1f0   : > { %v534_v42 = vsel %vm518_vm2, %v533_v41, 0.0  ;;  %v598_v21 = vpop.permute.xlu1 %597 }
 0x1f1   : > { %535 = vadd.xlane.f32.xlu0 %v534_v42 }
 0x27a   : > { %v536_v43 = vpop.xlane.xlu0 %535 }
 0x27b   : > { %v537_v44 = vsel %vm522_vm3, %v536_v43, 0.0 }
 0x27c   : > { %v538_v45 = vrot.slane %v537_v44, 4 }
 0x27e   : > { %v539_v46 = vadd.f32 %v538_v45, %v537_v44 }
 0x280   : > { %v540_v47 = vrot.slane %v539_v46, 2 }
 0x282   : > { %v541_v48 = vadd.f32 %v540_v47, %v539_v46 }
 0x284   : > { %v542_v49 = vrot.slane %v541_v48, 1 }
 0x286   : > { %v543_v50 = vadd.f32 %v542_v49, %v541_v48 }
 0x288   : > { %v544_v51 = vmul.f32 0.083333336, %v543_v50 }
 0x28a   : > { %v546_v52 = vadd.f32 1e-05, %v544_v51 }
 0x28c   : > { %978 = vrsqrt.f32 %v546_v52 }
 0x299   : > { %v979_v54 = vpop.eup %978 }
 0x29a   : > { %v548_v55 = vmul.f32 %v979_v54, %v545_v53 }
 0x29c   : > { %551 = vperm.xlu0 %973, %v548_v55  }
 0x317   : > { %v552_v57 = vpop.permute.xlu0 %551 }
 0x318   : > { %v554_v58 = vmul.f32 %v552_v57, %v532_v40 }
 0x31a   : > { %v561_v60 = vadd.f32 %v559_v59, %v554_v58 }
 0x31c   : > { %v563_v61 = vmul.f32 0.044715, %v561_v60  ;;  %v562_v4 = vmul.f32 0.5, %v561_v60 }
 0x31e   : > { %v564_v62 = vmul.f32 %v563_v61, %v561_v60 }
 0x320   : > { %v565_v63 = vmul.f32 %v564_v62, %v561_v60 }
 0x322   : > { %v566_v0 = vadd.f32 %v565_v63, %v561_v60 }
 0x324   : > { %v567_v2 = vmul.f32 0.7978846, %v566_v0 }
 0x326   : > { %980 = vtanh.f32 %v567_v2 }
 0x333   : > { %v981_v3 = vpop.eup %980 }
 0x334   : > { %v569_v5 = vadd.f32 1.0, %v981_v3 }
 0x336   : > { %v570_v6 = vmul.f32 %v569_v5, %v562_v4  ;;  %v727_v4 = vld [vmem:[%s1195_s7 + $0x18] sm:$0xff]  ;;  %v726_v5 = vld [vmem:[%s1195_s7 + $0x10] sm:$0xff] }
 0x338   : > { %v575_v7 = vpack.c.bf16 %v570_v6, %v570_v6 }
 0x33a   : > { %957 = vmatprep.subr.msk.bf16.mxu1 %vm617_vm5, %v575_v7  ;;  %v619_v8 = vsel %vm617_vm5, %v575_v7, 0 }
 0x33b   : > { %952 = vmatpush3.bf16.msra.mxu1 %v619_v8 }
 0x33e   : > { %954 = vmatmul.mubr.msk.bf16.vlgmr.msra.gmra.mxu1 %vm610_vm4, %v976_v9  ;;  %v760_v9 = vld [vmem:[%s1196_s8 + $0x10] sm:$0xff] }
 0x3fe   : > { %v955_v12 = vpop.f32.mrf.mxu1 }
 0x3ff   : > { %v664_v17 = vadd.f32 %v955_v12, %v593_v13  ;;  %v724_v12 = vld [vmem:[%s1195_s7] sm:$0xff] }
 0x400   : > { %v655_v14 = vpop.f32.mrf.mxu1 }
 0x401   : > { %v656_v15 = vadd.f32 %v655_v14, %v583_v10  ;;  %v677_v24 = vsel %vm670_vm6, %v664_v17, 0.0  ;;  %v761_v10 = vld [vmem:[%s1196_s8 + $0x18] sm:$0xff] }
 0x402   : > { %v956_v16 = vpop.f32.mrf.mxu1 }
 0x403   : > { %v671_v18 = vsel %vm670_vm6, %v656_v15, 0.0  ;;  %v667_v22 = vadd.f32 %v956_v16, %v598_v21  ;;  %v758_v16 = vld [vmem:[%s1196_s8] sm:$0xff] }
 0x404   : > { %v658_v19 = vpop.f32.mrf.mxu1  ;;  %672 = vadd.xlane.f32.xlu1 %v671_v18  ;;  %v802_v18 = vld [vmem:[%s1197_s9] sm:$0xff] }
 0x405   : > { %v659_v20 = vadd.f32 %v658_v19, %v588_v11  ;;  %v680_v25 = vsel %vm670_vm6, %v667_v22, 0.0  ;;  %v725_v11 = vld [vmem:[%s1195_s7 + $0x8] sm:$0xff] }
 0x407   : > { %v674_v23 = vsel %vm670_vm6, %v659_v20, 0.0 }
 0x408   : > { %675 = vadd.xlane.f32.xlu0 %v674_v23  ;;  %678 = vadd.xlane.f32.xlu1 %v677_v24 }
 0x40c   : > { %681 = vadd.xlane.f32.xlu1 %v680_v25 }
 0x48d   : > { %v673_v26 = vpop.xlane.xlu1 %672 }
 0x491   : > { %v676_v27 = vpop.xlane.xlu0 %675  ;;  %v679_v28 = vpop.xlane.xlu1 %678 }
 0x492   : > { %v683_v29 = vadd.f32 %v676_v27, %v673_v26 }
 0x494   : > { %v684_v30 = vadd.f32 %v683_v29, %v679_v28 }
 0x495   : > { %v682_v31 = vpop.xlane.xlu1 %681 }
 0x496   : > { %v685_v32 = vadd.f32 %v684_v30, %v682_v31 }
 0x498   : > { %v686_v33 = vrot.slane %v685_v32, 4 }
 0x49a   : > { %v687_v34 = vadd.f32 %v686_v33, %v685_v32 }
 0x49c   : > { %v688_v35 = vrot.slane %v687_v34, 2 }
 0x49e   : > { %v689_v36 = vadd.f32 %v688_v35, %v687_v34 }
 0x4a0   : > { %v690_v37 = vrot.slane %v689_v36, 1 }
 0x4a2   : > { %v691_v38 = vadd.f32 %v690_v37, %v689_v36 }
 0x4a4   : > { %v693_v39 = vmul.f32 0.010416667, %v691_v38 }
 0x4a6   : > { %v1130_v40 = vsub.f32 %v659_v20, %v693_v39  ;;  %v1132_v41 = vsub.f32 %v656_v15, %v693_v39  ;;  %v697_v42 = vsub.f32 %v667_v22, %v693_v39  ;;  %v696_v43 = vsub.f32 %v664_v17, %v693_v39  ;;  %v759_v15 = vld [vmem:[%s1196_s8 + $0x8] sm:$0xff] }
 0x4a7   : > { %v803_v17 = vld [vmem:[%s1197_s9 + $0x8] sm:$0xff] }
 0x4a8   : > { %v699_v44 = vmul.f32 %v1130_v40, %v1130_v40  ;;  %v698_v45 = vmul.f32 %v1132_v41, %v1132_v41  ;;  %v701_v48 = vmul.f32 %v697_v42, %v697_v42  ;;  %v700_v49 = vmul.f32 %v696_v43, %v696_v43 }
 0x4aa   : > { %v705_v46 = vsel %vm670_vm6, %v699_v44, 0.0  ;;  %v702_v47 = vsel %vm670_vm6, %v698_v45, 0.0  ;;  %v711_v50 = vsel %vm670_vm6, %v701_v48, 0.0  ;;  %v708_v51 = vsel %vm670_vm6, %v700_v49, 0.0 }
 0x4ab   : > { %706 = vadd.xlane.f32.xlu1 %v705_v46  ;;  %703 = vadd.xlane.f32.xlu0 %v702_v47 }
 0x4af   : > { %712 = vadd.xlane.f32.xlu1 %v711_v50  ;;  %709 = vadd.xlane.f32.xlu0 %v708_v51  ;;  %v800_v51 = vunpack.c.l.bf16 %v1079_v1 }
 0x534   : > { %v707_v52 = vpop.xlane.xlu1 %706  ;;  %v704_v53 = vpop.xlane.xlu0 %703 }
 0x535   : > { %v714_v54 = vadd.f32 %v707_v52, %v704_v53 }
 0x538   : > { %v710_v55 = vpop.xlane.xlu0 %709  ;;  %v713_v57 = vpop.xlane.xlu1 %712 }
 0x539   : > { %v715_v56 = vadd.f32 %v714_v54, %v710_v55 }
 0x53b   : > { %v716_v58 = vadd.f32 %v715_v56, %v713_v57 }
 0x53d   : > { %v717_v59 = vrot.slane %v716_v58, 4 }
 0x53f   : > { %v718_v60 = vadd.f32 %v717_v59, %v716_v58 }
 0x541   : > { %v719_v61 = vrot.slane %v718_v60, 2 }
 0x543   : > { %v720_v62 = vadd.f32 %v719_v61, %v718_v60 }
 0x545   : > { %v721_v63 = vrot.slane %v720_v62, 1 }
 0x547   : > { %v722_v0 = vadd.f32 %v721_v63, %v720_v62 }
 0x549   : > { %v723_v2 = vmul.f32 0.010416667, %v722_v0 }
 0x54b   : > { %v728_v3 = vadd.f32 1e-05, %v723_v2 }
 0x54d   : > { %982 = vrsqrt.f32 %v728_v3 }
 0x55a   : > { %v983_v6 = vpop.eup %982 }
 0x55b   : > { %v733_v7 = vmul.f32 %v983_v6, %v727_v4  ;;  %v732_v8 = vmul.f32 %v983_v6, %v726_v5  ;;  %v731_v13 = vmul.f32 %v983_v6, %v725_v11  ;;  %v730_v14 = vmul.f32 %v983_v6, %v724_v12 }
 0x55d   : > { %751 = vperm.xlu1 %972, %v733_v7   ;;  %746 = vperm.xlu0 %973, %v732_v8  }
 0x561   : > { %774 = vperm.xlu1 %972, %v760_v9   ;;  %779 = vperm.xlu0 %973, %v761_v10  }
 0x565   : > { %741 = vperm.xlu0 %973, %v731_v13   ;;  %736 = vperm.xlu1 %972, %v730_v14  }
 0x569   : > { %769 = vperm.xlu0 %973, %v759_v15   ;;  %764 = vperm.xlu1 %972, %v758_v16  }
 0x56d   : > { %811 = vperm.xlu0 %973, %v803_v17   ;;  %806 = vperm.xlu1 %972, %v802_v18  }
 0x5d8   : > { %v752_v19 = vpop.permute.xlu1 %751  ;;  %v747_v20 = vpop.permute.xlu0 %746 }
 0x5d9   : > { %v757_v21 = vmul.f32 %v752_v19, %v697_v42  ;;  %v756_v22 = vmul.f32 %v747_v20, %v696_v43 }
 0x5dc   : > { %v775_v23 = vpop.permute.xlu1 %774  ;;  %v780_v24 = vpop.permute.xlu0 %779 }
 0x5dd   : > { %v784_v25 = vadd.f32 %v775_v23, %v756_v22  ;;  %v785_v26 = vadd.f32 %v780_v24, %v757_v21 }
 0x5df   : > { %v914_v27 = vmul.f32 -1.442695, %v784_v25  ;;  %v915_v28 = vmul.f32 -1.442695, %v785_v26 }
 0x5e0   : > { %v737_v33 = vpop.permute.xlu1 %736  ;;  %v742_v34 = vpop.permute.xlu0 %741 }
 0x5e1   : > { %984 = vpow2.f32 %v914_v27  ;;  %v754_v36 = vmul.f32 %v737_v33, %v1132_v41  ;;  %v755_v38 = vmul.f32 %v742_v34, %v1130_v40  ;;  %v801_v41 = vunpack.c.h.bf16 %v1079_v1 }
 0x5e2   : > { %986 = vpow2.f32 %v915_v28 }
 0x5e4   : > { %v765_v35 = vpop.permute.xlu1 %764  ;;  %v770_v37 = vpop.permute.xlu0 %769 }
 0x5e5   : > { %v782_v39 = vadd.f32 %v765_v35, %v754_v36  ;;  %v783_v43 = vadd.f32 %v770_v37, %v755_v38 }
 0x5e8   : > { %v807_v47 = vpop.permute.xlu1 %806  ;;  %v812_v48 = vpop.permute.xlu0 %811 }
 0x5ee   : > { %v985_v29 = vpop.eup %984 }
 0x5ef   : > { %v987_v30 = vpop.eup %986  ;;  %v792_v31 = vadd.f32 1.0, %v985_v29 }
 0x5f0   : > { %v793_v32 = vadd.f32 1.0, %v987_v30 }
 0x5f1   : > { %988 = vrcp.f32 %v792_v31 }
 0x5f2   : > { %990 = vrcp.f32 %v793_v32 }
 0x5fe   : > { %v989_v42 = vpop.eup %988 }
 0x5ff   : > { %v991_v44 = vpop.eup %990  ;;  %v798_v45 = vmul.f32 %v989_v42, %v782_v39 }
 0x600   : > { %v799_v46 = vmul.f32 %v991_v44, %v783_v43 }
 0x601   : > { %v814_v49 = vmul.f32 %v807_v47, %v798_v45 }
 0x602   : > { %v815_v50 = vmul.f32 %v812_v48, %v799_v46 }
 0x603   : > { %818 = vrot.lane.b32.xlu1 %v814_v49, %s1005_s16 }
 0x604   : > { %820 = vrot.lane.b32.xlu0 %v815_v50, %s1005_s16 }
 0x675   : > { %v819_v52 = vpop.permute.xlu1 %818 }
 0x676   : > { %v821_v40 = vpop.permute.xlu0 %820  ;;  %v824_v53 = vadd.f32 %v819_v52, %v800_v51 }
 0x677   : > { %v825_v54 = vadd.f32 %v821_v40, %v801_v41 }
 0x678   : > { %v922_v55 = vpack.c.bf16 %v824_v53, %v824_v53 }
 0x679   : > { %v923_v56 = vpack.c.bf16 %v825_v54, %v825_v54 }
 0x67a   : > { %832 = vrot.lane.b32.xlu1 %v922_v55, %s1003_s21 }
 0x67b   : > { %834 = vrot.lane.b32.xlu0 %v923_v56, %s1003_s21 }
 0x6ec   : > { %v833_v57 = vpop.permute.xlu1 %832 }
 0x6ed   : > { %v835_v58 = vpop.permute.xlu0 %834  ;;  %838 = vst.msk [vmem:[%s359_s19] sm:$0xf] %vm518_vm2, %v833_v57 }
 0x6ee   : > { %839 = vst.msk [vmem:[%s359_s19 + $0x4] sm:$0xf] %vm518_vm2, %v835_v58 }
 0x6ef PF: > { %s20_s13 = sadd.s32 1, %s998_s13  }
 0x6f0   : > { %p17_p4 = scmp.ge.s32.totalorder %s20_s13, 4  }
 0x6f2   :  { %19 = sbr.rel (!%p17_p4) target bundleno = 1 (0x1), region = 92 }

// kernel: tile.13
= control target key start
LH: loop header
LB: loop body
LE: loop exit
PB: predicated region body
PF: predicated region fallthrough
CT: control target
= control target key end

     0   :  { %s22_s0 = inlined_call_operand.vmem [shape: f32[8], index: 0, kind: input, shape index: {}]   ;;  %s23_s1 = inlined_call_operand.vmem [shape: f32[4,8], index: 1, kind: output, shape index: {}]  }
   0x1   :  { %v4_v0 = vld [vmem:[%s22_s0] ss:$0 sm:$0xff] }
   0x2   :  { %5 = vst [vmem:[%s23_s1] sm:$0xf] %v4_v0 }

// kernel: tile.0
= control target key start
LH: loop header
LB: loop body
LE: loop exit
PB: predicated region body
PF: predicated region fallthrough
CT: control target
= control target key end

     0   :  { %s67_s8 = smov 125   ;;  %vm8_vm0 = vcmask 7168   ;;  %s68_s11 = smov 126   ;;  %s118_s0 = inlined_call_operand.vmem [shape: f32[4,8], index: 0, kind: input, shape index: {}]   ;;  %s119_s1 = inlined_call_operand.vmem [shape: f32[32,1], index: 1, kind: output, shape index: {}]  }
   0x1   :  { %v5_v0 = vld [vmem:[%s118_s0] sm:$0xf]  ;;  %s66_s0 = smov 127   ;;  %s69_s12 = smov 124  }
   0x2   :  { %6 = vst [vmem:[#allocation0] sm:$0xf] %v5_v0  ;;  %s70_s13 = smov 123   ;;  %s71_s14 = smov 122  }
   0x3   :  { %s72_s15 = smov 121  }
   0x9   :  { %v10_v1 = vld [vmem:[#allocation0] sm:$0xf]  }
   0xa   :  { %v22_v2 = vld [vmem:[#allocation0] sm:$0xf]   ;;  %11 = vrot.lane.b32.xlu0 %v10_v1, %s66_s0 }
   0xb   :  { %23 = vrot.lane.b32.xlu1 %v22_v2, %s67_s8  ;;  %v16_v3 = vld [vmem:[#allocation0] sm:$0xf]  }
   0xc   :  { %v28_v4 = vld [vmem:[#allocation0] sm:$0xf]  }
   0xd   :  { %v7_v5 = vld [vmem:[#allocation0] sm:$0xf]  }
   0xe   :  { %9 = vst.msk [vmem:[%s119_s1] ss:$8 sm:$0xf] %vm8_vm0, %v7_v5   ;;  %17 = vrot.lane.b32.xlu0 %v16_v3, %s68_s11  ;;  %v34_v6 = vld [vmem:[#allocation0] sm:$0xf]  }
   0xf   :  { %29 = vrot.lane.b32.xlu1 %v28_v4, %s69_s12  ;;  %v40_v7 = vld [vmem:[#allocation0] sm:$0xf]  }
  0x10   :  { %v46_v8 = vld [vmem:[#allocation0] sm:$0xf]  }
  0x12   :  { %35 = vrot.lane.b32.xlu0 %v34_v6, %s70_s13 }
  0x13   :  { %41 = vrot.lane.b32.xlu1 %v40_v7, %s71_s14 }
  0x16   :  { %47 = vrot.lane.b32.xlu0 %v46_v8, %s72_s15 }
  0x7c   :  { %v12_v9 = vpop.permute.xlu0 %11  }
  0x7d   :  { %v24_v10 = vpop.permute.xlu1 %23   ;;  %52 = vst.msk [vmem:[%s119_s1 + $0x1] ss:$8 sm:$0xf] %vm8_vm0, %v12_v9  }
  0x7e   :  { %54 = vst.msk [vmem:[%s119_s1 + $0x3] ss:$8 sm:$0xf] %vm8_vm0, %v24_v10  }
  0x80   :  { %v18_v11 = vpop.permute.xlu0 %17  }
  0x81   :  { %v30_v12 = vpop.permute.xlu1 %29   ;;  %53 = vst.msk [vmem:[%s119_s1 + $0x2] ss:$8 sm:$0xf] %vm8_vm0, %v18_v11  }
  0x82   :  { %55 = vst.msk [vmem:[%s119_s1 + $0x4] ss:$8 sm:$0xf] %vm8_vm0, %v30_v12  }
  0x84   :  { %v36_v13 = vpop.permute.xlu0 %35  }
  0x85   :  { %v42_v14 = vpop.permute.xlu1 %41   ;;  %56 = vst.msk [vmem:[%s119_s1 + $0x5] ss:$8 sm:$0xf] %vm8_vm0, %v36_v13  }
  0x86   :  { %57 = vst.msk [vmem:[%s119_s1 + $0x6] ss:$8 sm:$0xf] %vm8_vm0, %v42_v14  }
  0x88   :  { %v48_v15 = vpop.permute.xlu0 %47  }
  0x89   :  { %58 = vst.msk [vmem:[%s119_s1 + $0x7] ss:$8 sm:$0xf] %vm8_vm0, %v48_v15  }

// kernel: drumamba_forward.20
= control target key start
LH: loop header
LB: loop body
LE: loop exit
PB: predicated region body
PF: predicated region fallthrough
CT: control target
= control target key end

     0   :  { %s778_s15 = smov 0   ;;  %s780_s16 = smov 0   ;;  %s855_s0 = inlined_call_operand.vmem [shape: bf16[2,16,5], index: 0, kind: input, shape index: {}, may-alias: {0,1}]   ;;  %s856_s1 = inlined_call_operand.vmem [shape: bf16[2,16,5], index: 1, kind: input, shape index: {}, may-alias: {0,1}]   ;;  %s857_s2 = inlined_call_operand.vmem [shape: bf16[3,32,16], index: 2, kind: input, shape index: {}]   ;;  %s858_s3 = inlined_call_operand.vmem [shape: f32[32,1], index: 3, kind: input, shape index: {}]   ;;  %s859_s4 = inlined_call_operand.vmem [shape: bf16[2,16,3], index: 4, kind: output, shape index: {}]  }
   0x1   :  { %s782_s17 = smov 0  }
   0x2 LB: > { %s26_s18 = sadd.s32 1, %s744_s16  ;;  %p617_p0 = scmp.ge.s32.totalorder %s748_s17, 1  ;;  %s748_s17 = sphi %s782_s17, %s14_s17   ;;  %s744_s16 = sphi %s780_s16, %s861_s16   ;;  %s740_s15 = sphi %s778_s15, %s860_s15  }
   0x3   : > { %p28_p1 = scmp.ge.s32.totalorder %s26_s18, 2  ;;  %p186_p2 = scmp.lt.s32.totalorder %s748_s17, 3 }
   0x5   : > { %s863_s18 = smov (%p28_p1, %s26_s18), 0  ;;  %p187_p3 = pnand %p617_p0, %p186_p2 }
   0x6   : > { %p220_p4 = scmp.lt.s32.totalorder (!%p187_p3), %s740_s15, 1  ;;  %s750_s6 = smov (!%p187_p3), 127  }
   0x7   : > { %190 = sbr.rel (%p187_p3) target bundleno = 386 (0x182), region = 36  ;;  %s752_s11 = smov (!%p187_p3), 126  }
   0xc   : > { %v712_v0 = vld [vmem:[%s857_s2 + $0x10] sm:$0xff]   ;;  %vm272_vm0 = vcmask 130048   ;;  %v713_v1 = vld [vmem:[%s857_s2] sm:$0xff]   ;;  %s865_s15 = smov (!%p220_p4, %s740_s15), 1  ;;  %v715_v10 = vld [vmem:[%s857_s2 + $0x8] sm:$0xff]   ;;  %v751_v11 = vmov 0  }
   0xd   : > { %667 = vmatprep.mubr.msk.bf16.mxu0 %vm272_vm0, %v712_v0  ;;  %673 = vmatprep.mubr.msk.bf16.mxu1 %vm272_vm0, %v713_v1  ;;  %s804_s23 = sshll.u32 %s865_s15, 3  ;;  %v473_v9 = vld [vmem:[%s858_s3 + $0x10] sm:$0xff]  ;;  %v474_v12 = vld [vmem:[%s858_s3 + $0x18] sm:$0xff]  ;;  %v471_v13 = vld [vmem:[%s858_s3] sm:$0xff]  ;;  %vm521_vm1 = vcmask 19456  }
   0xe   : > { %s224_s26 = scalar_lea.vmem %s855_s0, %s804_s23  ;;  %s229_s29 = scalar_lea.vmem %s856_s1, %s804_s23  ;;  %710 = vset.pattern.permute.xlu1 %v751_v11  ;;  %711 = vset.pattern.permute.xlu0 %v751_v11  ;;  %v472_v14 = vld [vmem:[%s858_s3 + $0x8] sm:$0xff]  ;;  %v714_v16 = vld [vmem:[%s857_s2 + $0x18] sm:$0xff]   ;;  %v716_v17 = vld [vmem:[%s857_s2 + $0x20] sm:$0xff]  }
   0xf   : > { %v239_v2 = vld [vmem:[%s224_s26] sm:$0xf]  ;;  %v240_v3 = vld [vmem:[%s224_s26 + $0x4] sm:$0xf]  ;;  %487 = vperm.xlu1 %710, %v473_v9   ;;  %v717_v19 = vld [vmem:[%s857_s2 + $0x28] sm:$0xff]   ;;  %s237_s28 = scalar_lea.vmem %s859_s4, %s804_s23 }
  0x10   : > { %v241_v4 = vld [vmem:[%s229_s29] sm:$0xf]  ;;  %v242_v5 = vld [vmem:[%s229_s29 + $0x4] sm:$0xf] }
  0x11   : > { %v243_v6 = vadd.bf16 %v241_v4, %v239_v2  ;;  %v244_v7 = vadd.bf16 %v242_v5, %v240_v3 }
  0x13   : > { %v630_v8 = vcombine.low %v243_v6, %v244_v7  ;;  %492 = vperm.xlu1 %710, %v474_v12  }
  0x15   : > { %269 = vrot.lane.b32.xlu0 %v630_v8, %s750_s6  ;;  %671 = vmatprep.subr.bf16.mxu1 %v630_v8 }
  0x16   : > { %672 = vmatpush3.bf16.msra.mxu1 %v630_v8 }
  0x17   : > { %482 = vperm.xlu1 %710, %v472_v14  }
  0x19   : > { %409 = vrot.lane.b32.xlu0 %v630_v8, %s752_s11  ;;  %674 = vmatmul.mubr.msk.bf16.vlgmr.msra.gmra.mxu1 %vm272_vm0, %v715_v10 }
  0x1d   : > { %477 = vperm.xlu0 %711, %v471_v13  }
  0x87   : > { %v270_v15 = vpop.permute.xlu0 %269 }
  0x88   : > { %665 = vmatprep.subr.bf16.mxu0 %v270_v15 }
  0x89   : > { %666 = vmatpush3.bf16.msra.mxu0 %v270_v15 }
  0x8a   : > { %v488_v27 = vpop.permute.xlu1 %487 }
  0x8b   : > { %v410_v18 = vpop.permute.xlu0 %409 }
  0x8c   : > { %668 = vmatmul.mubr.msk.bf16.vlgmr.msra.gmra.mxu0 %vm272_vm0, %v714_v16  ;;  %677 = vmatprep.subr.bf16.mxu0 %v410_v18 }
  0x8d   : > { %678 = vmatpush3.bf16.msra.mxu0 %v410_v18  ;;  %679 = vmatprep.mubr.msk.bf16.mxu0 %vm272_vm0, %v716_v17 }
  0x8e   : > { %v493_v37 = vpop.permute.xlu1 %492 }
  0x92   : > { %v483_v54 = vpop.permute.xlu1 %482 }
  0x94   : > { %680 = vmatmul.mubr.msk.bf16.vlgmr.msra.gmra.mxu0 %vm272_vm0, %v717_v19 }
  0x98   : > { %v478_v47 = vpop.permute.xlu0 %477 }
  0xd9   : > { %v675_v21 = vpop.f32.mrf.mxu1 }
  0xdb   : > { %v379_v23 = vpop.f32.mrf.mxu1 }
  0xdd   : > { %v676_v28 = vpop.f32.mrf.mxu1 }
  0xdf   : > { %v382_v45 = vpop.f32.mrf.mxu1 }
 0x14c   : > { %v669_v20 = vpop.f32.mrf.mxu0 }
 0x14d   : > { %v388_v26 = vadd.f32 %v675_v21, %v669_v20 }
 0x14e   : > { %v313_v22 = vpop.f32.mrf.mxu0 }
 0x14f   : > { %v380_v44 = vadd.f32 %v379_v23, %v313_v22 }
 0x150   : > { %v670_v24 = vpop.f32.mrf.mxu0 }
 0x151   : > { %v391_v32 = vadd.f32 %v676_v28, %v670_v24 }
 0x152   : > { %v316_v25 = vpop.f32.mrf.mxu0 }
 0x153   : > { %v383_v49 = vadd.f32 %v382_v45, %v316_v25 }
 0x154   : > { %v681_v29 = vpop.f32.mrf.mxu0 }
 0x155   : > { %v469_v30 = vadd.f32 %v681_v29, %v388_v26 }
 0x156   : > { %v452_v31 = vpop.f32.mrf.mxu0 }
 0x157   : > { %v497_v33 = vadd.f32 %v488_v27, %v469_v30  ;;  %v467_v46 = vadd.f32 %v452_v31, %v380_v44 }
 0x158   : > { %v682_v34 = vpop.f32.mrf.mxu0 }
 0x159   : > { %v645_v35 = vmul.f32 -1.442695, %v497_v33  ;;  %v470_v36 = vadd.f32 %v682_v34, %v391_v32  ;;  %v495_v50 = vadd.f32 %v478_v47, %v467_v46 }
 0x15a   : > { %v455_v48 = vpop.f32.mrf.mxu0 }
 0x15b   : > { %718 = vpow2.f32 %v645_v35  ;;  %v498_v38 = vadd.f32 %v493_v37, %v470_v36  ;;  %v468_v51 = vadd.f32 %v455_v48, %v383_v49 }
 0x15d   : > { %v646_v39 = vmul.f32 -1.442695, %v498_v38  ;;  %v496_v56 = vadd.f32 %v483_v54, %v468_v51 }
 0x15f   : > { %720 = vpow2.f32 %v646_v39 }
 0x168   : > { %v719_v40 = vpop.eup %718 }
 0x169   : > { %v505_v41 = vadd.f32 1.0, %v719_v40 }
 0x16b   : > { %722 = vrcp.f32 %v505_v41 }
 0x16c   : > { %v721_v42 = vpop.eup %720 }
 0x16d   : > { %v506_v43 = vadd.f32 1.0, %v721_v42 }
 0x16f   : > { %724 = vrcp.f32 %v506_v43 }
 0x178   : > { %v723_v52 = vpop.eup %722 }
 0x179   : > { %v511_v53 = vmul.f32 %v723_v52, %v495_v50 }
 0x17b   : > { %v654_v55 = vpack.c.bf16 %v511_v53, %v511_v53 }
 0x17c   : > { %v725_v57 = vpop.eup %724 }
 0x17d   : > { %522 = vst.msk [vmem:[%s237_s28] sm:$0xf] %vm521_vm1, %v654_v55  ;;  %v512_v58 = vmul.f32 %v725_v57, %v496_v56 }
 0x17f   : > { %v655_v59 = vpack.c.bf16 %v512_v58, %v512_v58 }
 0x181   : > { %523 = vst.msk [vmem:[%s237_s28 + $0x4] sm:$0xf] %vm521_vm1, %v655_v59 }
 0x182 PF: > { %s14_s17 = sadd.s32 1, %s748_s17   ;;  %s860_s15 = smov %s744_s16 }
 0x183   : > { %p11_p5 = scmp.ge.s32.totalorder %s14_s17, 4   ;;  %s861_s16 = smov %s863_s18 }
 0x185   :  { %13 = sbr.rel (!%p11_p5) target bundleno = 2 (0x2), region = 71 }

// kernel: tile.18
= control target key start
LH: loop header
LB: loop body
LE: loop exit
PB: predicated region body
PF: predicated region fallthrough
CT: control target
= control target key end

     0   :  { %s22_s0 = inlined_call_operand.vmem [shape: f32[4], index: 0, kind: input, shape index: {}]   ;;  %s23_s1 = inlined_call_operand.vmem [shape: f32[4,4], index: 1, kind: output, shape index: {}]  }
   0x1   :  { %v4_v0 = vld [vmem:[%s22_s0] ss:$0 sm:$0xff] }
   0x2   :  { %5 = vst [vmem:[%s23_s1] sm:$0xf] %v4_v0 }

// kernel: tile.1
= control target key start
LH: loop header
LB: loop body
LE: loop exit
PB: predicated region body
PF: predicated region fallthrough
CT: control target
= control target key end

     0   :  { %s35_s8 = smov 125   ;;  %vm8_vm0 = vcmask 7168   ;;  %s36_s11 = smov 126   ;;  %s62_s0 = inlined_call_operand.vmem [shape: f32[4,4], index: 0, kind: input, shape index: {}]   ;;  %s63_s1 = inlined_call_operand.vmem [shape: f32[16,1], index: 1, kind: output, shape index: {}]  }
   0x1   :  { %v5_v0 = vld [vmem:[%s62_s0] sm:$0xf]  ;;  %s34_s0 = smov 127  }
   0x2   :  { %6 = vst [vmem:[#allocation0] sm:$0xf] %v5_v0 }
   0x9   :  { %v10_v1 = vld [vmem:[#allocation0] sm:$0xf]  }
   0xa   :  { %v22_v2 = vld [vmem:[#allocation0] sm:$0xf]   ;;  %11 = vrot.lane.b32.xlu0 %v10_v1, %s34_s0 }
   0xb   :  { %23 = vrot.lane.b32.xlu1 %v22_v2, %s35_s8  ;;  %v7_v3 = vld [vmem:[#allocation0] sm:$0xf]  }
   0xc   :  { %v16_v4 = vld [vmem:[#allocation0] sm:$0xf]   ;;  %9 = vst.msk [vmem:[%s63_s1] ss:$4 sm:$0xf] %vm8_vm0, %v7_v3  }
   0xe   :  { %17 = vrot.lane.b32.xlu0 %v16_v4, %s36_s11 }
  0x7c   :  { %v12_v5 = vpop.permute.xlu0 %11  }
  0x7d   :  { %v24_v6 = vpop.permute.xlu1 %23   ;;  %28 = vst.msk [vmem:[%s63_s1 + $0x1] ss:$4 sm:$0xf] %vm8_vm0, %v12_v5  }
  0x7e   :  { %30 = vst.msk [vmem:[%s63_s1 + $0x3] ss:$4 sm:$0xf] %vm8_vm0, %v24_v6  }
  0x80   :  { %v18_v7 = vpop.permute.xlu0 %17  }
  0x81   :  { %29 = vst.msk [vmem:[%s63_s1 + $0x2] ss:$4 sm:$0xf] %vm8_vm0, %v18_v7  }

// kernel: drumamba_forward.21
= control target key start
LH: loop header
LB: loop body
LE: loop exit
PB: predicated region body
PF: predicated region fallthrough
CT: control target
= control target key end

     0   :  { %s644_s12 = smov 0   ;;  %s646_s13 = smov 0   ;;  %s713_s0 = inlined_call_operand.vmem [shape: bf16[2,16,5], index: 0, kind: input, shape index: {}]   ;;  %s714_s1 = inlined_call_operand.vmem [shape: bf16[2,32,16], index: 1, kind: input, shape index: {}]   ;;  %s715_s2 = inlined_call_operand.vmem [shape: f32[32,1], index: 2, kind: input, shape index: {}]   ;;  %s716_s3 = inlined_call_operand.vmem [shape: bf16[2,32,4], index: 3, kind: output, shape index: {}]  }
   0x1   :  { %s648_s14 = smov 0  }
   0x2 LB: > { %s25_s15 = sadd.s32 1, %s616_s13  ;;  %p509_p0 = scmp.ge.s32.totalorder %s620_s14, 1  ;;  %s620_s14 = sphi %s648_s14, %s13_s14   ;;  %s616_s13 = sphi %s646_s13, %s718_s13   ;;  %s612_s12 = sphi %s644_s12, %s717_s12  }
   0x3   : > { %p27_p1 = scmp.ge.s32.totalorder %s25_s15, 2  ;;  %p151_p2 = scmp.lt.s32.totalorder %s620_s14, 3 }
   0x5   : > { %s720_s15 = smov (%p27_p1, %s25_s15), 0  ;;  %p152_p3 = pnand %p509_p0, %p151_p2 }
   0x6   : > { %p178_p4 = scmp.lt.s32.totalorder (!%p152_p3), %s612_s12, 1  ;;  %s623_s28 = smov (!%p152_p3), 127  }
   0x7   : > { %155 = sbr.rel (%p152_p3) target bundleno = 369 (0x171), region = 32 }
   0xc   : > { %vm221_vm0 = vcmask 130048   ;;  %v586_v0 = vld [vmem:[%s714_s1] sm:$0xff]   ;;  %s722_s12 = smov (!%p178_p4, %s612_s12), 1  ;;  %v588_v1 = vld [vmem:[%s714_s1 + $0x10] sm:$0xff]   ;;  %v622_v2 = vmov 0   ;;  %v344_v3 = vld [vmem:[%s715_s2 + $0x8] sm:$0xff] }
   0xd   : > { %553 = vmatprep.mubr.msk.bf16.mxu1 %vm221_vm0, %v586_v0  ;;  %s533_s20 = sshll.u32 %s722_s12, 3  ;;  %584 = vset.pattern.permute.xlu1 %v622_v2  ;;  %v345_v4 = vld [vmem:[%s715_s2 + $0x10] sm:$0xff]  ;;  %v587_v6 = vld [vmem:[%s714_s1 + $0x8] sm:$0xff]   ;;  %v343_v7 = vld [vmem:[%s715_s2] sm:$0xff]  ;;  %s534_s10 = sshll.u32 %s722_s12, 4  ;;  %vm423_vm1 = vcmask 27648  }
   0xe   : > { %583 = vset.pattern.permute.xlu0 %v622_v2  ;;  %s182_s25 = scalar_lea.vmem %s713_s0, %s533_s20  ;;  %547 = vmatprep.mubr.msk.bf16.mxu0 %vm221_vm0, %v588_v1  ;;  %v346_v8 = vld [vmem:[%s715_s2 + $0x18] sm:$0xff]  ;;  %s190_s17 = scalar_lea.vmem %s716_s3, %s534_s10 }
   0xf   : > { %354 = vperm.xlu1 %584, %v344_v3   ;;  %v585_v5 = vld [vmem:[%s182_s25] sm:$0xff]   ;;  %v589_v10 = vld [vmem:[%s714_s1 + $0x18] sm:$0xff]  }
  0x10   : > { %218 = vrot.lane.b32.xlu0 %v585_v5, %s623_s28  ;;  %551 = vmatprep.subr.bf16.mxu1 %v585_v5 }
  0x11   : > { %552 = vmatpush3.bf16.msra.mxu1 %v585_v5 }
  0x13   : > { %359 = vperm.xlu1 %584, %v345_v4  }
  0x14   : > { %554 = vmatmul.mubr.msk.bf16.vlgmr.msra.gmra.mxu1 %vm221_vm0, %v587_v6  ;;  %349 = vperm.xlu0 %583, %v343_v7  }
  0x17   : > { %364 = vperm.xlu1 %584, %v346_v8  }
  0x82   : > { %v219_v9 = vpop.permute.xlu0 %218 }
  0x83   : > { %545 = vmatprep.subr.bf16.mxu0 %v219_v9 }
  0x84   : > { %546 = vmatpush3.bf16.msra.mxu0 %v219_v9 }
  0x87   : > { %548 = vmatmul.mubr.msk.bf16.vlgmr.msra.gmra.mxu0 %vm221_vm0, %v589_v10 }
  0x8a   : > { %v355_v11 = vpop.permute.xlu1 %354 }
  0x8e   : > { %v360_v14 = vpop.permute.xlu1 %359 }
  0x8f   : > { %v350_v18 = vpop.permute.xlu0 %349 }
  0x92   : > { %v365_v26 = vpop.permute.xlu1 %364 }
  0xd4   : > { %v555_v12 = vpop.f32.mrf.mxu1 }
  0xd6   : > { %v328_v13 = vpop.f32.mrf.mxu1 }
  0xd8   : > { %v556_v19 = vpop.f32.mrf.mxu1 }
  0xda   : > { %v331_v29 = vpop.f32.mrf.mxu1 }
 0x147   : > { %v549_v15 = vpop.f32.mrf.mxu0 }
 0x148   : > { %v337_v16 = vadd.f32 %v555_v12, %v549_v15 }
 0x149   : > { %v262_v17 = vpop.f32.mrf.mxu0 }
 0x14a   : > { %v369_v20 = vadd.f32 %v360_v14, %v337_v16  ;;  %v329_v21 = vadd.f32 %v328_v13, %v262_v17 }
 0x14b   : > { %v550_v22 = vpop.f32.mrf.mxu0 }
 0x14c   : > { %v377_v23 = vmul.f32 0.044715, %v369_v20  ;;  %v340_v24 = vadd.f32 %v556_v19, %v550_v22  ;;  %v367_v25 = vadd.f32 %v350_v18, %v329_v21  ;;  %v373_v52 = vmul.f32 0.5, %v369_v20 }
 0x14d   : > { %v265_v27 = vpop.f32.mrf.mxu0 }
 0x14e   : > { %v381_v28 = vmul.f32 %v377_v23, %v369_v20  ;;  %v370_v30 = vadd.f32 %v365_v26, %v340_v24  ;;  %v375_v31 = vmul.f32 0.044715, %v367_v25  ;;  %v332_v32 = vadd.f32 %v331_v29, %v265_v27 }
 0x14f   : > { %v371_v56 = vmul.f32 0.5, %v367_v25 }
 0x150   : > { %v385_v33 = vmul.f32 %v381_v28, %v369_v20  ;;  %v378_v34 = vmul.f32 0.044715, %v370_v30  ;;  %v379_v35 = vmul.f32 %v375_v31, %v367_v25  ;;  %v368_v36 = vadd.f32 %v355_v11, %v332_v32 }
 0x151   : > { %v374_v60 = vmul.f32 0.5, %v370_v30 }
 0x152   : > { %v389_v37 = vadd.f32 %v385_v33, %v369_v20  ;;  %v382_v38 = vmul.f32 %v378_v34, %v370_v30  ;;  %v383_v39 = vmul.f32 %v379_v35, %v367_v25  ;;  %v376_v40 = vmul.f32 0.044715, %v368_v36 }
 0x153   : > { %v372_v2 = vmul.f32 0.5, %v368_v36 }
 0x154   : > { %v393_v41 = vmul.f32 0.7978846, %v389_v37  ;;  %v386_v42 = vmul.f32 %v382_v38, %v370_v30  ;;  %v387_v43 = vadd.f32 %v383_v39, %v367_v25  ;;  %v380_v44 = vmul.f32 %v376_v40, %v368_v36 }
 0x156   : > { %590 = vtanh.f32 %v393_v41  ;;  %v390_v45 = vadd.f32 %v386_v42, %v370_v30  ;;  %v391_v46 = vmul.f32 0.7978846, %v387_v43  ;;  %v384_v47 = vmul.f32 %v380_v44, %v368_v36 }
 0x158   : > { %v394_v48 = vmul.f32 0.7978846, %v390_v45  ;;  %592 = vtanh.f32 %v391_v46  ;;  %v388_v49 = vadd.f32 %v384_v47, %v368_v36 }
 0x15a   : > { %594 = vtanh.f32 %v394_v48  ;;  %v392_v50 = vmul.f32 0.7978846, %v388_v49 }
 0x15c   : > { %596 = vtanh.f32 %v392_v50 }
 0x163   : > { %v591_v51 = vpop.eup %590 }
 0x164   : > { %v401_v53 = vadd.f32 1.0, %v591_v51 }
 0x165   : > { %v593_v54 = vpop.eup %592 }
 0x166   : > { %v405_v55 = vmul.f32 %v401_v53, %v373_v52  ;;  %v399_v57 = vadd.f32 1.0, %v593_v54 }
 0x167   : > { %v595_v58 = vpop.eup %594 }
 0x168   : > { %v537_v59 = vpack.c.bf16 %v405_v55, %v405_v55  ;;  %v402_v61 = vadd.f32 1.0, %v595_v58  ;;  %v403_v62 = vmul.f32 %v399_v57, %v371_v56 }
 0x169   : > { %v597_v63 = vpop.eup %596 }
 0x16a   : > { %426 = vst.msk [vmem:[%s190_s17 + $0x8] sm:$0xf] %vm423_vm1, %v537_v59  ;;  %v406_v0 = vmul.f32 %v402_v61, %v374_v60  ;;  %v535_v1 = vpack.c.bf16 %v403_v62, %v403_v62  ;;  %v400_v3 = vadd.f32 1.0, %v597_v63 }
 0x16c   : > { %v538_v4 = vpack.c.bf16 %v406_v0, %v406_v0  ;;  %424 = vst.msk [vmem:[%s190_s17] sm:$0xf] %vm423_vm1, %v535_v1  ;;  %v404_v5 = vmul.f32 %v400_v3, %v372_v2 }
 0x16e   : > { %427 = vst.msk [vmem:[%s190_s17 + $0xc] sm:$0xf] %vm423_vm1, %v538_v4  ;;  %v536_v6 = vpack.c.bf16 %v404_v5, %v404_v5 }
 0x170   : > { %425 = vst.msk [vmem:[%s190_s17 + $0x4] sm:$0xf] %vm423_vm1, %v536_v6 }
 0x171 PF: > { %s13_s14 = sadd.s32 1, %s620_s14   ;;  %s717_s12 = smov %s616_s13 }
 0x172   : > { %p10_p5 = scmp.ge.s32.totalorder %s13_s14, 4   ;;  %s718_s13 = smov %s720_s15 }
 0x174   :  { %12 = sbr.rel (!%p10_p5) target bundleno = 2 (0x2), region = 63 }

// kernel: drumamba_forward.22
= control target key start
LH: loop header
LB: loop body
LE: loop exit
PB: predicated region body
PF: predicated region fallthrough
CT: control target
= control target key end

     0   :  { %s654_s15 = smov 0   ;;  %s656_s16 = smov 0   ;;  %s719_s0 = inlined_call_operand.vmem [shape: bf16[2,8,18], index: 0, kind: input, shape index: {}]   ;;  %s720_s1 = inlined_call_operand.vmem [shape: bf16[2,8,18], index: 1, kind: input, shape index: {}]   ;;  %s721_s2 = inlined_call_operand.vmem [shape: bf16[3,16,8], index: 2, kind: input, shape index: {}]   ;;  %s722_s3 = inlined_call_operand.vmem [shape: f32[16,1], index: 3, kind: input, shape index: {}]   ;;  %s723_s4 = inlined_call_operand.vmem [shape: bf16[2,8,16], index: 4, kind: output, shape index: {}]  }
   0x1   :  { %s658_s17 = smov 0  }
   0x2 LB: > { %s26_s18 = sadd.s32 1, %s618_s16  ;;  %p520_p0 = scmp.ge.s32.totalorder %s622_s17, 1  ;;  %s622_s17 = sphi %s658_s17, %s14_s17   ;;  %s618_s16 = sphi %s656_s16, %s725_s16   ;;  %s614_s15 = sphi %s654_s15, %s724_s15  }
   0x3   : > { %p28_p1 = scmp.ge.s32.totalorder %s26_s18, 2  ;;  %p184_p2 = scmp.lt.s32.totalorder %s622_s17, 3 }
   0x5   : > { %s727_s18 = smov (%p28_p1, %s26_s18), 0  ;;  %p185_p3 = pnand %p520_p0, %p184_p2 }
   0x6   : > { %p215_p4 = scmp.lt.s32.totalorder (!%p185_p3), %s614_s15, 1  ;;  %s626_s30 = smov (!%p185_p3), 127  }
   0x7   : > { %188 = sbr.rel (%p185_p3) target bundleno = 386 (0x182), region = 36  ;;  %s628_s7 = smov (!%p185_p3), 126  }
   0xc   : > { %v624_v0 = vmov 0.0   ;;  %s729_s15 = smov (!%p215_p4, %s614_s15), 1  ;;  %vm625_vm0 = vmmov 0   ;;  %vm253_vm1 = vcmask 1043456   ;;  %v594_v6 = vld [vmem:[%s721_s2] sm:$0xff]   ;;  %vm249_vm2 = vcmask 64512  }
   0xd   : > { %544 = vmatprep.subr.bf16.mxu0 %v624_v0  ;;  %550 = vmatprep.subr.bf16.mxu1 %v624_v0  ;;  %s674_s19 = sshll.u32 %s729_s15, 2  ;;  %v410_v7 = vld [vmem:[%s722_s3 + $0x8] sm:$0xff]  ;;  %v627_v8 = vmov 0   ;;  %v409_v9 = vld [vmem:[%s722_s3] sm:$0xff]  ;;  %v595_v15 = vld [vmem:[%s721_s2 + $0x10] sm:$0xff]   ;;  %vm431_vm3 = vcmask 125952  }
   0xe   : > { %546 = vmatprep.mubr.msk.bf16.mxu0 %vm625_vm0, %v624_v0  ;;  %552 = vmatprep.mubr.msk.bf16.mxu1 %vm625_vm0, %v624_v0  ;;  %s218_s22 = scalar_lea.vmem %s719_s0, %s674_s19  ;;  %s222_s25 = scalar_lea.vmem %s720_s1, %s674_s19  ;;  %v593_v12 = vld [vmem:[%s721_s2 + $0x8] sm:$0xff]  }
   0xf   : > { %v231_v1 = vld [vmem:[%s218_s22] sm:$0xf]  ;;  %591 = vset.pattern.permute.xlu1 %v627_v8  ;;  %592 = vset.pattern.permute.xlu0 %v627_v8  ;;  %s229_s14 = scalar_lea.vmem %s723_s4, %s674_s19 }
  0x10   : > { %v232_v2 = vld [vmem:[%s222_s25] sm:$0xf]  ;;  %418 = vperm.xlu1 %591, %v410_v7  }
  0x11   : > { %v233_v3 = vadd.bf16 %v232_v2, %v231_v1 }
  0x13   : > { %v527_v4 = vcombine.low %v233_v3, %v233_v3  ;;  %v307_v5 = vsel %vm253_vm1, %v233_v3, 0 }
  0x14   : > { %551 = vmatpush3.bf16.msra.mxu1 %v307_v5  ;;  %413 = vperm.xlu1 %591, %v409_v9  }
  0x15   : > { %247 = vrot.lane.b32.xlu0 %v527_v4, %s626_s30 }
  0x17   : > { %553 = vmatmul.mubr.msk.bf16.vlgmr.msra.gmra.mxu1 %vm249_vm2, %v594_v6 }
  0x19   : > { %358 = vrot.lane.b32.xlu0 %v527_v4, %s628_s7 }
  0x87   : > { %v248_v10 = vpop.permute.xlu0 %247 }
  0x88   : > { %v255_v11 = vsel %vm253_vm1, %v248_v10, 0 }
  0x89   : > { %545 = vmatpush3.bf16.msra.mxu0 %v255_v11 }
  0x8a   : > { %556 = vmatprep.subr.bf16.mxu0 %v624_v0 }
  0x8b   : > { %v359_v13 = vpop.permute.xlu0 %358  ;;  %v419_v29 = vpop.permute.xlu1 %418 }
  0x8c   : > { %v364_v14 = vsel %vm253_vm1, %v359_v13, 0  ;;  %547 = vmatmul.mubr.msk.bf16.vlgmr.msra.gmra.mxu0 %vm249_vm2, %v593_v12 }
  0x8d   : > { %557 = vmatpush3.bf16.msra.mxu0 %v364_v14  ;;  %558 = vmatprep.mubr.msk.bf16.mxu0 %vm625_vm0, %v624_v0 }
  0x8f   : > { %v414_v37 = vpop.permute.xlu1 %413 }
  0x94   : > { %559 = vmatmul.mubr.msk.bf16.vlgmr.msra.gmra.mxu0 %vm249_vm2, %v595_v15 }
  0xd7   : > { %v343_v16 = vpop.f32.mrf.mxu1 }
  0xd9   : > { %v554_v17 = vpop.f32.mrf.mxu1 }
  0xdb   : > { %v346_v18 = vpop.f32.mrf.mxu1 }
  0xdd   : > { %v555_v19 = vpop.f32.mrf.mxu1 }
 0x14c   : > { %v291_v20 = vpop.f32.mrf.mxu0 }
 0x14d   : > { %v344_v35 = vadd.f32 %v343_v16, %v291_v20 }
 0x14e   : > { %v548_v21 = vpop.f32.mrf.mxu0 }
 0x150   : > { %v294_v22 = vpop.f32.mrf.mxu0 }
 0x151   : > { %v347_v26 = vadd.f32 %v346_v18, %v294_v22 }
 0x152   : > { %v549_v23 = vpop.f32.mrf.mxu0 }
 0x154   : > { %v400_v24 = vpop.f32.mrf.mxu0 }
 0x155   : > { %v407_v36 = vadd.f32 %v400_v24, %v344_v35 }
 0x156   : > { %v560_v25 = vpop.f32.mrf.mxu0 }
 0x157   : > { %v421_v38 = vadd.f32 %v414_v37, %v407_v36 }
 0x158   : > { %v403_v27 = vpop.f32.mrf.mxu0 }
 0x159   : > { %v408_v28 = vadd.f32 %v403_v27, %v347_v26 }
 0x15a   : > { %v561_v30 = vpop.f32.mrf.mxu0 }
 0x15b   : > { %v422_v31 = vadd.f32 %v419_v29, %v408_v28 }
 0x15d   : > { %v535_v32 = vmul.f32 -1.442695, %v422_v31 }
 0x15f   : > { %596 = vpow2.f32 %v535_v32 }
 0x16c   : > { %v597_v33 = vpop.eup %596 }
 0x16d   : > { %v426_v34 = vadd.f32 1.0, %v597_v33 }
 0x16f   : > { %598 = vrcp.f32 %v426_v34 }
 0x17c   : > { %v599_v39 = vpop.eup %598 }
 0x17d   : > { %v429_v40 = vmul.f32 %v599_v39, %v421_v38 }
 0x17f   : > { %v430_v41 = vpack.c.bf16 %v429_v40, %v429_v40 }
 0x181   : > { %432 = vst.msk [vmem:[%s229_s14] sm:$0xf] %vm431_vm3, %v430_v41 }
 0x182 PF: > { %s14_s17 = sadd.s32 1, %s622_s17   ;;  %s724_s15 = smov %s618_s16 }
 0x183   : > { %p11_p5 = scmp.ge.s32.totalorder %s14_s17, 4   ;;  %s725_s16 = smov %s727_s18 }
 0x185   :  { %13 = sbr.rel (!%p11_p5) target bundleno = 2 (0x2), region = 71 }

// kernel: drumamba_forward.23
= control target key start
LH: loop header
LB: loop body
LE: loop exit
PB: predicated region body
PF: predicated region fallthrough
CT: control target
= control target key end

     0   :  { %s515_s12 = smov 0   ;;  %s517_s13 = smov 0   ;;  %s564_s0 = inlined_call_operand.vmem [shape: bf16[2,8,18], index: 0, kind: input, shape index: {}]   ;;  %s565_s1 = inlined_call_operand.vmem [shape: bf16[2,16,8], index: 1, kind: input, shape index: {}]   ;;  %s566_s2 = inlined_call_operand.vmem [shape: f32[16,1], index: 2, kind: input, shape index: {}]   ;;  %s567_s3 = inlined_call_operand.vmem [shape: f32[2,16,17], index: 3, kind: output, shape index: {}]  }
   0x1   :  { %s519_s14 = smov 0  }
   0x2 LB: > { %s25_s15 = sadd.s32 1, %s485_s13  ;;  %p404_p0 = scmp.ge.s32.totalorder %s489_s14, 1  ;;  %s489_s14 = sphi %s519_s14, %s13_s14   ;;  %s485_s13 = sphi %s517_s13, %s569_s13   ;;  %s481_s12 = sphi %s515_s12, %s568_s12  }
   0x3   : > { %p27_p1 = scmp.ge.s32.totalorder %s25_s15, 2  ;;  %p150_p2 = scmp.lt.s32.totalorder %s489_s14, 3 }
   0x5   : > { %s571_s15 = smov (%p27_p1, %s25_s15), 0  ;;  %p151_p3 = pnand %p404_p0, %p150_p2 }
   0x6   : > { %p176_p4 = scmp.lt.s32.totalorder (!%p151_p3), %s481_s12, 1  ;;  %s494_s24 = smov (!%p151_p3), 127  }
   0x7   : > { %154 = sbr.rel (%p151_p3) target bundleno = 339 (0x153), region = 32 }
   0xc   : > { %v491_v0 = vmov 0.0   ;;  %vm492_vm0 = vmmov 0   ;;  %s573_s12 = smov (!%p176_p4, %s481_s12), 1  ;;  %v493_v1 = vmov 0   ;;  %v307_v2 = vld [vmem:[%s566_s2 + $0x8] sm:$0xff]  ;;  %vm209_vm1 = vcmask 1043456  }
   0xd   : > { %428 = vmatprep.subr.bf16.mxu1 %v491_v0  ;;  %430 = vmatprep.mubr.msk.bf16.mxu1 %vm492_vm0, %v491_v0  ;;  %s405_s18 = sshll.u32 %s573_s12, 2  ;;  %v465_v6 = vld [vmem:[%s565_s1] sm:$0xff]   ;;  %vm205_vm2 = vcmask 64512   ;;  %v466_v10 = vld [vmem:[%s565_s1 + $0x8] sm:$0xff]   ;;  %s417_s29 = sshll.u32 %s573_s12, 4  ;;  %vm320_vm3 = vcmask 138240  }
   0xe   : > { %422 = vmatprep.subr.bf16.mxu0 %v491_v0  ;;  %424 = vmatprep.mubr.msk.bf16.mxu0 %vm492_vm0, %v491_v0  ;;  %s179_s21 = scalar_lea.vmem %s564_s0, %s405_s18  ;;  %v306_v7 = vld [vmem:[%s566_s2] sm:$0xff]  ;;  %s187_s5 = scalar_lea.vmem %s567_s3, %s417_s29 }
   0xf   : > { %462 = vset.pattern.permute.xlu0 %v493_v1  ;;  %463 = vset.pattern.permute.xlu1 %v493_v1  ;;  %v189_v3 = vld [vmem:[%s179_s21] sm:$0xf] }
  0x10   : > { %315 = vperm.xlu1 %463, %v307_v2   ;;  %v411_v4 = vcombine.low %v189_v3, %v189_v3  ;;  %v263_v5 = vsel %vm209_vm1, %v189_v3, 0 }
  0x11   : > { %429 = vmatpush3.bf16.msra.mxu1 %v263_v5 }
  0x12   : > { %203 = vrot.lane.b32.xlu0 %v411_v4, %s494_s24 }
  0x14   : > { %431 = vmatmul.mubr.msk.bf16.vlgmr.msra.gmra.mxu1 %vm205_vm2, %v465_v6 }
  0x16   : > { %310 = vperm.xlu0 %462, %v306_v7  }
  0x84   : > { %v204_v8 = vpop.permute.xlu0 %203 }
  0x85   : > { %v211_v9 = vsel %vm209_vm1, %v204_v8, 0 }
  0x86   : > { %423 = vmatpush3.bf16.msra.mxu0 %v211_v9 }
  0x89   : > { %425 = vmatmul.mubr.msk.bf16.vlgmr.msra.gmra.mxu0 %vm205_vm2, %v466_v10 }
  0x8b   : > { %v316_v21 = vpop.permute.xlu1 %315 }
  0x91   : > { %v311_v16 = vpop.permute.xlu0 %310 }
  0xd4   : > { %v299_v11 = vpop.f32.mrf.mxu1 }
  0xd6   : > { %v432_v12 = vpop.f32.mrf.mxu1 }
  0xd8   : > { %v302_v13 = vpop.f32.mrf.mxu1 }
  0xda   : > { %v433_v14 = vpop.f32.mrf.mxu1 }
 0x149   : > { %v247_v15 = vpop.f32.mrf.mxu0 }
 0x14a   : > { %v300_v17 = vadd.f32 %v299_v11, %v247_v15 }
 0x14b   : > { %v426_v18 = vpop.f32.mrf.mxu0 }
 0x14c   : > { %v318_v19 = vadd.f32 %v311_v16, %v300_v17 }
 0x14d   : > { %v250_v20 = vpop.f32.mrf.mxu0 }
 0x14e   : > { %321 = vst.msk [vmem:[%s187_s5] sm:$0xff] %vm320_vm3, %v318_v19  ;;  %v303_v22 = vadd.f32 %v302_v13, %v250_v20 }
 0x14f   : > { %v427_v23 = vpop.f32.mrf.mxu0 }
 0x150   : > { %v319_v24 = vadd.f32 %v316_v21, %v303_v22 }
 0x152   : > { %322 = vst.msk [vmem:[%s187_s5 + $0x8] sm:$0xff] %vm320_vm3, %v319_v24 }
 0x153 PF: > { %s13_s14 = sadd.s32 1, %s489_s14   ;;  %s568_s12 = smov %s485_s13 }
 0x154   : > { %p10_p5 = scmp.ge.s32.totalorder %s13_s14, 4   ;;  %s569_s13 = smov %s571_s15 }
 0x156   :  { %12 = sbr.rel (!%p10_p5) target bundleno = 2 (0x2), region = 63 }

</bundles_post_ra>
